<compile_context>
chip_gen: v5e
topology: v5e:2x2
jax: 0.10.0
libtpu: 0.0.40
codegen_flags: <defaults>
</compile_context>

<pallas_src>
import functools

import jax
import jax.numpy as jnp
from jax.experimental import pallas as pl
from jax.experimental.pallas import tpu as pltpu


# ---------------------------------------------------------------------------
# Kernel
# ---------------------------------------------------------------------------
def _aux_fused_kernel(p_ref, cw_ref, shift_ref, w1_ref, b1_ref, w2_ref,
                      o_ref, act_ref, *, np_):
    """Fused conv(1x1)+BN+ReLU -> fc1+ReLU -> fc2 (partial) forward.

    p_ref:     (16*Np, Cin) bf16  pooled input, rows ordered (s, n), batch padded to Np
    cw_ref:    (Cin, 128)   bf16  1x1 conv weight with BN scale folded in
    shift_ref: (1, 128)     f32   BN shift (beta - mean*scale)
    w1_ref:    (2048, tn)   bf16  fc1 weight tile, rows permuted to (s*128 + c)
    b1_ref:    (1, tn)      f32   fc1 bias tile
    w2_ref:    (tn, NCp)    bf16  fc2 weight tile (lane-padded classes)
    o_ref:     (Np, NCp)    f32   per-core partial fc2 output (resident accumulator)
    act_ref:   (Np, 2048)   bf16  VMEM scratch: flattened conv activation
    """
    j = pl.program_id(1)

    @pl.when(j == 0)
    def _():
        # 1x1 conv (BN scale pre-folded) over all 16 pooled positions in one matmul.
        y = jnp.dot(p_ref[...], cw_ref[...], preferred_element_type=jnp.float32)  # (16Np,128)
        y = jnp.maximum(y + shift_ref[...], 0.0)
        # Scatter into the flat (Np, 2048) activation; column block s holds channels of
        # spatial position s. Np % 8 == 0 => sublane-aligned unmasked stores.
        for s in range(16):
            act_ref[:, s * 128:(s + 1) * 128] = (
                y[s * np_:(s + 1) * np_, :].astype(act_ref.dtype))
        o_ref[...] = jnp.zeros_like(o_ref)

    # fc1 tile (bf16 MXU, f32 accumulate) + bias + ReLU.
    h = jnp.dot(act_ref[...], w1_ref[...], preferred_element_type=jnp.float32) + b1_ref[...]
    h = jnp.maximum(h, 0.0).astype(w2_ref.dtype)
    # TODO(synk): F.dropout(p=0.7) is identity in eval mode; training-mode RNG dropout not implemented.
    o_ref[...] += jnp.dot(h, w2_ref[...], preferred_element_type=jnp.float32)


# ---------------------------------------------------------------------------
# Wrapper
# ---------------------------------------------------------------------------
def _adaptive_avg_pool_4x4(x):
    """General F.adaptive_avg_pool2d(x, (4, 4)) in XLA (handles uneven windows, e.g. 14x14)."""
    _, _, H, W = x.shape
    rows = []
    for i in range(4):
        hs, he = (i * H) // 4, ((i + 1) * H + 3) // 4
        cols = []
        for k in range(4):
            ws, we = (k * W) // 4, ((k + 1) * W + 3) // 4
            cols.append(jnp.mean(x[:, :, hs:he, ws:we], axis=(2, 3)))   # (N, C)
        rows.append(jnp.stack(cols, axis=-1))                            # (N, C, 4)
    return jnp.stack(rows, axis=-2)                                      # (N, C, 4, 4)


def _device_config():
    """Per-generation tiling: (tn, ncores). v7x: split fc1 outputs across the 2 TCs."""
    try:
        kind = jax.devices()[0].device_kind.lower()
    except Exception:
        kind = ""
    if "v7" in kind or "7x" in kind:
        return 512, 2          # 1 grid step per core, both TensorCores stream half of w1
    return 512, 1              # v5e / v6e: single TC, 2 weight-streaming steps


def prepare_params(params, num_classes):
    """One-time parameter preparation (hoisted out of the per-call forward path)."""
    eps = 1e-3
    scale = params["bn_gamma"] / jnp.sqrt(params["bn_var"] + eps)
    shift = (params["bn_beta"] - params["bn_mean"] * scale)[None, :].astype(jnp.float32)
    cw = (params["conv_w"] * scale[None, :]).astype(jnp.bfloat16)         # (Cin, 128)

    # fc1 weight: permute rows from torch.flatten order (c*16 + s) to kernel activation
    # order (s*128 + c); store as bf16 (streamed weight, f32 accumulate in-kernel).
    w1 = params["fc1_w"].reshape(128, 16, 1024).transpose(1, 0, 2).reshape(2048, 1024)
    w1 = w1.astype(jnp.bfloat16)
    b1 = params["fc1_b"][None, :].astype(jnp.float32)                     # (1, 1024)

    # fc2: pad the class (lane) dim to a multiple of 128 for unmasked stores.
    ncp = max(128, ((num_classes + 127) // 128) * 128)
    w2 = jnp.zeros((1024, ncp), jnp.bfloat16).at[:, :num_classes].set(
        params["fc2_w"].astype(jnp.bfloat16))
    b2 = params["fc2_b"].astype(jnp.float32)                              # added in XLA
    return {"cw": cw, "shift": shift, "w1": w1, "b1": b1, "w2": w2, "b2": b2}


def inception_aux_forward(x_nchw, prepped, *, num_classes):
    N, Cin, H, W = x_nchw.shape

    # adaptive_avg_pool2d(4,4) in XLA: tiny (16*Np, Cin) tensor enters the kernel instead
    # of a full-size f32 relayout of x. Rows ordered (s, n) so the kernel's conv-output
    # slices land on sublane boundaries; batch padded to a multiple of 8.
    pooled = _adaptive_avg_pool_4x4(x_nchw)                                # (N, Cin, 4, 4)
    pooled = jnp.transpose(pooled, (2, 3, 0, 1)).reshape(16, N, Cin)
    npad = ((N + 7) // 8) * 8
    if npad != N:
        pooled = jnp.pad(pooled, ((0, 0), (0, npad - N), (0, 0)))
    pooled = pooled.reshape(16 * npad, Cin).astype(jnp.bfloat16)

    w1, b1, w2 = prepped["w1"], prepped["b1"], prepped["w2"]
    ncp = w2.shape[1]
    tn, ncores = _device_config()
    nsteps = w1.shape[1] // (ncores * tn)
    assert nsteps * ncores * tn == w1.shape[1]

    out = pl.pallas_call(
        functools.partial(_aux_fused_kernel, np_=npad),
        out_shape=jax.ShapeDtypeStruct((ncores * npad, ncp), jnp.float32),
        grid=(ncores, nsteps),
        in_specs=[
            pl.BlockSpec((16 * npad, Cin), lambda c, j: (0, 0)),           # pooled
            pl.BlockSpec((Cin, 128), lambda c, j: (0, 0)),                 # conv weight
            pl.BlockSpec((1, 128), lambda c, j: (0, 0)),                   # BN shift
            pl.BlockSpec((2048, tn), lambda c, j: (0, c * nsteps + j)),    # fc1 weight tile
            pl.BlockSpec((1, tn), lambda c, j: (0, c * nsteps + j)),       # fc1 bias tile
            pl.BlockSpec((tn, ncp), lambda c, j: (c * nsteps + j, 0)),     # fc2 weight tile
        ],
        out_specs=pl.BlockSpec((npad, ncp), lambda c, j: (c, 0)),
        scratch_shapes=[
            pltpu.VMEM((npad, 2048), jnp.bfloat16),    # flattened conv activation
        ],
        compiler_params=pltpu.CompilerParams(
            dimension_semantics=("parallel", "arbitrary"),
            vmem_limit_bytes=32 * 1024 * 1024),
    )(pooled, prepped["cw"], prepped["shift"], w1, b1, w2)

    # Reduce per-core partials (no-op when ncores == 1), strip padding, add fc2 bias.
    logits = out.reshape(ncores, npad, ncp).sum(axis=0)[:N, :num_classes] + prepped["b2"]
    return logits


# ---------------------------------------------------------------------------
# Parameters / reference
# ---------------------------------------------------------------------------
def init_params(key, in_channels, num_classes):
    """Deterministic synthetic parameters (shapes follow the PyTorch module)."""
    ks = jax.random.split(key, 8)
    p = {}
    # Conv2d(in_channels, 128, kernel_size=1, bias=False): torch weight (128, Cin, 1, 1)
    # stored here as (Cin, 128) for the matmul formulation.
    p["conv_w"] = 0.05 * jax.random.normal(ks[0], (in_channels, 128), jnp.float32)
    # BatchNorm2d(128) in eval mode (weight, bias, running_mean, running_var).
    p["bn_gamma"] = 1.0 + 0.1 * jax.random.normal(ks[1], (128,), jnp.float32)
    p["bn_beta"] = 0.1 * jax.random.normal(ks[2], (128,), jnp.float32)
    p["bn_mean"] = 0.1 * jax.random.normal(ks[3], (128,), jnp.float32)
    p["bn_var"] = 0.5 + jax.random.uniform(ks[4], (128,), jnp.float32)
    # Linear(2048, 1024): stored as (in, out), i.e. torch weight transposed.
    p["fc1_w"] = 0.02 * jax.random.normal(ks[5], (2048, 1024), jnp.float32)
    p["fc1_b"] = 0.01 * jax.random.normal(ks[6], (1024,), jnp.float32)
    # Linear(1024, num_classes)
    p["fc2_w"] = 0.02 * jax.random.normal(ks[7], (1024, num_classes), jnp.float32)
    p["fc2_b"] = jnp.zeros((num_classes,), jnp.float32)
    return p


def _reference_forward(x_nchw, params, *, num_classes):
    """Pure-JAX f32 reference mirroring the PyTorch forward (eval mode)."""
    N = x_nchw.shape[0]
    x = _adaptive_avg_pool_4x4(x_nchw)                                   # (N, Cin, 4, 4)
    z = jnp.einsum("nchw,ck->nkhw", x, params["conv_w"])                 # 1x1 conv
    eps = 1e-3
    scale = params["bn_gamma"] / jnp.sqrt(params["bn_var"] + eps)
    shift = params["bn_beta"] - params["bn_mean"] * scale
    z = jnp.maximum(z * scale[None, :, None, None] + shift[None, :, None, None], 0.0)
    flat = z.reshape(N, 2048)                                            # torch.flatten(x, 1)
    h = jnp.maximum(flat @ params["fc1_w"] + params["fc1_b"], 0.0)
    return h @ params["fc2_w"] + params["fc2_b"]


if __name__ == "__main__":
    key = jax.random.PRNGKey(0)
    k_x, k_p, k_x2 = jax.random.split(key, 3)

    batch, in_channels, spatial, num_classes = 2, 32, 8, 16
    x = jax.random.normal(k_x, (batch, in_channels, spatial, spatial), jnp.float32)
    params = init_params(k_p, in_channels, num_classes)

    # One-time weight preparation (hoisted out of the per-call forward path).
    prepped = prepare_params(params, num_classes)
    fwd = jax.jit(functools.partial(inception_aux_forward, num_classes=num_classes))

    # Test 1: divisible pooling windows; also check the XLA pool against a reshape-mean.
    out = jax.block_until_ready(fwd(x, prepped))
    ref = _reference_forward(x, params, num_classes=num_classes)
    pool_simple = x.reshape(batch, in_channels, 4, 2, 4, 2).mean(axis=(3, 5))
    assert jnp.allclose(_adaptive_avg_pool_4x4(x), pool_simple, atol=1e-6)
    assert out.shape == (batch, num_classes)
    assert jnp.allclose(out, ref, atol=5e-2, rtol=5e-2)

    # Test 2: GoogLeNet-like 14x14 aux input (uneven adaptive windows) + odd batch (padding).
    x2 = jax.random.normal(k_x2, (3, in_channels, 14, 14), jnp.float32)
    out2 = jax.block_until_ready(fwd(x2, prepped))
    ref2 = _reference_forward(x2, params, num_classes=num_classes)
    assert out2.shape == (3, num_classes)
    assert jnp.allclose(out2, ref2, atol=5e-2, rtol=5e-2)

    print("KERNEL_OK")
</pallas_src>

<mosaic_0001>
module attributes {stable_mosaic.version = 11 : i64} {
  func.func @_aux_fused_kernel(%arg0: i32, %arg1: i32, %arg2: memref<128x32xbf16, #tpu.memory_space<vmem>>, %arg3: memref<32x128xbf16, #tpu.memory_space<vmem>>, %arg4: memref<1x128xf32, #tpu.memory_space<vmem>>, %arg5: memref<2048x512xbf16, #tpu.memory_space<vmem>>, %arg6: memref<1x512xf32, #tpu.memory_space<vmem>>, %arg7: memref<512x128xbf16, #tpu.memory_space<vmem>>, %arg8: memref<8x128xf32, #tpu.memory_space<vmem>>, %arg9: memref<8x2048xbf16, #tpu.memory_space<vmem>>) attributes {dimension_semantics = [#tpu.dimension_semantics<parallel>, #tpu.dimension_semantics<arbitrary>], iteration_bounds = array<i64: 1, 2>, scalar_prefetch = 0 : i64, scratch_operands = 1 : i64, tpu.core_type = #tpu.core_type<tc>, window_params = [{pipeline_mode = #tpu.pipeline_mode<synchronous>, transform_indices = @transform_0, window_bounds = array<i64: 128, 32>}, {pipeline_mode = #tpu.pipeline_mode<synchronous>, transform_indices = @transform_1, window_bounds = array<i64: 32, 128>}, {pipeline_mode = #tpu.pipeline_mode<synchronous>, transform_indices = @transform_2, window_bounds = array<i64: 1, 128>}, {transform_indices = @transform_3, window_bounds = array<i64: 2048, 512>}, {transform_indices = @transform_4, window_bounds = array<i64: 1, 512>}, {transform_indices = @transform_5, window_bounds = array<i64: 512, 128>}, {transform_indices = @transform_6, window_bounds = array<i64: 8, 128>}]} {
    %c0_i32 = arith.constant 0 : i32
    %0 = arith.cmpi eq, %arg1, %c0_i32 : i32
    %1 = arith.extui %0 : i1 to i32
    %c0_i32_0 = arith.constant 0 : i32
    %2 = arith.cmpi ne, %1, %c0_i32_0 : i32
    scf.if %2 {
      %c0_14 = arith.constant 0 : index
      %c0_15 = arith.constant 0 : index
      %17 = vector.load %arg2[%c0_14, %c0_15] : memref<128x32xbf16, #tpu.memory_space<vmem>>, vector<128x32xbf16>
      %c0_16 = arith.constant 0 : index
      %c0_17 = arith.constant 0 : index
      %18 = vector.load %arg3[%c0_16, %c0_17] : memref<32x128xbf16, #tpu.memory_space<vmem>>, vector<32x128xbf16>
      %cst_18 = arith.constant dense<0.000000e+00> : vector<128x128xf32>
      %19 = tpu.matmul %17, %18, %cst_18 {dimension_numbers = #tpu.dot_dimension_numbers<[1], [0], [0], [1], [0, 0, 1, 1], [], []>} : vector<128x32xbf16>, vector<32x128xbf16>, vector<128x128xf32> -> vector<128x128xf32>
      %c0_19 = arith.constant 0 : index
      %c0_20 = arith.constant 0 : index
      %20 = vector.load %arg4[%c0_19, %c0_20] : memref<1x128xf32, #tpu.memory_space<vmem>>, vector<1x128xf32>
      %21 = vector.broadcast %20 : vector<1x128xf32> to vector<128x128xf32>
      %22 = arith.addf %19, %21 : vector<128x128xf32>
      %cst_21 = arith.constant 0.000000e+00 : f32
      %23 = vector.broadcast %cst_21 : f32 to vector<128x128xf32>
      %24 = arith.maximumf %22, %23 : vector<128x128xf32>
      %25 = vector.extract_strided_slice %24 {offsets = [0, 0], sizes = [8, 128], strides = [1, 1]} : vector<128x128xf32> to vector<8x128xf32>
      %26 = arith.truncf %25 : vector<8x128xf32> to vector<8x128xbf16>
      %c0_22 = arith.constant 0 : index
      %c0_23 = arith.constant 0 : index
      %27 = vector.load %arg9[%c0_22, %c0_23] : memref<8x2048xbf16, #tpu.memory_space<vmem>>, vector<8x128xbf16>
      tpu.vector_store %arg9[%c0_22, %c0_23], %26 {strides = array<i32>} : memref<8x2048xbf16, #tpu.memory_space<vmem>>, vector<8x128xbf16>,
      %28 = vector.extract_strided_slice %24 {offsets = [8, 0], sizes = [8, 128], strides = [1, 1]} : vector<128x128xf32> to vector<8x128xf32>
      %29 = arith.truncf %28 : vector<8x128xf32> to vector<8x128xbf16>
      %c0_24 = arith.constant 0 : index
      %c128 = arith.constant 128 : index
      %30 = vector.load %arg9[%c0_24, %c128] : memref<8x2048xbf16, #tpu.memory_space<vmem>>, vector<8x128xbf16>
      tpu.vector_store %arg9[%c0_24, %c128], %29 {strides = array<i32>} : memref<8x2048xbf16, #tpu.memory_space<vmem>>, vector<8x128xbf16>,
      %31 = vector.extract_strided_slice %24 {offsets = [16, 0], sizes = [8, 128], strides = [1, 1]} : vector<128x128xf32> to vector<8x128xf32>
      %32 = arith.truncf %31 : vector<8x128xf32> to vector<8x128xbf16>
      %c0_25 = arith.constant 0 : index
      %c256 = arith.constant 256 : index
      %33 = vector.load %arg9[%c0_25, %c256] : memref<8x2048xbf16, #tpu.memory_space<vmem>>, vector<8x128xbf16>
      tpu.vector_store %arg9[%c0_25, %c256], %32 {strides = array<i32>} : memref<8x2048xbf16, #tpu.memory_space<vmem>>, vector<8x128xbf16>,
      %34 = vector.extract_strided_slice %24 {offsets = [24, 0], sizes = [8, 128], strides = [1, 1]} : vector<128x128xf32> to vector<8x128xf32>
      %35 = arith.truncf %34 : vector<8x128xf32> to vector<8x128xbf16>
      %c0_26 = arith.constant 0 : index
      %c384 = arith.constant 384 : index
      %36 = vector.load %arg9[%c0_26, %c384] : memref<8x2048xbf16, #tpu.memory_space<vmem>>, vector<8x128xbf16>
      tpu.vector_store %arg9[%c0_26, %c384], %35 {strides = array<i32>} : memref<8x2048xbf16, #tpu.memory_space<vmem>>, vector<8x128xbf16>,
      %37 = vector.extract_strided_slice %24 {offsets = [32, 0], sizes = [8, 128], strides = [1, 1]} : vector<128x128xf32> to vector<8x128xf32>
      %38 = arith.truncf %37 : vector<8x128xf32> to vector<8x128xbf16>
      %c0_27 = arith.constant 0 : index
      %c512 = arith.constant 512 : index
      %39 = vector.load %arg9[%c0_27, %c512] : memref<8x2048xbf16, #tpu.memory_space<vmem>>, vector<8x128xbf16>
      tpu.vector_store %arg9[%c0_27, %c512], %38 {strides = array<i32>} : memref<8x2048xbf16, #tpu.memory_space<vmem>>, vector<8x128xbf16>,
      %40 = vector.extract_strided_slice %24 {offsets = [40, 0], sizes = [8, 128], strides = [1, 1]} : vector<128x128xf32> to vector<8x128xf32>
      %41 = arith.truncf %40 : vector<8x128xf32> to vector<8x128xbf16>
      %c0_28 = arith.constant 0 : index
      %c640 = arith.constant 640 : index
      %42 = vector.load %arg9[%c0_28, %c640] : memref<8x2048xbf16, #tpu.memory_space<vmem>>, vector<8x128xbf16>
      tpu.vector_store %arg9[%c0_28, %c640], %41 {strides = array<i32>} : memref<8x2048xbf16, #tpu.memory_space<vmem>>, vector<8x128xbf16>,
      %43 = vector.extract_strided_slice %24 {offsets = [48, 0], sizes = [8, 128], strides = [1, 1]} : vector<128x128xf32> to vector<8x128xf32>
      %44 = arith.truncf %43 : vector<8x128xf32> to vector<8x128xbf16>
      %c0_29 = arith.constant 0 : index
      %c768 = arith.constant 768 : index
      %45 = vector.load %arg9[%c0_29, %c768] : memref<8x2048xbf16, #tpu.memory_space<vmem>>, vector<8x128xbf16>
      tpu.vector_store %arg9[%c0_29, %c768], %44 {strides = array<i32>} : memref<8x2048xbf16, #tpu.memory_space<vmem>>, vector<8x128xbf16>,
      %46 = vector.extract_strided_slice %24 {offsets = [56, 0], sizes = [8, 128], strides = [1, 1]} : vector<128x128xf32> to vector<8x128xf32>
      %47 = arith.truncf %46 : vector<8x128xf32> to vector<8x128xbf16>
      %c0_30 = arith.constant 0 : index
      %c896 = arith.constant 896 : index
      %48 = vector.load %arg9[%c0_30, %c896] : memref<8x2048xbf16, #tpu.memory_space<vmem>>, vector<8x128xbf16>
      tpu.vector_store %arg9[%c0_30, %c896], %47 {strides = array<i32>} : memref<8x2048xbf16, #tpu.memory_space<vmem>>, vector<8x128xbf16>,
      %49 = vector.extract_strided_slice %24 {offsets = [64, 0], sizes = [8, 128], strides = [1, 1]} : vector<128x128xf32> to vector<8x128xf32>
      %50 = arith.truncf %49 : vector<8x128xf32> to vector<8x128xbf16>
      %c0_31 = arith.constant 0 : index
      %c1024 = arith.constant 1024 : index
      %51 = vector.load %arg9[%c0_31, %c1024] : memref<8x2048xbf16, #tpu.memory_space<vmem>>, vector<8x128xbf16>
      tpu.vector_store %arg9[%c0_31, %c1024], %50 {strides = array<i32>} : memref<8x2048xbf16, #tpu.memory_space<vmem>>, vector<8x128xbf16>,
      %52 = vector.extract_strided_slice %24 {offsets = [72, 0], sizes = [8, 128], strides = [1, 1]} : vector<128x128xf32> to vector<8x128xf32>
      %53 = arith.truncf %52 : vector<8x128xf32> to vector<8x128xbf16>
      %c0_32 = arith.constant 0 : index
      %c1152 = arith.constant 1152 : index
      %54 = vector.load %arg9[%c0_32, %c1152] : memref<8x2048xbf16, #tpu.memory_space<vmem>>, vector<8x128xbf16>
      tpu.vector_store %arg9[%c0_32, %c1152], %53 {strides = array<i32>} : memref<8x2048xbf16, #tpu.memory_space<vmem>>, vector<8x128xbf16>,
      %55 = vector.extract_strided_slice %24 {offsets = [80, 0], sizes = [8, 128], strides = [1, 1]} : vector<128x128xf32> to vector<8x128xf32>
      %56 = arith.truncf %55 : vector<8x128xf32> to vector<8x128xbf16>
      %c0_33 = arith.constant 0 : index
      %c1280 = arith.constant 1280 : index
      %57 = vector.load %arg9[%c0_33, %c1280] : memref<8x2048xbf16, #tpu.memory_space<vmem>>, vector<8x128xbf16>
      tpu.vector_store %arg9[%c0_33, %c1280], %56 {strides = array<i32>} : memref<8x2048xbf16, #tpu.memory_space<vmem>>, vector<8x128xbf16>,
      %58 = vector.extract_strided_slice %24 {offsets = [88, 0], sizes = [8, 128], strides = [1, 1]} : vector<128x128xf32> to vector<8x128xf32>
      %59 = arith.truncf %58 : vector<8x128xf32> to vector<8x128xbf16>
      %c0_34 = arith.constant 0 : index
      %c1408 = arith.constant 1408 : index
      %60 = vector.load %arg9[%c0_34, %c1408] : memref<8x2048xbf16, #tpu.memory_space<vmem>>, vector<8x128xbf16>
      tpu.vector_store %arg9[%c0_34, %c1408], %59 {strides = array<i32>} : memref<8x2048xbf16, #tpu.memory_space<vmem>>, vector<8x128xbf16>,
      %61 = vector.extract_strided_slice %24 {offsets = [96, 0], sizes = [8, 128], strides = [1, 1]} : vector<128x128xf32> to vector<8x128xf32>
      %62 = arith.truncf %61 : vector<8x128xf32> to vector<8x128xbf16>
      %c0_35 = arith.constant 0 : index
      %c1536 = arith.constant 1536 : index
      %63 = vector.load %arg9[%c0_35, %c1536] : memref<8x2048xbf16, #tpu.memory_space<vmem>>, vector<8x128xbf16>
      tpu.vector_store %arg9[%c0_35, %c1536], %62 {strides = array<i32>} : memref<8x2048xbf16, #tpu.memory_space<vmem>>, vector<8x128xbf16>,
      %64 = vector.extract_strided_slice %24 {offsets = [104, 0], sizes = [8, 128], strides = [1, 1]} : vector<128x128xf32> to vector<8x128xf32>
      %65 = arith.truncf %64 : vector<8x128xf32> to vector<8x128xbf16>
      %c0_36 = arith.constant 0 : index
      %c1664 = arith.constant 1664 : index
      %66 = vector.load %arg9[%c0_36, %c1664] : memref<8x2048xbf16, #tpu.memory_space<vmem>>, vector<8x128xbf16>
      tpu.vector_store %arg9[%c0_36, %c1664], %65 {strides = array<i32>} : memref<8x2048xbf16, #tpu.memory_space<vmem>>, vector<8x128xbf16>,
      %67 = vector.extract_strided_slice %24 {offsets = [112, 0], sizes = [8, 128], strides = [1, 1]} : vector<128x128xf32> to vector<8x128xf32>
      %68 = arith.truncf %67 : vector<8x128xf32> to vector<8x128xbf16>
      %c0_37 = arith.constant 0 : index
      %c1792 = arith.constant 1792 : index
      %69 = vector.load %arg9[%c0_37, %c1792] : memref<8x2048xbf16, #tpu.memory_space<vmem>>, vector<8x128xbf16>
      tpu.vector_store %arg9[%c0_37, %c1792], %68 {strides = array<i32>} : memref<8x2048xbf16, #tpu.memory_space<vmem>>, vector<8x128xbf16>,
      %70 = vector.extract_strided_slice %24 {offsets = [120, 0], sizes = [8, 128], strides = [1, 1]} : vector<128x128xf32> to vector<8x128xf32>
      %71 = arith.truncf %70 : vector<8x128xf32> to vector<8x128xbf16>
      %c0_38 = arith.constant 0 : index
      %c1920 = arith.constant 1920 : index
      %72 = vector.load %arg9[%c0_38, %c1920] : memref<8x2048xbf16, #tpu.memory_space<vmem>>, vector<8x128xbf16>
      tpu.vector_store %arg9[%c0_38, %c1920], %71 {strides = array<i32>} : memref<8x2048xbf16, #tpu.memory_space<vmem>>, vector<8x128xbf16>,
      %cst_39 = arith.constant 0.000000e+00 : f32
      %73 = vector.broadcast %cst_39 : f32 to vector<8x128xf32>
      %c0_40 = arith.constant 0 : index
      %c0_41 = arith.constant 0 : index
      %74 = vector.load %arg8[%c0_40, %c0_41] : memref<8x128xf32, #tpu.memory_space<vmem>>, vector<8x128xf32>
      tpu.vector_store %arg8[%c0_40, %c0_41], %73 {strides = array<i32>} : memref<8x128xf32, #tpu.memory_space<vmem>>, vector<8x128xf32>,
    } else {
    }
    %c0 = arith.constant 0 : index
    %c0_1 = arith.constant 0 : index
    %3 = vector.load %arg9[%c0, %c0_1] : memref<8x2048xbf16, #tpu.memory_space<vmem>>, vector<8x2048xbf16>
    %c0_2 = arith.constant 0 : index
    %c0_3 = arith.constant 0 : index
    %4 = vector.load %arg5[%c0_2, %c0_3] : memref<2048x512xbf16, #tpu.memory_space<vmem>>, vector<2048x512xbf16>
    %cst = arith.constant dense<0.000000e+00> : vector<8x512xf32>
    %5 = tpu.matmul %3, %4, %cst {dimension_numbers = #tpu.dot_dimension_numbers<[1], [0], [0], [1], [0, 0, 1, 1], [], []>} : vector<8x2048xbf16>, vector<2048x512xbf16>, vector<8x512xf32> -> vector<8x512xf32>
    %c0_4 = arith.constant 0 : index
    %c0_5 = arith.constant 0 : index
    %6 = vector.load %arg6[%c0_4, %c0_5] : memref<1x512xf32, #tpu.memory_space<vmem>>, vector<1x512xf32>
    %7 = vector.broadcast %6 : vector<1x512xf32> to vector<8x512xf32>
    %8 = arith.addf %5, %7 : vector<8x512xf32>
    %cst_6 = arith.constant 0.000000e+00 : f32
    %9 = vector.broadcast %cst_6 : f32 to vector<8x512xf32>
    %10 = arith.maximumf %8, %9 : vector<8x512xf32>
    %11 = arith.truncf %10 : vector<8x512xf32> to vector<8x512xbf16>
    %c0_7 = arith.constant 0 : index
    %c0_8 = arith.constant 0 : index
    %12 = vector.load %arg8[%c0_7, %c0_8] : memref<8x128xf32, #tpu.memory_space<vmem>>, vector<8x128xf32>
    %c0_9 = arith.constant 0 : index
    %c0_10 = arith.constant 0 : index
    %13 = vector.load %arg7[%c0_9, %c0_10] : memref<512x128xbf16, #tpu.memory_space<vmem>>, vector<512x128xbf16>
    %cst_11 = arith.constant dense<0.000000e+00> : vector<8x128xf32>
    %14 = tpu.matmul %11, %13, %cst_11 {dimension_numbers = #tpu.dot_dimension_numbers<[1], [0], [0], [1], [0, 0, 1, 1], [], []>} : vector<8x512xbf16>, vector<512x128xbf16>, vector<8x128xf32> -> vector<8x128xf32>
    %15 = arith.addf %12, %14 : vector<8x128xf32>
    %c0_12 = arith.constant 0 : index
    %c0_13 = arith.constant 0 : index
    %16 = vector.load %arg8[%c0_12, %c0_13] : memref<8x128xf32, #tpu.memory_space<vmem>>, vector<8x128xf32>
    tpu.vector_store %arg8[%c0_12, %c0_13], %15 {strides = array<i32>} : memref<8x128xf32, #tpu.memory_space<vmem>>, vector<8x128xf32>,
    return
  }
  func.func @transform_0(%arg0: i32, %arg1: i32) -> (i32, i32) {
    %c0_i32 = arith.constant 0 : i32
    %c0_i32_0 = arith.constant 0 : i32
    %c0_i32_1 = arith.constant 0 : i32
    return %c0_i32, %c0_i32_0 : i32, i32
  }
  func.func @transform_1(%arg0: i32, %arg1: i32) -> (i32, i32) {
    %c0_i32 = arith.constant 0 : i32
    %c0_i32_0 = arith.constant 0 : i32
    %c0_i32_1 = arith.constant 0 : i32
    return %c0_i32, %c0_i32_0 : i32, i32
  }
  func.func @transform_2(%arg0: i32, %arg1: i32) -> (i32, i32) {
    %c0_i32 = arith.constant 0 : i32
    %c0_i32_0 = arith.constant 0 : i32
    %c0_i32_1 = arith.constant 0 : i32
    return %c0_i32, %c0_i32_0 : i32, i32
  }
  func.func @transform_3(%arg0: i32, %arg1: i32) -> (i32, i32) {
    %c2_i32 = arith.constant 2 : i32
    %0 = arith.muli %arg0, %c2_i32 : i32
    %1 = arith.addi %0, %arg1 : i32
    %c0_i32 = arith.constant 0 : i32
    %c0_i32_0 = arith.constant 0 : i32
    return %c0_i32, %1 : i32, i32
  }
  func.func @transform_4(%arg0: i32, %arg1: i32) -> (i32, i32) {
    %c2_i32 = arith.constant 2 : i32
    %0 = arith.muli %arg0, %c2_i32 : i32
    %1 = arith.addi %0, %arg1 : i32
    %c0_i32 = arith.constant 0 : i32
    %c0_i32_0 = arith.constant 0 : i32
    return %c0_i32, %1 : i32, i32
  }
  func.func @transform_5(%arg0: i32, %arg1: i32) -> (i32, i32) {
    %c2_i32 = arith.constant 2 : i32
    %0 = arith.muli %arg0, %c2_i32 : i32
    %1 = arith.addi %0, %arg1 : i32
    %c0_i32 = arith.constant 0 : i32
    %c0_i32_0 = arith.constant 0 : i32
    return %1, %c0_i32 : i32, i32
  }
  func.func @transform_6(%arg0: i32, %arg1: i32) -> (i32, i32) {
    %c0_i32 = arith.constant 0 : i32
    %c0_i32_0 = arith.constant 0 : i32
    return %arg0, %c0_i32 : i32, i32
  }
}

</mosaic_0001>

<bundles_post_ra>
// kernel: inception_aux_forward.1
= control target key start
LH: loop header
LB: loop body
LE: loop exit
PB: predicated region body
PF: predicated region fallthrough
CT: control target
= control target key end

     0   :  { %s9675_s0 = inlined_call_operand.vmem [shape: bf16[128,32], index: 0, kind: input, shape index: {}]   ;;  %s9676_s1 = inlined_call_operand.hbm [shape: bf16[32,128], index: 1, kind: input, shape index: {}]   ;;  %s9677_s2 = inlined_call_operand.hbm [shape: f32[1,128], index: 2, kind: input, shape index: {}]   ;;  %s9678_s3 = inlined_call_operand.hbm [shape: bf16[2048,1024], index: 3, kind: input, shape index: {}]   ;;  %s9679_s4 = inlined_call_operand.hbm [shape: f32[1,1024], index: 4, kind: input, shape index: {}]   ;;  %s9680_s5 = inlined_call_operand.hbm [shape: bf16[1024,128], index: 5, kind: input, shape index: {}]   ;;  %s9681_s6 = inlined_call_operand.vmem [shape: f32[8,128], index: 6, kind: output, shape index: {}]  }
   0x1   :  { %9687 = sst [smem:[#allocation15_spill]] %s9676_s1 }
   0x2   :  { %9688 = sst [smem:[#allocation16_spill]] %s9678_s3 }
   0x3   :  { %9689 = sst [smem:[#allocation17_spill]] %s9681_s6 }
   0x4   :  { %11 = vsyncpa [#allocation4], 0 }
   0x5   :  { %12 = vsyncpa [#allocation6], 0  ;;  %s8255_s21 = smov 0   ;;  %s8257_s22 = smov 0  }
   0x6   :  { %s8259_s23 = smov 0   ;;  %s8261_s24 = smov 0  }
   0x7   :  { %s8263_s25 = smov 0   ;;  %s8265_s26 = smov 0  }
   0x8 LB: > { %s9682_s27 = sadd.s32 4294967295, %s8210_s26   ;;  %s104_s28 = sadd.s32 1, %s8198_s23  ;;  %s8210_s26 = sphi %s8265_s26, %s18_s26   ;;  %s8206_s25 = sphi %s8263_s25, %s9711_s25   ;;  %s8202_s24 = sphi %s8261_s24, %s9710_s24   ;;  %s8198_s23 = sphi %s8259_s23, %s9709_s23   ;;  %s8194_s22 = sphi %s8257_s22, %s9708_s22   ;;  %s8190_s21 = sphi %s8255_s21, %s9707_s21  }
   0x9   : > { %p111_p0 = scmp.ne.s32.totalorder %s8198_s23, %s8194_s22  ;;  %p112_p1 = scmp.eq.s32.totalorder %s8210_s26, 0 }
   0xa   : > { %p117_p2 = scmp.ne.s32.totalorder %s8194_s22, %s8190_s21  ;;  %p8291_p3 = scmp.eq.s32.totalorder %s9682_s27, 0 }
   0xb   : > { %p8295_p4 = por %p112_p1, %p111_p0  ;;  %p5052_p5 = scmp.ge.s32.totalorder %s8210_s26, 1 }
   0xc   : > { %p8302_p6 = por %p8291_p3, %p117_p2  ;;  %p214_p7 = scmp.lt.s32.totalorder %s8210_s26, 3 }
   0xd   : > { %s9693_s1 = sld [smem:[#allocation15_spill]]  ;;  %s8212_s12 = smov [#allocation3]  }
   0xe   : > { %p8310_p8 = pnand %p5052_p5, %p214_p7  ;;  %s230_s13 = sshll.u32 %s8212_s12, 4  ;;  %s231_s13 = int_to_ptr.vmem [resolvable:$true] %s230_s13 }
   0xf   : > { %p7940_p11 = scmp.lt.s32.totalorder %s8210_s26, 2  ;;  %s9683_s15 = smov 64  }
  0x10   : > { %p7921_p9 = pneg %p8310_p8  ;;  %s9684_s16 = smov 4  }
  0x11   : > { %p8330_p12 = pnand %p7940_p11, %p8295_p4  ;;  %s27_s18 = sadd.s32 1, %s8206_s25 }
  0x12   : > { %p8318_p10 = pnand %p7921_p9, %p8291_p3  ;;  %p28_p13 = scmp.ge.s32.totalorder %s27_s18, 2 }
  0x13   : > { %s228_s10 = sshll.u32 %s9693_s1, 4  ;;  %s256_s19 = sand.u32 1, %s8210_s26   ;;  %s229_s10 = int_to_ptr.hbm [resolvable:$true] %s228_s10 }
  0x14   : > { %7924 = dma.hbm_to_vmem [thread:$0]  (!%p8318_p10), %s229_s10, 256, %s231_s13, [#allocation4], %s9683_s15, %s9683_s15, %s9684_s16  }
  0x15   : > { %s9713_s18 = smov (%p28_p13, %s27_s18), 0  ;;  %s8339_s20 = sand.u32 1, %s8198_s23  }
  0x16   : > { %9697 = sst [smem:[#allocation13_spill]] %s9713_s18  ;;  %s7298_s21 = sshll.u32 %s8206_s25, 4 }
  0x17   : > { %s101_s8 = ssub.s32 %s8206_s25, %s9713_s18  ;;  %s5056_s9 = sshll.u32 %s8339_s20, 12 }
  0x18   : > { %p102_p0 = scmp.eq.s32.totalorder %s101_s8, 0  ;;  %s9698_s3 = sld [smem:[#allocation16_spill]] }
  0x19   : > { %s260_s13 = scalar_lea.vmem [#allocation7], %s5056_s9  ;;  %s8353_s1 = scalar_lea.sflag [#allocation4], %s256_s19 }
  0x1a   : > { %s270_s27 = sshll.u32 %s260_s13, 4  ;;  %s8215_s18 = smov 512   ;;  %s271_s27 = int_to_ptr.vmem [resolvable:$true] %s270_s27 }
  0x1b   : > { %s8351_s15 = scalar_select %p102_p0, %s8198_s23, %s104_s28  }
  0x1c   : > { %s8216_s6 = smov 256   ;;  %s8217_s8 = smov 16  }
  0x1d   : > { %9699 = sst [smem:[#allocation14_spill]] %s8351_s15  ;;  %s5060_s9 = sshll.u32 %s8206_s25, 2 }
  0x1e   : > { %s267_s12 = scalar_lea.hbm %s9698_s3, %s7298_s21  ;;  %s5059_s21 = sshll.u32 %s8339_s20, 2 }
  0x1f   : > { %s268_s16 = sshll.u32 %s267_s12, 4  ;;  %s290_s10 = scalar_lea.hbm %s9679_s4, %s5060_s9  ;;  %s269_s16 = int_to_ptr.hbm [resolvable:$true] %s268_s16 }
  0x20   : > { %7931 = dma.hbm_to_vmem [thread:$0]  (!%p8330_p12), %s269_s16, 65536, %s271_s27, %s8353_s1, %s8215_s18, %s8216_s6, %s8217_s8  }
  0x21   : > { %s292_s12 = sshll.u32 %s290_s10, 4  ;;  %s284_s13 = scalar_lea.vmem [#allocation8], %s5059_s21  ;;  %s293_s12 = int_to_ptr.hbm [resolvable:$true] %s292_s12 }
  0x22   : > { %s294_s19 = sshll.u32 %s284_s13, 4  ;;  %s243_s6 = sshll.u32 %s9677_s2, 4  ;;  %s295_s19 = int_to_ptr.vmem [resolvable:$true] %s294_s19  ;;  %s244_s6 = int_to_ptr.hbm [resolvable:$true] %s243_s6 }
  0x23   : > { %7934 = dma.hbm_to_vmem [thread:$0]  (!%p8330_p12), %s293_s12, 64, %s295_s19, %s8353_s1  }
  0x24   : > { %s8218_s27 = smov [#allocation5]   ;;  %s5061_s18 = sshll.u32 %s8339_s20, 8 }
  0x25   : > { %s245_s16 = sshll.u32 %s8218_s27, 4  ;;  %s7299_s8 = sshll.u32 %s8206_s25, 8  ;;  %s246_s16 = int_to_ptr.vmem [resolvable:$true] %s245_s16 }
  0x26   : > { %7927 = dma.hbm_to_vmem [thread:$0]  (!%p8318_p10), %s244_s6, 16, %s246_s16, [#allocation6]  }
  0x27   : > { %s312_s28 = scalar_lea.hbm %s9680_s5, %s7299_s8  ;;  %s305_s30 = scalar_lea.vmem [#allocation9], %s5061_s18 }
  0x28   : > { %s315_s10 = sshll.u32 %s305_s30, 4  ;;  %s313_s13 = sshll.u32 %s312_s28, 4  ;;  %s316_s10 = int_to_ptr.vmem [resolvable:$true] %s315_s10  ;;  %s314_s13 = int_to_ptr.hbm [resolvable:$true] %s313_s13 }
  0x29   : > { %s9700_s3 = smov 4   ;;  %s9701_s15 = smov 64  }
  0x2a   : > { %7937 = dma.hbm_to_vmem [thread:$0]  (!%p8330_p12), %s314_s13, 4096, %s316_s10, %s8353_s1, %s9701_s15, %s9701_s15, %s9700_s3  }
  0x2b   : > { %327 = sbr.rel (%p8310_p8) target bundleno = 1035 (0x40b), region = 44 }
  0x30   : > { %8177 = dma.done.wait (%p8291_p3), [#allocation4], 256  }
  0x31   : > { %8179 = vsyncadd (%p8291_p3), [#allocation4], 4294967040 }
  0x32   : > { %8181 = dma.done.wait (%p8291_p3), [#allocation6], 16  }
  0x33   : > { %8183 = vsyncadd (%p8291_p3), [#allocation6], 4294967280  ;;  %s9702_s14 = sadd.s32 4294967295, %s8210_s26   ;;  %s341_s17 = sand.u32 1, %s8194_s22  }
  0x34   : > { %s339_s1 = sand.u32 1, %s9702_s14   ;;  %s5067_s11 = sshll.u32 %s341_s17, 12 }
  0x35   : > { %s340_s20 = scalar_lea.sflag [#allocation4], %s339_s1  ;;  %s8395_s12 = scalar_lea.vmem [#allocation7], %s5067_s11 }
  0x36   : > { %8185 = dma.done.wait (%p8302_p6), %s340_s20, 69696  }
  0x37   : > { %8187 = vsyncadd (%p8302_p6), %s340_s20, 4294897600  ;;  %s5068_s19 = sshll.u32 %s341_s17, 2  ;;  %s5069_s6 = sshll.u32 %s341_s17, 8 }
  0x38   : > { %s8401_s27 = scalar_lea.vmem [#allocation8], %s5068_s19  ;;  %s8403_s29 = scalar_lea.vmem [#allocation9], %s5069_s6 }
  0x39   : > { %p5070_p1 = scmp.ne.s32.totalorder %s8202_s24, 0 }
  0x3a   : > { %s9703_s19 = sld [smem:[#allocation17_spill]] (!%p5070_p1) }
  0x3b   : > { %419 = sbr.rel (%p5070_p1) target bundleno = 237 (0xed), region = 68 }
  0x40   : > { %v7309_v0 = vld [vmem:[#allocation3 + $0x8] sm:$0xff]  ;;  %v7308_v1 = vld [vmem:[#allocation3] sm:$0xff]  ;;  %v7302_v3 = vld [vmem:[%s9675_s0 + $0x10] sm:$0xff]  ;;  %vm496_vm0 = vcmask 261120   ;;  %v8219_v17 = vmov 0.0  }
  0x41   : > { %527 = vmatpush.bf16.msra.mxu0 %v7309_v0  ;;  %7901 = vmatpush.bf16.msra.mxu1 %v7309_v0  ;;  %v7300_v2 = vld [vmem:[%s9675_s0] sm:$0xff]  ;;  %v7306_v5 = vld [vmem:[%s9675_s0 + $0x30] sm:$0xff]  ;;  %v7301_v6 = vld [vmem:[%s9675_s0 + $0x8] sm:$0xff]  ;;  %618 = vst [vmem:[%s9703_s19] sm:$0xff] %v8219_v17 }
  0x42   : > { %7902 = vmatpush.bf16.msra.mxu2 %v7309_v0  ;;  %7903 = vmatpush.bf16.msra.mxu3 %v7309_v0  ;;  %v7304_v4 = vld [vmem:[%s9675_s0 + $0x20] sm:$0xff]  ;;  %v7303_v7 = vld [vmem:[%s9675_s0 + $0x18] sm:$0xff]  ;;  %v7305_v8 = vld [vmem:[%s9675_s0 + $0x28] sm:$0xff] }
  0x43   : > { %v7307_v9 = vld [vmem:[%s9675_s0 + $0x38] sm:$0xff]  ;;  %v7999_v12 = vld [vmem:[#allocation5] ss:$0 sm:$0xff] }
  0x45   : > { %528 = vmatpush.bf16.msra.mxu0 %v7308_v1  ;;  %7904 = vmatpush.bf16.msra.mxu1 %v7308_v1 }
  0x46   : > { %7905 = vmatpush.bf16.msra.mxu2 %v7308_v1  ;;  %7906 = vmatpush.bf16.msra.mxu3 %v7308_v1 }
  0x48   : > { %5111 = vmatmul.msk.bf16.vlgmr.msra.gmra.mxu0 %vm496_vm0, %v7300_v2  ;;  %5113 = vmatmul.msk.bf16.vlgmr.msra.gmra.mxu1 %vm496_vm0, %v7302_v3 }
  0x49   : > { %5115 = vmatmul.msk.bf16.vlgmr.msra.gmra.mxu2 %vm496_vm0, %v7304_v4  ;;  %5117 = vmatmul.msk.bf16.vlgmr.msra.gmra.mxu3 %vm496_vm0, %v7306_v5 }
  0x58   : > { %5112 = vmatmul.msk.bf16.gmra.mxu0 %vm496_vm0, %v7301_v6  ;;  %5114 = vmatmul.msk.bf16.gmra.mxu1 %vm496_vm0, %v7303_v7 }
  0x59   : > { %5116 = vmatmul.msk.bf16.gmra.mxu2 %vm496_vm0, %v7305_v8  ;;  %5118 = vmatmul.msk.bf16.gmra.mxu3 %vm496_vm0, %v7307_v9 }
  0xc5   : > { %v530_v10 = vpop.f32.mrf.mxu0  ;;  %v540_v11 = vpop.f32.mrf.mxu1 }
  0xc6   : > { %v531_v13 = vadd.f32 %v7999_v12, %v530_v10  ;;  %v541_v14 = vadd.f32 %v7999_v12, %v540_v11 }
  0xc8   : > { %v570_v22 = vmax.f32 %v531_v13, 0.0  ;;  %v574_v23 = vmax.f32 %v541_v14, 0.0 }
  0xcc   : > { %v550_v15 = vpop.f32.mrf.mxu2  ;;  %v560_v16 = vpop.f32.mrf.mxu3 }
  0xcd   : > { %v532_v18 = vpop.f32.mrf.mxu0  ;;  %v542_v19 = vpop.f32.mrf.mxu1  ;;  %v551_v28 = vadd.f32 %v7999_v12, %v550_v15  ;;  %v561_v29 = vadd.f32 %v7999_v12, %v560_v16 }
  0xce   : > { %v533_v20 = vadd.f32 %v7999_v12, %v532_v18  ;;  %v543_v21 = vadd.f32 %v7999_v12, %v542_v19 }
  0xcf   : > { %v578_v36 = vmax.f32 %v551_v28, 0.0  ;;  %v582_v37 = vmax.f32 %v561_v29, 0.0 }
  0xd0   : > { %v571_v24 = vmax.f32 %v533_v20, 0.0  ;;  %v575_v25 = vmax.f32 %v543_v21, 0.0 }
  0xd2   : > { %v7857_v26 = vpack.c.bf16 %v571_v24, %v570_v22  ;;  %v7867_v27 = vpack.c.bf16 %v575_v25, %v574_v23 }
  0xd4   : > { %7858 = vst [vmem:[#allocation2 + $0x30] sm:$0xff] %v7857_v26   ;;  %v552_v30 = vpop.f32.mrf.mxu2  ;;  %v562_v31 = vpop.f32.mrf.mxu3 }
  0xd5   : > { %7895 = vst [vmem:[#allocation2 + $0x18] sm:$0xff] %v7867_v27   ;;  %v553_v32 = vadd.f32 %v7999_v12, %v552_v30  ;;  %v563_v33 = vadd.f32 %v7999_v12, %v562_v31  ;;  %v535_v34 = vpop.f32.mrf.mxu0  ;;  %v545_v35 = vpop.f32.mrf.mxu1 }
  0xd6   : > { %v536_v42 = vadd.f32 %v7999_v12, %v535_v34  ;;  %v546_v43 = vadd.f32 %v7999_v12, %v545_v35 }
  0xd7   : > { %v579_v38 = vmax.f32 %v553_v32, 0.0  ;;  %v583_v39 = vmax.f32 %v563_v33, 0.0 }
  0xd8   : > { %v572_v50 = vmax.f32 %v536_v42, 0.0  ;;  %v576_v51 = vmax.f32 %v546_v43, 0.0 }
  0xd9   : > { %v7877_v40 = vpack.c.bf16 %v579_v38, %v578_v36  ;;  %v7887_v41 = vpack.c.bf16 %v583_v39, %v582_v37 }
  0xdb   : > { %7897 = vst [vmem:[#allocation2 + $0x8] sm:$0xff] %v7877_v40  }
  0xdc   : > { %7899 = vst [vmem:[#allocation2 + $0x28] sm:$0xff] %v7887_v41   ;;  %v555_v44 = vpop.f32.mrf.mxu2  ;;  %v565_v45 = vpop.f32.mrf.mxu3 }
  0xdd   : > { %v537_v46 = vpop.f32.mrf.mxu0  ;;  %v547_v47 = vpop.f32.mrf.mxu1  ;;  %v556_v56 = vadd.f32 %v7999_v12, %v555_v44  ;;  %v566_v57 = vadd.f32 %v7999_v12, %v565_v45 }
  0xde   : > { %v538_v48 = vadd.f32 %v7999_v12, %v537_v46  ;;  %v548_v49 = vadd.f32 %v7999_v12, %v547_v47 }
  0xdf   : > { %v580_v62 = vmax.f32 %v556_v56, 0.0  ;;  %v584_v63 = vmax.f32 %v566_v57, 0.0 }
  0xe0   : > { %v573_v52 = vmax.f32 %v538_v48, 0.0  ;;  %v577_v53 = vmax.f32 %v548_v49, 0.0 }
  0xe2   : > { %v7862_v54 = vpack.c.bf16 %v573_v52, %v572_v50  ;;  %v7872_v55 = vpack.c.bf16 %v577_v53, %v576_v51 }
  0xe4   : > { %7894 = vst [vmem:[#allocation2] sm:$0xff] %v7862_v54   ;;  %v557_v58 = vpop.f32.mrf.mxu2  ;;  %v567_v59 = vpop.f32.mrf.mxu3 }
  0xe5   : > { %7896 = vst [vmem:[#allocation2 + $0x10] sm:$0xff] %v7872_v55   ;;  %v558_v60 = vadd.f32 %v7999_v12, %v557_v58  ;;  %v568_v61 = vadd.f32 %v7999_v12, %v567_v59 }
  0xe7   : > { %v581_v0 = vmax.f32 %v558_v60, 0.0  ;;  %v585_v1 = vmax.f32 %v568_v61, 0.0 }
  0xe9   : > { %v7882_v2 = vpack.c.bf16 %v581_v0, %v580_v62  ;;  %v7892_v3 = vpack.c.bf16 %v585_v1, %v584_v63 }
  0xeb   : > { %7898 = vst [vmem:[#allocation2 + $0x20] sm:$0xff] %v7882_v2  }
  0xec   : > { %7900 = vst [vmem:[#allocation2 + $0x38] sm:$0xff] %v7892_v3  }
  0xed PF: > { %v5233_v4 = vld [vmem:[%s8395_s12 + $0xe0] sm:$0xf]  ;;  %v7340_v5 = vld [vmem:[%s8395_s12 + $0xec] sm:$0xf0] }
  0xee   : > { %v5361_v6 = vld [vmem:[%s8395_s12 + $0x1e0] sm:$0xf]  ;;  %v5234_v7 = vor.u32 %v7340_v5, %v5233_v4  ;;  %v7372_v8 = vld [vmem:[%s8395_s12 + $0x1ec] sm:$0xf0] }
  0xef   : > { %v5489_v9 = vld [vmem:[%s8395_s12 + $0x2e0] sm:$0xf]  ;;  %v7404_v10 = vld [vmem:[%s8395_s12 + $0x2ec] sm:$0xf0]  ;;  %v5362_v11 = vor.u32 %v7372_v8, %v5361_v6 }
  0xf0   : > { %v5490_v12 = vor.u32 %v7404_v10, %v5489_v9  ;;  %v5617_v13 = vld [vmem:[%s8395_s12 + $0x3e0] sm:$0xf]  ;;  %v7436_v14 = vld [vmem:[%s8395_s12 + $0x3ec] sm:$0xf0]  ;;  %3765 = vmatpush.bf16.msra.mxu0 %v5234_v7 }
  0xf1   : > { %v5217_v15 = vld [vmem:[%s8395_s12 + $0xc0] sm:$0xf]  ;;  %v5618_v16 = vor.u32 %v7436_v14, %v5617_v13  ;;  %v7336_v17 = vld [vmem:[%s8395_s12 + $0xcc] sm:$0xf0]  ;;  %3778 = vmatpush.bf16.msra.mxu1 %v5362_v11 }
  0xf2   : > { %v5345_v18 = vld [vmem:[%s8395_s12 + $0x1c0] sm:$0xf]  ;;  %v7368_v19 = vld [vmem:[%s8395_s12 + $0x1cc] sm:$0xf0]  ;;  %3791 = vmatpush.bf16.msra.mxu2 %v5490_v12  ;;  %v5218_v20 = vor.u32 %v7336_v17, %v5217_v15 }
  0xf3   : > { %v5346_v21 = vor.u32 %v7368_v19, %v5345_v18  ;;  %v5473_v22 = vld [vmem:[%s8395_s12 + $0x2c0] sm:$0xf]  ;;  %v7400_v23 = vld [vmem:[%s8395_s12 + $0x2cc] sm:$0xf0]  ;;  %3804 = vmatpush.bf16.msra.mxu3 %v5618_v16 }
  0xf4   : > { %v5601_v24 = vld [vmem:[%s8395_s12 + $0x3c0] sm:$0xf]  ;;  %v5474_v25 = vor.u32 %v7400_v23, %v5473_v22  ;;  %v7432_v26 = vld [vmem:[%s8395_s12 + $0x3cc] sm:$0xf0]  ;;  %3766 = vmatpush.bf16.msra.mxu0 %v5218_v20 }
  0xf5   : > { %v5201_v27 = vld [vmem:[%s8395_s12 + $0xa0] sm:$0xf]  ;;  %v7332_v28 = vld [vmem:[%s8395_s12 + $0xac] sm:$0xf0]  ;;  %v5602_v29 = vor.u32 %v7432_v26, %v5601_v24  ;;  %3779 = vmatpush.bf16.msra.mxu1 %v5346_v21 }
  0xf6   : > { %v5329_v30 = vld [vmem:[%s8395_s12 + $0x1a0] sm:$0xf]  ;;  %v7364_v31 = vld [vmem:[%s8395_s12 + $0x1ac] sm:$0xf0]  ;;  %v5202_v33 = vor.u32 %v7332_v28, %v5201_v27  ;;  %3792 = vmatpush.bf16.msra.mxu2 %v5474_v25 }
  0xf7   : > { %v5457_v32 = vld [vmem:[%s8395_s12 + $0x2a0] sm:$0xf]  ;;  %v7396_v34 = vld [vmem:[%s8395_s12 + $0x2ac] sm:$0xf0]  ;;  %v5330_v37 = vor.u32 %v7364_v31, %v5329_v30  ;;  %3805 = vmatpush.bf16.msra.mxu3 %v5602_v29 }
  0xf8   : > { %v5585_v35 = vld [vmem:[%s8395_s12 + $0x3a0] sm:$0xf]  ;;  %v7428_v36 = vld [vmem:[%s8395_s12 + $0x3ac] sm:$0xf0]  ;;  %v5458_v38 = vor.u32 %v7396_v34, %v5457_v32  ;;  %3767 = vmatpush.bf16.msra.mxu0 %v5202_v33 }
  0xf9   : > { %v5185_v39 = vld [vmem:[%s8395_s12 + $0x80] sm:$0xf]  ;;  %v7328_v40 = vld [vmem:[%s8395_s12 + $0x8c] sm:$0xf0]  ;;  %v5586_v42 = vor.u32 %v7428_v36, %v5585_v35  ;;  %3780 = vmatpush.bf16.msra.mxu1 %v5330_v37 }
  0xfa   : > { %v5313_v41 = vld [vmem:[%s8395_s12 + $0x180] sm:$0xf]  ;;  %v7360_v43 = vld [vmem:[%s8395_s12 + $0x18c] sm:$0xf0]  ;;  %v5186_v48 = vor.u32 %v7328_v40, %v5185_v39  ;;  %3793 = vmatpush.bf16.msra.mxu2 %v5458_v38 }
  0xfb   : > { %v5441_v44 = vld [vmem:[%s8395_s12 + $0x280] sm:$0xf]  ;;  %v7392_v45 = vld [vmem:[%s8395_s12 + $0x28c] sm:$0xf0]  ;;  %v5314_v49 = vor.u32 %v7360_v43, %v5313_v41  ;;  %3806 = vmatpush.bf16.msra.mxu3 %v5586_v42 }
  0xfc   : > { %v5569_v46 = vld [vmem:[%s8395_s12 + $0x380] sm:$0xf]  ;;  %v7424_v47 = vld [vmem:[%s8395_s12 + $0x38c] sm:$0xf0]  ;;  %v5442_v50 = vor.u32 %v7392_v45, %v5441_v44  ;;  %3768 = vmatpush.bf16.msra.mxu0 %v5186_v48 }
  0xfd   : > { %v5169_v51 = vld [vmem:[%s8395_s12 + $0x60] sm:$0xf]  ;;  %v7324_v52 = vld [vmem:[%s8395_s12 + $0x6c] sm:$0xf0]  ;;  %v5570_v54 = vor.u32 %v7424_v47, %v5569_v46  ;;  %3781 = vmatpush.bf16.msra.mxu1 %v5314_v49 }
  0xfe   : > { %v5297_v53 = vld [vmem:[%s8395_s12 + $0x160] sm:$0xf]  ;;  %v7356_v55 = vld [vmem:[%s8395_s12 + $0x16c] sm:$0xf0]  ;;  %v5170_v60 = vor.u32 %v7324_v52, %v5169_v51  ;;  %3794 = vmatpush.bf16.msra.mxu2 %v5442_v50 }
  0xff   : > { %v5425_v56 = vld [vmem:[%s8395_s12 + $0x260] sm:$0xf]  ;;  %v7388_v57 = vld [vmem:[%s8395_s12 + $0x26c] sm:$0xf0]  ;;  %v5298_v61 = vor.u32 %v7356_v55, %v5297_v53  ;;  %3807 = vmatpush.bf16.msra.mxu3 %v5570_v54 }
 0x100   : > { %v5553_v58 = vld [vmem:[%s8395_s12 + $0x360] sm:$0xf]  ;;  %v7420_v59 = vld [vmem:[%s8395_s12 + $0x36c] sm:$0xf0]  ;;  %v5426_v62 = vor.u32 %v7388_v57, %v5425_v56  ;;  %3769 = vmatpush.bf16.msra.mxu0 %v5170_v60 }
 0x101   : > { %v5153_v63 = vld [vmem:[%s8395_s12 + $0x40] sm:$0xf]  ;;  %v7320_v0 = vld [vmem:[%s8395_s12 + $0x4c] sm:$0xf0]  ;;  %v5554_v2 = vor.u32 %v7420_v59, %v5553_v58  ;;  %3782 = vmatpush.bf16.msra.mxu1 %v5298_v61 }
 0x102   : > { %v5281_v1 = vld [vmem:[%s8395_s12 + $0x140] sm:$0xf]  ;;  %v7352_v3 = vld [vmem:[%s8395_s12 + $0x14c] sm:$0xf0]  ;;  %v5154_v8 = vor.u32 %v7320_v0, %v5153_v63  ;;  %3795 = vmatpush.bf16.msra.mxu2 %v5426_v62 }
 0x103   : > { %v5409_v4 = vld [vmem:[%s8395_s12 + $0x240] sm:$0xf]  ;;  %v7384_v5 = vld [vmem:[%s8395_s12 + $0x24c] sm:$0xf0]  ;;  %v5282_v9 = vor.u32 %v7352_v3, %v5281_v1  ;;  %3808 = vmatpush.bf16.msra.mxu3 %v5554_v2 }
 0x104   : > { %v5537_v6 = vld [vmem:[%s8395_s12 + $0x340] sm:$0xf]  ;;  %v7416_v7 = vld [vmem:[%s8395_s12 + $0x34c] sm:$0xf0]  ;;  %v5410_v10 = vor.u32 %v7384_v5, %v5409_v4  ;;  %3770 = vmatpush.bf16.msra.mxu0 %v5154_v8 }
 0x105   : > { %v5137_v11 = vld [vmem:[%s8395_s12 + $0x20] sm:$0xf]  ;;  %v7316_v12 = vld [vmem:[%s8395_s12 + $0x2c] sm:$0xf0]  ;;  %v5538_v14 = vor.u32 %v7416_v7, %v5537_v6  ;;  %3783 = vmatpush.bf16.msra.mxu1 %v5282_v9 }
 0x106   : > { %v5265_v13 = vld [vmem:[%s8395_s12 + $0x120] sm:$0xf]  ;;  %v7348_v15 = vld [vmem:[%s8395_s12 + $0x12c] sm:$0xf0]  ;;  %v5138_v20 = vor.u32 %v7316_v12, %v5137_v11  ;;  %3796 = vmatpush.bf16.msra.mxu2 %v5410_v10 }
 0x107   : > { %v5393_v16 = vld [vmem:[%s8395_s12 + $0x220] sm:$0xf]  ;;  %v7380_v17 = vld [vmem:[%s8395_s12 + $0x22c] sm:$0xf0]  ;;  %v5266_v23 = vor.u32 %v7348_v15, %v5265_v13  ;;  %3809 = vmatpush.bf16.msra.mxu3 %v5538_v14 }
 0x108   : > { %v5521_v18 = vld [vmem:[%s8395_s12 + $0x320] sm:$0xf]  ;;  %v7412_v19 = vld [vmem:[%s8395_s12 + $0x32c] sm:$0xf0]  ;;  %v5394_v24 = vor.u32 %v7380_v17, %v5393_v16  ;;  %3771 = vmatpush.bf16.msra.mxu0 %v5138_v20 }
 0x109   : > { %v5121_v21 = vld [vmem:[%s8395_s12] sm:$0xf]  ;;  %v7312_v22 = vld [vmem:[%s8395_s12 + $0xc] sm:$0xf0]  ;;  %v5522_v28 = vor.u32 %v7412_v19, %v5521_v18  ;;  %3784 = vmatpush.bf16.msra.mxu1 %v5266_v23 }
 0x10a   : > { %v5249_v25 = vld [vmem:[%s8395_s12 + $0x100] sm:$0xf]  ;;  %v7344_v26 = vld [vmem:[%s8395_s12 + $0x10c] sm:$0xf0]  ;;  %v5122_v35 = vor.u32 %v7312_v22, %v5121_v21  ;;  %3797 = vmatpush.bf16.msra.mxu2 %v5394_v24 }
 0x10b   : > { %v5377_v27 = vld [vmem:[%s8395_s12 + $0x200] sm:$0xf]  ;;  %v7376_v29 = vld [vmem:[%s8395_s12 + $0x20c] sm:$0xf0]  ;;  %v5250_v39 = vor.u32 %v7344_v26, %v5249_v25  ;;  %3810 = vmatpush.bf16.msra.mxu3 %v5522_v28 }
 0x10c   : > { %v5505_v30 = vld [vmem:[%s8395_s12 + $0x300] sm:$0xf]  ;;  %v7408_v31 = vld [vmem:[%s8395_s12 + $0x30c] sm:$0xf0]  ;;  %v5378_v40 = vor.u32 %v7376_v29, %v5377_v27  ;;  %3772 = vmatpush.bf16.msra.mxu0 %v5122_v35 }
 0x10d   : > { %v5745_v32 = vld [vmem:[%s8395_s12 + $0x4e0] sm:$0xf]  ;;  %v7468_v33 = vld [vmem:[%s8395_s12 + $0x4ec] sm:$0xf0]  ;;  %v5506_v43 = vor.u32 %v7408_v31, %v5505_v30  ;;  %3785 = vmatpush.bf16.msra.mxu1 %v5250_v39 }
 0x10e   : > { %v5873_v34 = vld [vmem:[%s8395_s12 + $0x5e0] sm:$0xf]  ;;  %v7500_v36 = vld [vmem:[%s8395_s12 + $0x5ec] sm:$0xf0]  ;;  %v5746_v44 = vor.u32 %v7468_v33, %v5745_v32  ;;  %3798 = vmatpush.bf16.msra.mxu2 %v5378_v40 }
 0x10f   : > { %v6001_v37 = vld [vmem:[%s8395_s12 + $0x6e0] sm:$0xf]  ;;  %v7532_v38 = vld [vmem:[%s8395_s12 + $0x6ec] sm:$0xf0]  ;;  %v5874_v45 = vor.u32 %v7500_v36, %v5873_v34  ;;  %3811 = vmatpush.bf16.msra.mxu3 %v5506_v43 }
 0x110   : > { %v6129_v41 = vld [vmem:[%s8395_s12 + $0x7e0] sm:$0xf]  ;;  %v7564_v42 = vld [vmem:[%s8395_s12 + $0x7ec] sm:$0xf0]  ;;  %v6002_v46 = vor.u32 %v7532_v38, %v6001_v37  ;;  %3817 = vmatpush.bf16.msrb.mxu0 %v5746_v44 }
 0x111   : > { %v5729_v47 = vld [vmem:[%s8395_s12 + $0x4c0] sm:$0xf]  ;;  %v7464_v48 = vld [vmem:[%s8395_s12 + $0x4cc] sm:$0xf0]  ;;  %v6130_v50 = vor.u32 %v7564_v42, %v6129_v41  ;;  %3830 = vmatpush.bf16.msrb.mxu1 %v5874_v45 }
 0x112   : > { %v5857_v49 = vld [vmem:[%s8395_s12 + $0x5c0] sm:$0xf]  ;;  %v7496_v51 = vld [vmem:[%s8395_s12 + $0x5cc] sm:$0xf0]  ;;  %v5730_v56 = vor.u32 %v7464_v48, %v5729_v47  ;;  %3843 = vmatpush.bf16.msrb.mxu2 %v6002_v46 }
 0x113   : > { %v5985_v52 = vld [vmem:[%s8395_s12 + $0x6c0] sm:$0xf]  ;;  %v7528_v53 = vld [vmem:[%s8395_s12 + $0x6cc] sm:$0xf0]  ;;  %v5858_v58 = vor.u32 %v7496_v51, %v5857_v49  ;;  %3856 = vmatpush.bf16.msrb.mxu3 %v6130_v50 }
 0x114   : > { %v6113_v54 = vld [vmem:[%s8395_s12 + $0x7c0] sm:$0xf]  ;;  %v7560_v55 = vld [vmem:[%s8395_s12 + $0x7cc] sm:$0xf0]  ;;  %v5986_v59 = vor.u32 %v7528_v53, %v5985_v52  ;;  %3818 = vmatpush.bf16.msrb.mxu0 %v5730_v56 }
 0x115   : > { %v5713_v57 = vld [vmem:[%s8395_s12 + $0x4a0] sm:$0xf]  ;;  %v7460_v60 = vld [vmem:[%s8395_s12 + $0x4ac] sm:$0xf0]  ;;  %v6114_v63 = vor.u32 %v7560_v55, %v6113_v54  ;;  %3831 = vmatpush.bf16.msrb.mxu1 %v5858_v58 }
 0x116   : > { %v5841_v61 = vld [vmem:[%s8395_s12 + $0x5a0] sm:$0xf]  ;;  %v7492_v62 = vld [vmem:[%s8395_s12 + $0x5ac] sm:$0xf0]  ;;  %v5714_v4 = vor.u32 %v7460_v60, %v5713_v57  ;;  %3844 = vmatpush.bf16.msrb.mxu2 %v5986_v59 }
 0x117   : > { %v5969_v0 = vld [vmem:[%s8395_s12 + $0x6a0] sm:$0xf]  ;;  %v7524_v1 = vld [vmem:[%s8395_s12 + $0x6ac] sm:$0xf0]  ;;  %v5842_v5 = vor.u32 %v7492_v62, %v5841_v61  ;;  %3857 = vmatpush.bf16.msrb.mxu3 %v6114_v63 }
 0x118   : > { %v6097_v2 = vld [vmem:[%s8395_s12 + $0x7a0] sm:$0xf]  ;;  %v7556_v3 = vld [vmem:[%s8395_s12 + $0x7ac] sm:$0xf0]  ;;  %v5970_v8 = vor.u32 %v7524_v1, %v5969_v0  ;;  %3819 = vmatpush.bf16.msrb.mxu0 %v5714_v4 }
 0x119   : > { %v620_v6 = vld [vmem:[#allocation2] sm:$0xff]  ;;  %v619_v7 = vld [vmem:[#allocation2 + $0x30] sm:$0xff]  ;;  %v6098_v15 = vor.u32 %v7556_v3, %v6097_v2  ;;  %3832 = vmatpush.bf16.msrb.mxu1 %v5842_v5 }
 0x11a   : > { %v5697_v9 = vld [vmem:[%s8395_s12 + $0x480] sm:$0xf]  ;;  %v7456_v10 = vld [vmem:[%s8395_s12 + $0x48c] sm:$0xf0]  ;;  %v1159_v12 = vunpack.c.l.b16 %v620_v6  ;;  %v1157_v13 = vunpack.c.l.b16 %v619_v7  ;;  %v1160_v14 = vunpack.c.h.b16 %v620_v6  ;;  %v1158_v19 = vunpack.c.h.b16 %v619_v7  ;;  %3845 = vmatpush.bf16.msrb.mxu2 %v5970_v8 }
 0x11b   : > { %v5825_v11 = vld [vmem:[%s8395_s12 + $0x580] sm:$0xf]  ;;  %v7488_v16 = vld [vmem:[%s8395_s12 + $0x58c] sm:$0xf0]  ;;  %v5698_v25 = vor.u32 %v7456_v10, %v5697_v9  ;;  %3858 = vmatpush.bf16.msrb.mxu3 %v6098_v15 }
 0x11c   : > { %v5953_v17 = vld [vmem:[%s8395_s12 + $0x680] sm:$0xf]  ;;  %v7520_v18 = vld [vmem:[%s8395_s12 + $0x68c] sm:$0xf0]  ;;  %v8537_v22 = vpack.c.b16 %v1159_v12, %v1159_v12  ;;  %v8539_v23 = vpack.c.b16 %v1157_v13, %v1157_v13  ;;  %v8541_v24 = vpack.c.b16 %v1160_v14, %v1160_v14  ;;  %v8543_v26 = vpack.c.b16 %v1158_v19, %v1158_v19 }
 0x11d   : > { %v6081_v20 = vld [vmem:[%s8395_s12 + $0x780] sm:$0xf]  ;;  %v7552_v21 = vld [vmem:[%s8395_s12 + $0x78c] sm:$0xf0]  ;;  %v5826_v27 = vor.u32 %v7488_v16, %v5825_v11  ;;  %v5954_v28 = vor.u32 %v7520_v18, %v5953_v17  ;;  %3820 = vmatpush.bf16.msrb.mxu0 %v5698_v25  ;;  %v621_v11 = vld [vmem:[#allocation2 + $0x18] sm:$0xff] }
 0x11e   : > { %v5681_v29 = vld [vmem:[%s8395_s12 + $0x460] sm:$0xf]  ;;  %v7452_v30 = vld [vmem:[%s8395_s12 + $0x46c] sm:$0xf0]  ;;  %v6082_v32 = vor.u32 %v7552_v21, %v6081_v20  ;;  %3799 = vmatmul.bf16.vlgmr.msra.gmra.mxu2 %v8537_v22  ;;  %3773 = vmatmul.bf16.vlgmr.msra.gmra.mxu0 %v8539_v23 }
 0x11f   : > { %v5809_v31 = vld [vmem:[%s8395_s12 + $0x560] sm:$0xf]  ;;  %v7484_v33 = vld [vmem:[%s8395_s12 + $0x56c] sm:$0xf0]  ;;  %3812 = vmatmul.bf16.vlgmr.msra.gmra.mxu3 %v8541_v24  ;;  %v5682_v38 = vor.u32 %v7452_v30, %v5681_v29  ;;  %3786 = vmatmul.bf16.vlgmr.msra.gmra.mxu1 %v8543_v26 }
 0x120   : > { %v5937_v34 = vld [vmem:[%s8395_s12 + $0x660] sm:$0xf]  ;;  %v7516_v35 = vld [vmem:[%s8395_s12 + $0x66c] sm:$0xf0]  ;;  %3833 = vmatpush.bf16.msrb.mxu1 %v5826_v27  ;;  %3846 = vmatpush.bf16.msrb.mxu2 %v5954_v28  ;;  %v5810_v39 = vor.u32 %v7484_v33, %v5809_v31  ;;  %v1161_v28 = vunpack.c.l.b16 %v621_v11 }
 0x121   : > { %v6065_v36 = vld [vmem:[%s8395_s12 + $0x760] sm:$0xf]  ;;  %v7548_v37 = vld [vmem:[%s8395_s12 + $0x76c] sm:$0xf0]  ;;  %v5938_v40 = vor.u32 %v7516_v35, %v5937_v34  ;;  %3859 = vmatpush.bf16.msrb.mxu3 %v6082_v32  ;;  %3821 = vmatpush.bf16.msrb.mxu0 %v5682_v38  ;;  %v1162_v32 = vunpack.c.h.b16 %v621_v11 }
 0x122   : > { %v5665_v41 = vld [vmem:[%s8395_s12 + $0x440] sm:$0xf]  ;;  %v7448_v42 = vld [vmem:[%s8395_s12 + $0x44c] sm:$0xf0]  ;;  %v6066_v44 = vor.u32 %v7548_v37, %v6065_v36 }
 0x123   : > { %v5793_v43 = vld [vmem:[%s8395_s12 + $0x540] sm:$0xf]  ;;  %v7480_v45 = vld [vmem:[%s8395_s12 + $0x54c] sm:$0xf0]  ;;  %v5666_v50 = vor.u32 %v7448_v42, %v5665_v41 }
 0x124   : > { %v5921_v46 = vld [vmem:[%s8395_s12 + $0x640] sm:$0xf]  ;;  %v7512_v47 = vld [vmem:[%s8395_s12 + $0x64c] sm:$0xf0]  ;;  %3834 = vmatpush.bf16.msrb.mxu1 %v5810_v39  ;;  %3847 = vmatpush.bf16.msrb.mxu2 %v5938_v40  ;;  %v5794_v51 = vor.u32 %v7480_v45, %v5793_v43  ;;  %v8599_v45 = vpack.c.b16 %v1161_v28, %v1161_v28 }
 0x125   : > { %v6049_v48 = vld [vmem:[%s8395_s12 + $0x740] sm:$0xf]  ;;  %v7544_v49 = vld [vmem:[%s8395_s12 + $0x74c] sm:$0xf0]  ;;  %v5922_v52 = vor.u32 %v7512_v47, %v5921_v46  ;;  %3860 = vmatpush.bf16.msrb.mxu3 %v6066_v44  ;;  %3822 = vmatpush.bf16.msrb.mxu0 %v5666_v50 }
 0x126   : > { %v5649_v53 = vld [vmem:[%s8395_s12 + $0x420] sm:$0xf]  ;;  %v7444_v54 = vld [vmem:[%s8395_s12 + $0x42c] sm:$0xf0]  ;;  %v6050_v56 = vor.u32 %v7544_v49, %v6049_v48  ;;  %v8603_v48 = vpack.c.b16 %v1162_v32, %v1162_v32 }
 0x127   : > { %v5777_v55 = vld [vmem:[%s8395_s12 + $0x520] sm:$0xf]  ;;  %v7476_v57 = vld [vmem:[%s8395_s12 + $0x52c] sm:$0xf0]  ;;  %v5650_v63 = vor.u32 %v7444_v54, %v5649_v53 }
 0x128   : > { %v5905_v58 = vld [vmem:[%s8395_s12 + $0x620] sm:$0xf]  ;;  %v7508_v59 = vld [vmem:[%s8395_s12 + $0x62c] sm:$0xf0]  ;;  %3835 = vmatpush.bf16.msrb.mxu1 %v5794_v51  ;;  %3848 = vmatpush.bf16.msrb.mxu2 %v5922_v52  ;;  %v5778_v3 = vor.u32 %v7476_v57, %v5777_v55 }
 0x129   : > { %v6033_v60 = vld [vmem:[%s8395_s12 + $0x720] sm:$0xf]  ;;  %v7540_v61 = vld [vmem:[%s8395_s12 + $0x72c] sm:$0xf0]  ;;  %v5906_v4 = vor.u32 %v7508_v59, %v5905_v58  ;;  %3861 = vmatpush.bf16.msrb.mxu3 %v6050_v56  ;;  %3823 = vmatpush.bf16.msrb.mxu0 %v5650_v63 }
 0x12a   : > { %v5633_v62 = vld [vmem:[%s8395_s12 + $0x400] sm:$0xf]  ;;  %v7440_v0 = vld [vmem:[%s8395_s12 + $0x40c] sm:$0xf0]  ;;  %v6034_v8 = vor.u32 %v7540_v61, %v6033_v60 }
 0x12b   : > { %v5761_v1 = vld [vmem:[%s8395_s12 + $0x500] sm:$0xf]  ;;  %v7472_v2 = vld [vmem:[%s8395_s12 + $0x50c] sm:$0xf0]  ;;  %v5634_v15 = vor.u32 %v7440_v0, %v5633_v62 }
 0x12c   : > { %v5889_v5 = vld [vmem:[%s8395_s12 + $0x600] sm:$0xf]  ;;  %v7504_v6 = vld [vmem:[%s8395_s12 + $0x60c] sm:$0xf0]  ;;  %3836 = vmatpush.bf16.msrb.mxu1 %v5778_v3  ;;  %3849 = vmatpush.bf16.msrb.mxu2 %v5906_v4  ;;  %v5762_v20 = vor.u32 %v7472_v2, %v5761_v1 }
 0x12d   : > { %v622_v7 = vld [vmem:[#allocation2 + $0x10] sm:$0xff]  ;;  %v7536_v10 = vld [vmem:[%s8395_s12 + $0x70c] sm:$0xf0]  ;;  %v5890_v21 = vor.u32 %v7504_v6, %v5889_v5  ;;  %3862 = vmatpush.bf16.msrb.mxu3 %v6034_v8  ;;  %3824 = vmatpush.bf16.msrb.mxu0 %v5634_v15 }
 0x12e   : > { %v6017_v9 = vld [vmem:[%s8395_s12 + $0x700] sm:$0xf]  ;;  %v7596_v13 = vld [vmem:[%s8395_s12 + $0x8ec] sm:$0xf0]  ;;  %v1163_v19 = vunpack.c.l.b16 %v622_v7  ;;  %v1164_v29 = vunpack.c.h.b16 %v622_v7 }
 0x12f   : > { %v6257_v12 = vld [vmem:[%s8395_s12 + $0x8e0] sm:$0xf]  ;;  %v7628_v16 = vld [vmem:[%s8395_s12 + $0x9ec] sm:$0xf0]  ;;  %v6018_v30 = vor.u32 %v7536_v10, %v6017_v9 }
 0x130   : > { %v6385_v14 = vld [vmem:[%s8395_s12 + $0x9e0] sm:$0xf]  ;;  %v7660_v18 = vld [vmem:[%s8395_s12 + $0xaec] sm:$0xf0]  ;;  %v6258_v31 = vor.u32 %v7596_v13, %v6257_v12  ;;  %v8595_v42 = vpack.c.b16 %v1163_v19, %v1163_v19  ;;  %3837 = vmatpush.bf16.msrb.mxu1 %v5762_v20  ;;  %3850 = vmatpush.bf16.msrb.mxu2 %v5890_v21  ;;  %v8601_v46 = vpack.c.b16 %v1164_v29, %v1164_v29 }
 0x131   : > { %v6513_v17 = vld [vmem:[%s8395_s12 + $0xae0] sm:$0xf]  ;;  %v7692_v27 = vld [vmem:[%s8395_s12 + $0xbec] sm:$0xf0]  ;;  %v6386_v33 = vor.u32 %v7628_v16, %v6385_v14  ;;  %3863 = vmatpush.bf16.msrb.mxu3 %v6018_v30  ;;  %3825 = vmatmul.bf16.vlgmr.msrb.gmra.mxu0 %v8599_v45 }
 0x132   : > { %v6641_v25 = vld [vmem:[%s8395_s12 + $0xbe0] sm:$0xf]  ;;  %v6514_v34 = vor.u32 %v7660_v18, %v6513_v17  ;;  %v7592_v36 = vld [vmem:[%s8395_s12 + $0x8cc] sm:$0xf0]  ;;  %3869 = vmatpush.bf16.msra.mxu0 %v6258_v31 }
 0x133   : > { %v6241_v35 = vld [vmem:[%s8395_s12 + $0x8c0] sm:$0xf]  ;;  %v6642_v38 = vor.u32 %v7692_v27, %v6641_v25  ;;  %v7624_v39 = vld [vmem:[%s8395_s12 + $0x9cc] sm:$0xf0]  ;;  %3851 = vmatmul.bf16.vlgmr.msrb.gmra.mxu2 %v8595_v42  ;;  %3838 = vmatmul.bf16.vlgmr.msrb.gmra.mxu1 %v8603_v48 }
 0x134   : > { %v6369_v37 = vld [vmem:[%s8395_s12 + $0x9c0] sm:$0xf]  ;;  %v7656_v41 = vld [vmem:[%s8395_s12 + $0xacc] sm:$0xf0]  ;;  %v6242_v47 = vor.u32 %v7592_v36, %v6241_v35  ;;  %3882 = vmatpush.bf16.msra.mxu1 %v6386_v33  ;;  %3895 = vmatpush.bf16.msra.mxu2 %v6514_v34 }
 0x135   : > { %v6497_v40 = vld [vmem:[%s8395_s12 + $0xac0] sm:$0xf]  ;;  %v7688_v44 = vld [vmem:[%s8395_s12 + $0xbcc] sm:$0xf0]  ;;  %v6370_v49 = vor.u32 %v7624_v39, %v6369_v37  ;;  %3908 = vmatpush.bf16.msra.mxu3 %v6642_v38 }
 0x136   : > { %v6625_v43 = vld [vmem:[%s8395_s12 + $0xbc0] sm:$0xf]  ;;  %v6498_v50 = vor.u32 %v7656_v41, %v6497_v40  ;;  %v7588_v52 = vld [vmem:[%s8395_s12 + $0x8ac] sm:$0xf0]  ;;  %3864 = vmatmul.bf16.vlgmr.msrb.gmra.mxu3 %v8601_v46  ;;  %3870 = vmatpush.bf16.msra.mxu0 %v6242_v47 }
 0x137   : > { %v6225_v51 = vld [vmem:[%s8395_s12 + $0x8a0] sm:$0xf]  ;;  %v6626_v54 = vor.u32 %v7688_v44, %v6625_v43  ;;  %v7620_v55 = vld [vmem:[%s8395_s12 + $0x9ac] sm:$0xf0] }
 0x138   : > { %v6353_v53 = vld [vmem:[%s8395_s12 + $0x9a0] sm:$0xf]  ;;  %v7652_v57 = vld [vmem:[%s8395_s12 + $0xaac] sm:$0xf0]  ;;  %v6226_v60 = vor.u32 %v7588_v52, %v6225_v51  ;;  %3883 = vmatpush.bf16.msra.mxu1 %v6370_v49  ;;  %3896 = vmatpush.bf16.msra.mxu2 %v6498_v50 }
 0x139   : > { %v6481_v56 = vld [vmem:[%s8395_s12 + $0xaa0] sm:$0xf]  ;;  %v7684_v59 = vld [vmem:[%s8395_s12 + $0xbac] sm:$0xf0]  ;;  %v6354_v61 = vor.u32 %v7620_v55, %v6353_v53  ;;  %3909 = vmatpush.bf16.msra.mxu3 %v6626_v54 }
 0x13a   : > { %v6609_v58 = vld [vmem:[%s8395_s12 + $0xba0] sm:$0xf]  ;;  %v6482_v62 = vor.u32 %v7652_v57, %v6481_v56  ;;  %v7584_v0 = vld [vmem:[%s8395_s12 + $0x88c] sm:$0xf0]  ;;  %3871 = vmatpush.bf16.msra.mxu0 %v6226_v60 }
 0x13b   : > { %v6209_v63 = vld [vmem:[%s8395_s12 + $0x880] sm:$0xf]  ;;  %v6610_v2 = vor.u32 %v7684_v59, %v6609_v58  ;;  %v7616_v3 = vld [vmem:[%s8395_s12 + $0x98c] sm:$0xf0] }
 0x13c   : > { %v6337_v1 = vld [vmem:[%s8395_s12 + $0x980] sm:$0xf]  ;;  %v7648_v5 = vld [vmem:[%s8395_s12 + $0xa8c] sm:$0xf0]  ;;  %v6210_v8 = vor.u32 %v7584_v0, %v6209_v63  ;;  %3884 = vmatpush.bf16.msra.mxu1 %v6354_v61  ;;  %3897 = vmatpush.bf16.msra.mxu2 %v6482_v62  ;;  %v623_v61 = vld [vmem:[#allocation2 + $0x8] sm:$0xff] }
 0x13d   : > { %v6465_v4 = vld [vmem:[%s8395_s12 + $0xa80] sm:$0xf]  ;;  %v7680_v7 = vld [vmem:[%s8395_s12 + $0xb8c] sm:$0xf0]  ;;  %v6338_v9 = vor.u32 %v7616_v3, %v6337_v1  ;;  %3910 = vmatpush.bf16.msra.mxu3 %v6610_v2 }
 0x13e   : > { %v6593_v6 = vld [vmem:[%s8395_s12 + $0xb80] sm:$0xf]  ;;  %v6466_v10 = vor.u32 %v7648_v5, %v6465_v4  ;;  %v7580_v12 = vld [vmem:[%s8395_s12 + $0x86c] sm:$0xf0]  ;;  %3872 = vmatpush.bf16.msra.mxu0 %v6210_v8 }
 0x13f   : > { %v6193_v11 = vld [vmem:[%s8395_s12 + $0x860] sm:$0xf]  ;;  %v6594_v14 = vor.u32 %v7680_v7, %v6593_v6  ;;  %v7612_v15 = vld [vmem:[%s8395_s12 + $0x96c] sm:$0xf0] }
 0x140   : > { %v6321_v13 = vld [vmem:[%s8395_s12 + $0x960] sm:$0xf]  ;;  %v7644_v17 = vld [vmem:[%s8395_s12 + $0xa6c] sm:$0xf0]  ;;  %v6194_v20 = vor.u32 %v7580_v12, %v6193_v11  ;;  %3885 = vmatpush.bf16.msra.mxu1 %v6338_v9  ;;  %3898 = vmatpush.bf16.msra.mxu2 %v6466_v10  ;;  %v1165_v9 = vunpack.c.l.b16 %v623_v61 }
 0x141   : > { %v6449_v16 = vld [vmem:[%s8395_s12 + $0xa60] sm:$0xf]  ;;  %v7676_v19 = vld [vmem:[%s8395_s12 + $0xb6c] sm:$0xf0]  ;;  %v6322_v21 = vor.u32 %v7612_v15, %v6321_v13  ;;  %3911 = vmatpush.bf16.msra.mxu3 %v6594_v14  ;;  %v1166_v15 = vunpack.c.h.b16 %v623_v61 }
 0x142   : > { %v6577_v18 = vld [vmem:[%s8395_s12 + $0xb60] sm:$0xf]  ;;  %v6450_v25 = vor.u32 %v7644_v17, %v6449_v16  ;;  %v7576_v28 = vld [vmem:[%s8395_s12 + $0x84c] sm:$0xf0]  ;;  %3873 = vmatpush.bf16.msra.mxu0 %v6194_v20 }
 0x143   : > { %v6177_v27 = vld [vmem:[%s8395_s12 + $0x840] sm:$0xf]  ;;  %v6578_v30 = vor.u32 %v7676_v19, %v6577_v18  ;;  %v7608_v31 = vld [vmem:[%s8395_s12 + $0x94c] sm:$0xf0] }
 0x144   : > { %v6305_v29 = vld [vmem:[%s8395_s12 + $0x940] sm:$0xf]  ;;  %v7640_v33 = vld [vmem:[%s8395_s12 + $0xa4c] sm:$0xf0]  ;;  %v6178_v36 = vor.u32 %v7576_v28, %v6177_v27  ;;  %3886 = vmatpush.bf16.msra.mxu1 %v6322_v21  ;;  %3899 = vmatpush.bf16.msra.mxu2 %v6450_v25 }
 0x145   : > { %v6433_v32 = vld [vmem:[%s8395_s12 + $0xa40] sm:$0xf]  ;;  %v7672_v35 = vld [vmem:[%s8395_s12 + $0xb4c] sm:$0xf0]  ;;  %v6306_v37 = vor.u32 %v7608_v31, %v6305_v29  ;;  %3912 = vmatpush.bf16.msra.mxu3 %v6578_v30  ;;  %v8668_v29 = vpack.c.b16 %v1165_v9, %v1165_v9 }
 0x146   : > { %v6561_v34 = vld [vmem:[%s8395_s12 + $0xb40] sm:$0xf]  ;;  %v6434_v38 = vor.u32 %v7640_v33, %v6433_v32  ;;  %v7572_v40 = vld [vmem:[%s8395_s12 + $0x82c] sm:$0xf0]  ;;  %3874 = vmatpush.bf16.msra.mxu0 %v6178_v36 }
 0x147   : > { %v6161_v39 = vld [vmem:[%s8395_s12 + $0x820] sm:$0xf]  ;;  %v6562_v43 = vor.u32 %v7672_v35, %v6561_v34  ;;  %v7604_v44 = vld [vmem:[%s8395_s12 + $0x92c] sm:$0xf0]  ;;  %v8675_v34 = vpack.c.b16 %v1166_v15, %v1166_v15 }
 0x148   : > { %v6289_v41 = vld [vmem:[%s8395_s12 + $0x920] sm:$0xf]  ;;  %v7636_v49 = vld [vmem:[%s8395_s12 + $0xa2c] sm:$0xf0]  ;;  %v6162_v53 = vor.u32 %v7572_v40, %v6161_v39  ;;  %3887 = vmatpush.bf16.msra.mxu1 %v6306_v37  ;;  %3900 = vmatpush.bf16.msra.mxu2 %v6434_v38 }
 0x149   : > { %v6417_v47 = vld [vmem:[%s8395_s12 + $0xa20] sm:$0xf]  ;;  %v7668_v51 = vld [vmem:[%s8395_s12 + $0xb2c] sm:$0xf0]  ;;  %v6290_v57 = vor.u32 %v7604_v44, %v6289_v41  ;;  %3913 = vmatpush.bf16.msra.mxu3 %v6562_v43 }
 0x14a   : > { %v6545_v50 = vld [vmem:[%s8395_s12 + $0xb20] sm:$0xf]  ;;  %v7568_v54 = vld [vmem:[%s8395_s12 + $0x80c] sm:$0xf0]  ;;  %v6418_v58 = vor.u32 %v7636_v49, %v6417_v47  ;;  %3875 = vmatpush.bf16.msra.mxu0 %v6162_v53 }
 0x14b   : > { %v6145_v52 = vld [vmem:[%s8395_s12 + $0x800] sm:$0xf]  ;;  %v7600_v56 = vld [vmem:[%s8395_s12 + $0x90c] sm:$0xf0]  ;;  %v6546_v62 = vor.u32 %v7668_v51, %v6545_v50 }
 0x14c   : > { %v6273_v55 = vld [vmem:[%s8395_s12 + $0x900] sm:$0xf]  ;;  %v7632_v60 = vld [vmem:[%s8395_s12 + $0xa0c] sm:$0xf0]  ;;  %v6146_v5 = vor.u32 %v7568_v54, %v6145_v52  ;;  %3888 = vmatpush.bf16.msra.mxu1 %v6290_v57  ;;  %3901 = vmatpush.bf16.msra.mxu2 %v6418_v58 }
 0x14d   : > { %v6401_v59 = vld [vmem:[%s8395_s12 + $0xa00] sm:$0xf]  ;;  %v7664_v0 = vld [vmem:[%s8395_s12 + $0xb0c] sm:$0xf0]  ;;  %v6274_v10 = vor.u32 %v7600_v56, %v6273_v55  ;;  %3914 = vmatpush.bf16.msra.mxu3 %v6546_v62 }
 0x14e   : > { %v6529_v63 = vld [vmem:[%s8395_s12 + $0xb00] sm:$0xf]  ;;  %v624_v1 = vld [vmem:[#allocation2 + $0x20] sm:$0xff]  ;;  %v6402_v11 = vor.u32 %v7632_v60, %v6401_v59  ;;  %3876 = vmatpush.bf16.msra.mxu0 %v6146_v5 }
 0x14f   : > { %v6769_v2 = vld [vmem:[%s8395_s12 + $0xce0] sm:$0xf]  ;;  %v7724_v3 = vld [vmem:[%s8395_s12 + $0xcec] sm:$0xf0]  ;;  %v1167_v14 = vunpack.c.l.b16 %v624_v1  ;;  %v6530_v16 = vor.u32 %v7664_v0, %v6529_v63  ;;  %v1168_v18 = vunpack.c.h.b16 %v624_v1 }
 0x150   : > { %v6897_v4 = vld [vmem:[%s8395_s12 + $0xde0] sm:$0xf]  ;;  %v7756_v6 = vld [vmem:[%s8395_s12 + $0xdec] sm:$0xf0]  ;;  %v6770_v17 = vor.u32 %v7724_v3, %v6769_v2  ;;  %3889 = vmatpush.bf16.msra.mxu1 %v6274_v10  ;;  %3902 = vmatpush.bf16.msra.mxu2 %v6402_v11 }
 0x151   : > { %v7025_v7 = vld [vmem:[%s8395_s12 + $0xee0] sm:$0xf]  ;;  %v7788_v8 = vld [vmem:[%s8395_s12 + $0xeec] sm:$0xf0]  ;;  %v6898_v19 = vor.u32 %v7756_v6, %v6897_v4  ;;  %v8673_v33 = vpack.c.b16 %v1167_v14, %v1167_v14  ;;  %3915 = vmatpush.bf16.msra.mxu3 %v6530_v16  ;;  %v8679_v37 = vpack.c.b16 %v1168_v18, %v1168_v18  ;;  %3877 = vmatmul.bf16.vlgmr.msra.gmra.mxu0 %v8668_v29 }
 0x152   : > { %v7153_v12 = vld [vmem:[%s8395_s12 + $0xfe0] sm:$0xf]  ;;  %v7820_v13 = vld [vmem:[%s8395_s12 + $0xfec] sm:$0xf0]  ;;  %v7026_v20 = vor.u32 %v7788_v8, %v7025_v7  ;;  %3921 = vmatpush.bf16.msrb.mxu0 %v6770_v17 }
 0x153   : > { %v6753_v21 = vld [vmem:[%s8395_s12 + $0xcc0] sm:$0xf]  ;;  %v7720_v25 = vld [vmem:[%s8395_s12 + $0xccc] sm:$0xf0]  ;;  %v7154_v28 = vor.u32 %v7820_v13, %v7153_v12  ;;  %3903 = vmatmul.bf16.vlgmr.msra.gmra.mxu2 %v8673_v33  ;;  %3890 = vmatmul.bf16.vlgmr.msra.gmra.mxu1 %v8675_v34 }
 0x154   : > { %v6881_v27 = vld [vmem:[%s8395_s12 + $0xdc0] sm:$0xf]  ;;  %v7752_v30 = vld [vmem:[%s8395_s12 + $0xdcc] sm:$0xf0]  ;;  %v6754_v38 = vor.u32 %v7720_v25, %v6753_v21  ;;  %3934 = vmatpush.bf16.msrb.mxu1 %v6898_v19  ;;  %3947 = vmatpush.bf16.msrb.mxu2 %v7026_v20 }
 0x155   : > { %v7009_v31 = vld [vmem:[%s8395_s12 + $0xec0] sm:$0xf]  ;;  %v7784_v32 = vld [vmem:[%s8395_s12 + $0xecc] sm:$0xf0]  ;;  %v6882_v39 = vor.u32 %v7752_v30, %v6881_v27  ;;  %3960 = vmatpush.bf16.msrb.mxu3 %v7154_v28 }
 0x156   : > { %v7137_v35 = vld [vmem:[%s8395_s12 + $0xfc0] sm:$0xf]  ;;  %v7816_v36 = vld [vmem:[%s8395_s12 + $0xfcc] sm:$0xf0]  ;;  %v7010_v40 = vor.u32 %v7784_v32, %v7009_v31  ;;  %3916 = vmatmul.bf16.vlgmr.msra.gmra.mxu3 %v8679_v37  ;;  %3922 = vmatpush.bf16.msrb.mxu0 %v6754_v38 }
 0x157   : > { %v6737_v41 = vld [vmem:[%s8395_s12 + $0xca0] sm:$0xf]  ;;  %v7716_v43 = vld [vmem:[%s8395_s12 + $0xcac] sm:$0xf0]  ;;  %v7138_v47 = vor.u32 %v7816_v36, %v7137_v35 }
 0x158   : > { %v6865_v44 = vld [vmem:[%s8395_s12 + $0xda0] sm:$0xf]  ;;  %v7748_v49 = vld [vmem:[%s8395_s12 + $0xdac] sm:$0xf0]  ;;  %v6738_v54 = vor.u32 %v7716_v43, %v6737_v41  ;;  %3935 = vmatpush.bf16.msrb.mxu1 %v6882_v39  ;;  %3948 = vmatpush.bf16.msrb.mxu2 %v7010_v40 }
 0x159   : > { %v6993_v50 = vld [vmem:[%s8395_s12 + $0xea0] sm:$0xf]  ;;  %v7780_v51 = vld [vmem:[%s8395_s12 + $0xeac] sm:$0xf0]  ;;  %v6866_v55 = vor.u32 %v7748_v49, %v6865_v44  ;;  %3961 = vmatpush.bf16.msrb.mxu3 %v7138_v47 }
 0x15a   : > { %v7121_v52 = vld [vmem:[%s8395_s12 + $0xfa0] sm:$0xf]  ;;  %v7812_v53 = vld [vmem:[%s8395_s12 + $0xfac] sm:$0xf0]  ;;  %v6994_v56 = vor.u32 %v7780_v51, %v6993_v50  ;;  %3923 = vmatpush.bf16.msrb.mxu0 %v6738_v54 }
 0x15b   : > { %v6721_v57 = vld [vmem:[%s8395_s12 + $0xc80] sm:$0xf]  ;;  %v7712_v58 = vld [vmem:[%s8395_s12 + $0xc8c] sm:$0xf0]  ;;  %v7122_v60 = vor.u32 %v7812_v53, %v7121_v52 }
 0x15c   : > { %v6849_v59 = vld [vmem:[%s8395_s12 + $0xd80] sm:$0xf]  ;;  %v7744_v61 = vld [vmem:[%s8395_s12 + $0xd8c] sm:$0xf0]  ;;  %v6722_v2 = vor.u32 %v7712_v58, %v6721_v57  ;;  %3936 = vmatpush.bf16.msrb.mxu1 %v6866_v55  ;;  %3949 = vmatpush.bf16.msrb.mxu2 %v6994_v56 }
 0x15d   : > { %v6977_v62 = vld [vmem:[%s8395_s12 + $0xe80] sm:$0xf]  ;;  %v7776_v63 = vld [vmem:[%s8395_s12 + $0xe8c] sm:$0xf0]  ;;  %v6850_v3 = vor.u32 %v7744_v61, %v6849_v59  ;;  %3962 = vmatpush.bf16.msrb.mxu3 %v7122_v60  ;;  %v625_v59 = vld [vmem:[#allocation2 + $0x28] sm:$0xff] }
 0x15e   : > { %v7105_v0 = vld [vmem:[%s8395_s12 + $0xf80] sm:$0xf]  ;;  %v7808_v1 = vld [vmem:[%s8395_s12 + $0xf8c] sm:$0xf0]  ;;  %v6978_v4 = vor.u32 %v7776_v63, %v6977_v62  ;;  %3924 = vmatpush.bf16.msrb.mxu0 %v6722_v2  ;;  %v626_v63 = vld [vmem:[#allocation2 + $0x38] sm:$0xff] }
 0x15f   : > { %v6705_v5 = vld [vmem:[%s8395_s12 + $0xc60] sm:$0xf]  ;;  %v7708_v6 = vld [vmem:[%s8395_s12 + $0xc6c] sm:$0xf0]  ;;  %v7106_v8 = vor.u32 %v7808_v1, %v7105_v0  ;;  %v7338_v0 = vld [vmem:[%s8395_s12 + $0xe4] sm:$0xf] }
 0x160   : > { %v6833_v7 = vld [vmem:[%s8395_s12 + $0xd60] sm:$0xf]  ;;  %v7740_v9 = vld [vmem:[%s8395_s12 + $0xd6c] sm:$0xf0]  ;;  %v6706_v14 = vor.u32 %v7708_v6, %v6705_v5  ;;  %3937 = vmatpush.bf16.msrb.mxu1 %v6850_v3  ;;  %3950 = vmatpush.bf16.msrb.mxu2 %v6978_v4  ;;  %v5235_v1 = vld [vmem:[%s8395_s12 + $0xf0] sm:$0xf0] }
 0x161   : > { %v6961_v10 = vld [vmem:[%s8395_s12 + $0xe60] sm:$0xf]  ;;  %v7772_v11 = vld [vmem:[%s8395_s12 + $0xe6c] sm:$0xf0]  ;;  %v6834_v15 = vor.u32 %v7740_v9, %v6833_v7  ;;  %3963 = vmatpush.bf16.msrb.mxu3 %v7106_v8  ;;  %v7370_v2 = vld [vmem:[%s8395_s12 + $0x1e4] sm:$0xf]  ;;  %v1169_v7 = vunpack.c.l.b16 %v625_v59 }
 0x162   : > { %v7089_v12 = vld [vmem:[%s8395_s12 + $0xf60] sm:$0xf]  ;;  %v7804_v13 = vld [vmem:[%s8395_s12 + $0xf6c] sm:$0xf0]  ;;  %v6962_v16 = vor.u32 %v7772_v11, %v6961_v10  ;;  %3925 = vmatpush.bf16.msrb.mxu0 %v6706_v14  ;;  %v5363_v4 = vld [vmem:[%s8395_s12 + $0x1f0] sm:$0xf0] }
 0x163   : > { %v6689_v17 = vld [vmem:[%s8395_s12 + $0xc40] sm:$0xf]  ;;  %v7704_v18 = vld [vmem:[%s8395_s12 + $0xc4c] sm:$0xf0]  ;;  %v7090_v20 = vor.u32 %v7804_v13, %v7089_v12  ;;  %v7402_v5 = vld [vmem:[%s8395_s12 + $0x2e4] sm:$0xf]  ;;  %v1171_v12 = vunpack.c.l.b16 %v626_v63  ;;  %v1170_v13 = vunpack.c.h.b16 %v625_v59 }
 0x164   : > { %v6817_v19 = vld [vmem:[%s8395_s12 + $0xd40] sm:$0xf]  ;;  %v7736_v21 = vld [vmem:[%s8395_s12 + $0xd4c] sm:$0xf0]  ;;  %v6690_v31 = vor.u32 %v7704_v18, %v6689_v17  ;;  %3938 = vmatpush.bf16.msrb.mxu1 %v6834_v15  ;;  %3951 = vmatpush.bf16.msrb.mxu2 %v6962_v16  ;;  %v5491_v6 = vld [vmem:[%s8395_s12 + $0x2f0] sm:$0xf0]  ;;  %v5238_v15 = vor.u32 %v7338_v0, %v5235_v1  ;;  %v1172_v16 = vunpack.c.h.b16 %v626_v63  ;;  %v5366_v17 = vor.u32 %v7370_v2, %v5363_v4 }
 0x165   : > { %v6945_v25 = vld [vmem:[%s8395_s12 + $0xe40] sm:$0xf]  ;;  %v7768_v27 = vld [vmem:[%s8395_s12 + $0xe4c] sm:$0xf0]  ;;  %v6818_v32 = vor.u32 %v7736_v21, %v6817_v19  ;;  %3964 = vmatpush.bf16.msrb.mxu3 %v7090_v20  ;;  %v7434_v10 = vld [vmem:[%s8395_s12 + $0x3e4] sm:$0xf]  ;;  %v5494_v18 = vor.u32 %v7402_v5, %v5491_v6 }
 0x166   : > { %v7073_v28 = vld [vmem:[%s8395_s12 + $0xf40] sm:$0xf]  ;;  %v7800_v30 = vld [vmem:[%s8395_s12 + $0xf4c] sm:$0xf0]  ;;  %v6946_v35 = vor.u32 %v7768_v27, %v6945_v25  ;;  %3926 = vmatpush.bf16.msrb.mxu0 %v6690_v31  ;;  %v5619_v11 = vld [vmem:[%s8395_s12 + $0x3f0] sm:$0xf0]  ;;  %v8744_v27 = vpack.c.b16 %v1169_v7, %v1169_v7 }
 0x167   : > { %v6673_v36 = vld [vmem:[%s8395_s12 + $0xc20] sm:$0xf]  ;;  %v7700_v38 = vld [vmem:[%s8395_s12 + $0xc2c] sm:$0xf0]  ;;  %v7074_v40 = vor.u32 %v7800_v30, %v7073_v28  ;;  %v7334_v19 = vld [vmem:[%s8395_s12 + $0xc4] sm:$0xf]  ;;  %v5622_v25 = vor.u32 %v7434_v10, %v5619_v11 }
 0x168   : > { %v6801_v39 = vld [vmem:[%s8395_s12 + $0xd20] sm:$0xf]  ;;  %v7732_v41 = vld [vmem:[%s8395_s12 + $0xd2c] sm:$0xf0]  ;;  %v6674_v51 = vor.u32 %v7700_v38, %v6673_v36  ;;  %3939 = vmatpush.bf16.msrb.mxu1 %v6818_v32  ;;  %3952 = vmatpush.bf16.msrb.mxu2 %v6946_v35  ;;  %v5219_v20 = vld [vmem:[%s8395_s12 + $0xd0] sm:$0xf0]  ;;  %v8749_v32 = vpack.c.b16 %v1171_v12, %v1171_v12  ;;  %v8751_v35 = vpack.c.b16 %v1170_v13, %v1170_v13 }
 0x169   : > { %v6929_v43 = vld [vmem:[%s8395_s12 + $0xe20] sm:$0xf]  ;;  %v7764_v44 = vld [vmem:[%s8395_s12 + $0xe2c] sm:$0xf0]  ;;  %v6802_v55 = vor.u32 %v7732_v41, %v6801_v39  ;;  %3965 = vmatpush.bf16.msrb.mxu3 %v7074_v40  ;;  %v7366_v21 = vld [vmem:[%s8395_s12 + $0x1c4] sm:$0xf]  ;;  %v8755_v39 = vpack.c.b16 %v1172_v16, %v1172_v16  ;;  %v5222_v40 = vor.u32 %v7334_v19, %v5219_v20 }
 0x16a   : > { %v7057_v47 = vld [vmem:[%s8395_s12 + $0xf20] sm:$0xf]  ;;  %v7796_v49 = vld [vmem:[%s8395_s12 + $0xf2c] sm:$0xf0]  ;;  %v6930_v56 = vor.u32 %v7764_v44, %v6929_v43  ;;  %3927 = vmatpush.bf16.msrb.mxu0 %v6674_v51  ;;  %v5347_v28 = vld [vmem:[%s8395_s12 + $0x1d0] sm:$0xf0] }
 0x16b   : > { %v6657_v50 = vld [vmem:[%s8395_s12 + $0xc00] sm:$0xf]  ;;  %v7696_v52 = vld [vmem:[%s8395_s12 + $0xc0c] sm:$0xf0]  ;;  %v7058_v60 = vor.u32 %v7796_v49, %v7057_v47  ;;  %v7398_v30 = vld [vmem:[%s8395_s12 + $0x2c4] sm:$0xf]  ;;  %v5350_v41 = vor.u32 %v7366_v21, %v5347_v28 }
 0x16c   : > { %v6785_v53 = vld [vmem:[%s8395_s12 + $0xd00] sm:$0xf]  ;;  %v7728_v54 = vld [vmem:[%s8395_s12 + $0xd0c] sm:$0xf0]  ;;  %v6658_v3 = vor.u32 %v7696_v52, %v6657_v50  ;;  %3940 = vmatpush.bf16.msrb.mxu1 %v6802_v55  ;;  %3953 = vmatpush.bf16.msrb.mxu2 %v6930_v56  ;;  %v5475_v31 = vld [vmem:[%s8395_s12 + $0x2d0] sm:$0xf0] }
 0x16d   : > { %v6913_v57 = vld [vmem:[%s8395_s12 + $0xe00] sm:$0xf]  ;;  %v7760_v58 = vld [vmem:[%s8395_s12 + $0xe0c] sm:$0xf0]  ;;  %v6786_v8 = vor.u32 %v7728_v54, %v6785_v53  ;;  %3966 = vmatpush.bf16.msrb.mxu3 %v7058_v60  ;;  %v7430_v36 = vld [vmem:[%s8395_s12 + $0x3c4] sm:$0xf]  ;;  %v5478_v43 = vor.u32 %v7398_v30, %v5475_v31 }
 0x16e   : > { %v7041_v61 = vld [vmem:[%s8395_s12 + $0xf00] sm:$0xf]  ;;  %v7792_v62 = vld [vmem:[%s8395_s12 + $0xf0c] sm:$0xf0]  ;;  %v6914_v9 = vor.u32 %v7760_v58, %v6913_v57  ;;  %3928 = vmatpush.bf16.msrb.mxu0 %v6658_v3  ;;  %v5603_v38 = vld [vmem:[%s8395_s12 + $0x3d0] sm:$0xf0] }
 0x16f   : > { %v7042_v14 = vor.u32 %v7792_v62, %v7041_v61  ;;  %v7330_v44 = vld [vmem:[%s8395_s12 + $0xa4] sm:$0xf]  ;;  %v5203_v47 = vld [vmem:[%s8395_s12 + $0xb0] sm:$0xf0]  ;;  %v5606_v50 = vor.u32 %v7430_v36, %v5603_v38 }
 0x170   : > { %3941 = vmatpush.bf16.msrb.mxu1 %v6786_v8  ;;  %3954 = vmatpush.bf16.msrb.mxu2 %v6914_v9  ;;  %v7362_v49 = vld [vmem:[%s8395_s12 + $0x1a4] sm:$0xf]  ;;  %v5331_v51 = vld [vmem:[%s8395_s12 + $0x1b0] sm:$0xf0]  ;;  %v5206_v56 = vor.u32 %v7330_v44, %v5203_v47 }
 0x171   : > { %3967 = vmatpush.bf16.msrb.mxu3 %v7042_v14  ;;  %3929 = vmatmul.bf16.vlgmr.msrb.gmra.mxu0 %v8744_v27  ;;  %v7394_v52 = vld [vmem:[%s8395_s12 + $0x2a4] sm:$0xf]  ;;  %v5459_v53 = vld [vmem:[%s8395_s12 + $0x2b0] sm:$0xf0]  ;;  %v5334_v57 = vor.u32 %v7362_v49, %v5331_v51 }
 0x172   : > { %3973 = vmatpush.bf16.msra.mxu0 %v5238_v15  ;;  %v7426_v54 = vld [vmem:[%s8395_s12 + $0x3a4] sm:$0xf]  ;;  %v5587_v55 = vld [vmem:[%s8395_s12 + $0x3b0] sm:$0xf0]  ;;  %v5462_v58 = vor.u32 %v7394_v52, %v5459_v53 }
 0x173   : > { %3955 = vmatmul.bf16.vlgmr.msrb.gmra.mxu2 %v8749_v32  ;;  %3942 = vmatmul.bf16.vlgmr.msrb.gmra.mxu1 %v8751_v35  ;;  %v7326_v59 = vld [vmem:[%s8395_s12 + $0x84] sm:$0xf]  ;;  %v5187_v60 = vld [vmem:[%s8395_s12 + $0x90] sm:$0xf0]  ;;  %v5590_v62 = vor.u32 %v7426_v54, %v5587_v55 }
 0x174   : > { %3986 = vmatpush.bf16.msra.mxu1 %v5366_v17  ;;  %3999 = vmatpush.bf16.msra.mxu2 %v5494_v18  ;;  %v7358_v61 = vld [vmem:[%s8395_s12 + $0x184] sm:$0xf]  ;;  %v5315_v63 = vld [vmem:[%s8395_s12 + $0x190] sm:$0xf0]  ;;  %v5190_v4 = vor.u32 %v7326_v59, %v5187_v60 }
 0x175   : > { %4012 = vmatpush.bf16.msra.mxu3 %v5622_v25  ;;  %v7390_v0 = vld [vmem:[%s8395_s12 + $0x284] sm:$0xf]  ;;  %v5443_v1 = vld [vmem:[%s8395_s12 + $0x290] sm:$0xf0]  ;;  %v5318_v5 = vor.u32 %v7358_v61, %v5315_v63 }
 0x176   : > { %3968 = vmatmul.bf16.vlgmr.msrb.gmra.mxu3 %v8755_v39  ;;  %3974 = vmatpush.bf16.msra.mxu0 %v5222_v40  ;;  %v7422_v2 = vld [vmem:[%s8395_s12 + $0x384] sm:$0xf]  ;;  %v5571_v3 = vld [vmem:[%s8395_s12 + $0x390] sm:$0xf0]  ;;  %v5446_v6 = vor.u32 %v7390_v0, %v5443_v1 }
 0x177   : > { %v7322_v7 = vld [vmem:[%s8395_s12 + $0x64] sm:$0xf]  ;;  %v5171_v8 = vld [vmem:[%s8395_s12 + $0x70] sm:$0xf0]  ;;  %v5574_v10 = vor.u32 %v7422_v2, %v5571_v3 }
 0x178   : > { %3987 = vmatpush.bf16.msra.mxu1 %v5350_v41  ;;  %4000 = vmatpush.bf16.msra.mxu2 %v5478_v43  ;;  %v7354_v9 = vld [vmem:[%s8395_s12 + $0x164] sm:$0xf]  ;;  %v5299_v11 = vld [vmem:[%s8395_s12 + $0x170] sm:$0xf0]  ;;  %v5174_v16 = vor.u32 %v7322_v7, %v5171_v8 }
 0x179   : > { %4013 = vmatpush.bf16.msra.mxu3 %v5606_v50  ;;  %v7386_v12 = vld [vmem:[%s8395_s12 + $0x264] sm:$0xf]  ;;  %v5427_v13 = vld [vmem:[%s8395_s12 + $0x270] sm:$0xf0]  ;;  %v5302_v17 = vor.u32 %v7354_v9, %v5299_v11 }
 0x17a   : > { %3975 = vmatpush.bf16.msra.mxu0 %v5206_v56  ;;  %v7418_v14 = vld [vmem:[%s8395_s12 + $0x364] sm:$0xf]  ;;  %v5555_v15 = vld [vmem:[%s8395_s12 + $0x370] sm:$0xf0]  ;;  %v5430_v18 = vor.u32 %v7386_v12, %v5427_v13 }
 0x17b   : > { %v7318_v19 = vld [vmem:[%s8395_s12 + $0x44] sm:$0xf]  ;;  %v5155_v20 = vld [vmem:[%s8395_s12 + $0x50] sm:$0xf0]  ;;  %v5558_v25 = vor.u32 %v7418_v14, %v5555_v15 }
 0x17c   : > { %3988 = vmatpush.bf16.msra.mxu1 %v5334_v57  ;;  %4001 = vmatpush.bf16.msra.mxu2 %v5462_v58  ;;  %v7350_v21 = vld [vmem:[%s8395_s12 + $0x144] sm:$0xf]  ;;  %v5283_v28 = vld [vmem:[%s8395_s12 + $0x150] sm:$0xf0]  ;;  %v5158_v40 = vor.u32 %v7318_v19, %v5155_v20 }
 0x17d   : > { %4014 = vmatpush.bf16.msra.mxu3 %v5590_v62  ;;  %v7382_v30 = vld [vmem:[%s8395_s12 + $0x244] sm:$0xf]  ;;  %v5411_v31 = vld [vmem:[%s8395_s12 + $0x250] sm:$0xf0]  ;;  %v5286_v41 = vor.u32 %v7350_v21, %v5283_v28 }
 0x17e   : > { %3976 = vmatpush.bf16.msra.mxu0 %v5190_v4  ;;  %v7414_v36 = vld [vmem:[%s8395_s12 + $0x344] sm:$0xf]  ;;  %v5539_v38 = vld [vmem:[%s8395_s12 + $0x350] sm:$0xf0]  ;;  %v5414_v43 = vor.u32 %v7382_v30, %v5411_v31 }
 0x17f   : > { %v7314_v44 = vld [vmem:[%s8395_s12 + $0x24] sm:$0xf]  ;;  %v5139_v47 = vld [vmem:[%s8395_s12 + $0x30] sm:$0xf0]  ;;  %v5542_v50 = vor.u32 %v7414_v36, %v5539_v38 }
 0x180   : > { %3989 = vmatpush.bf16.msra.mxu1 %v5318_v5  ;;  %4002 = vmatpush.bf16.msra.mxu2 %v5446_v6  ;;  %v7346_v49 = vld [vmem:[%s8395_s12 + $0x124] sm:$0xf]  ;;  %v5267_v51 = vld [vmem:[%s8395_s12 + $0x130] sm:$0xf0]  ;;  %v5142_v56 = vor.u32 %v7314_v44, %v5139_v47 }
 0x181   : > { %4015 = vmatpush.bf16.msra.mxu3 %v5574_v10  ;;  %v7378_v52 = vld [vmem:[%s8395_s12 + $0x224] sm:$0xf]  ;;  %v5395_v53 = vld [vmem:[%s8395_s12 + $0x230] sm:$0xf0]  ;;  %v5270_v59 = vor.u32 %v7346_v49, %v5267_v51 }
 0x182   : > { %3977 = vmatpush.bf16.msra.mxu0 %v5174_v16  ;;  %v7410_v54 = vld [vmem:[%s8395_s12 + $0x324] sm:$0xf]  ;;  %v5523_v55 = vld [vmem:[%s8395_s12 + $0x330] sm:$0xf0]  ;;  %v5398_v60 = vor.u32 %v7378_v52, %v5395_v53 }
 0x183   : > { %v7310_v57 = vld [vmem:[%s8395_s12 + $0x4] sm:$0xf]  ;;  %v5123_v58 = vld [vmem:[%s8395_s12 + $0x10] sm:$0xf0]  ;;  %v5526_v0 = vor.u32 %v7410_v54, %v5523_v55 }
 0x184   : > { %3990 = vmatpush.bf16.msra.mxu1 %v5302_v17  ;;  %4003 = vmatpush.bf16.msra.mxu2 %v5430_v18  ;;  %v7342_v61 = vld [vmem:[%s8395_s12 + $0x104] sm:$0xf]  ;;  %v5251_v62 = vld [vmem:[%s8395_s12 + $0x110] sm:$0xf0]  ;;  %v5126_v7 = vor.u32 %v7310_v57, %v5123_v58 }
 0x185   : > { %4016 = vmatpush.bf16.msra.mxu3 %v5558_v25  ;;  %v7374_v63 = vld [vmem:[%s8395_s12 + $0x204] sm:$0xf]  ;;  %v5379_v1 = vld [vmem:[%s8395_s12 + $0x210] sm:$0xf0]  ;;  %v5254_v11 = vor.u32 %v7342_v61, %v5251_v62 }
 0x186   : > { %3978 = vmatpush.bf16.msra.mxu0 %v5158_v40  ;;  %v7406_v2 = vld [vmem:[%s8395_s12 + $0x304] sm:$0xf]  ;;  %v5507_v3 = vld [vmem:[%s8395_s12 + $0x310] sm:$0xf0]  ;;  %v5382_v12 = vor.u32 %v7374_v63, %v5379_v1 }
 0x187   : > { %v7466_v4 = vld [vmem:[%s8395_s12 + $0x4e4] sm:$0xf]  ;;  %v5747_v5 = vld [vmem:[%s8395_s12 + $0x4f0] sm:$0xf0]  ;;  %v5510_v15 = vor.u32 %v7406_v2, %v5507_v3 }
 0x188   : > { %3991 = vmatpush.bf16.msra.mxu1 %v5286_v41  ;;  %4004 = vmatpush.bf16.msra.mxu2 %v5414_v43  ;;  %v7498_v6 = vld [vmem:[%s8395_s12 + $0x5e4] sm:$0xf]  ;;  %v5875_v8 = vld [vmem:[%s8395_s12 + $0x5f0] sm:$0xf0]  ;;  %v5750_v16 = vor.u32 %v7466_v4, %v5747_v5 }
 0x189   : > { %4017 = vmatpush.bf16.msra.mxu3 %v5542_v50  ;;  %v7530_v9 = vld [vmem:[%s8395_s12 + $0x6e4] sm:$0xf]  ;;  %v6003_v10 = vld [vmem:[%s8395_s12 + $0x6f0] sm:$0xf0]  ;;  %v5878_v17 = vor.u32 %v7498_v6, %v5875_v8 }
 0x18a   : > { %3979 = vmatpush.bf16.msra.mxu0 %v5142_v56  ;;  %v7562_v13 = vld [vmem:[%s8395_s12 + $0x7e4] sm:$0xf]  ;;  %v6131_v14 = vld [vmem:[%s8395_s12 + $0x7f0] sm:$0xf0]  ;;  %v6006_v18 = vor.u32 %v7530_v9, %v6003_v10 }
 0x18b   : > { %v7462_v19 = vld [vmem:[%s8395_s12 + $0x4c4] sm:$0xf]  ;;  %v5731_v20 = vld [vmem:[%s8395_s12 + $0x4d0] sm:$0xf0]  ;;  %v6134_v25 = vor.u32 %v7562_v13, %v6131_v14 }
 0x18c   : > { %3992 = vmatpush.bf16.msra.mxu1 %v5270_v59  ;;  %4005 = vmatpush.bf16.msra.mxu2 %v5398_v60  ;;  %v7494_v21 = vld [vmem:[%s8395_s12 + $0x5c4] sm:$0xf]  ;;  %v5859_v28 = vld [vmem:[%s8395_s12 + $0x5d0] sm:$0xf0]  ;;  %v5734_v40 = vor.u32 %v7462_v19, %v5731_v20 }
 0x18d   : > { %4018 = vmatpush.bf16.msra.mxu3 %v5526_v0  ;;  %v7526_v30 = vld [vmem:[%s8395_s12 + $0x6c4] sm:$0xf]  ;;  %v5987_v31 = vld [vmem:[%s8395_s12 + $0x6d0] sm:$0xf0]  ;;  %v5862_v41 = vor.u32 %v7494_v21, %v5859_v28 }
 0x18e   : > { %3980 = vmatpush.bf16.msra.mxu0 %v5126_v7  ;;  %v7558_v36 = vld [vmem:[%s8395_s12 + $0x7c4] sm:$0xf]  ;;  %v6115_v38 = vld [vmem:[%s8395_s12 + $0x7d0] sm:$0xf0]  ;;  %v5990_v43 = vor.u32 %v7526_v30, %v5987_v31 }
 0x18f   : > { %v7458_v44 = vld [vmem:[%s8395_s12 + $0x4a4] sm:$0xf]  ;;  %v5715_v47 = vld [vmem:[%s8395_s12 + $0x4b0] sm:$0xf0]  ;;  %v6118_v50 = vor.u32 %v7558_v36, %v6115_v38 }
 0x190   : > { %3993 = vmatpush.bf16.msra.mxu1 %v5254_v11  ;;  %4006 = vmatpush.bf16.msra.mxu2 %v5382_v12  ;;  %v7490_v49 = vld [vmem:[%s8395_s12 + $0x5a4] sm:$0xf]  ;;  %v5843_v51 = vld [vmem:[%s8395_s12 + $0x5b0] sm:$0xf0]  ;;  %v5718_v56 = vor.u32 %v7458_v44, %v5715_v47 }
 0x191   : > { %4019 = vmatpush.bf16.msra.mxu3 %v5510_v15  ;;  %v7522_v52 = vld [vmem:[%s8395_s12 + $0x6a4] sm:$0xf]  ;;  %v5971_v53 = vld [vmem:[%s8395_s12 + $0x6b0] sm:$0xf0]  ;;  %3981 = vmatmul.bf16.vlgmr.msra.gmra.mxu0 %v8539_v23  ;;  %v5846_v57 = vor.u32 %v7490_v49, %v5843_v51 }
 0x192   : > { %4025 = vmatpush.bf16.msrb.mxu0 %v5750_v16  ;;  %v7554_v54 = vld [vmem:[%s8395_s12 + $0x7a4] sm:$0xf]  ;;  %v6099_v55 = vld [vmem:[%s8395_s12 + $0x7b0] sm:$0xf0]  ;;  %v5974_v58 = vor.u32 %v7522_v52, %v5971_v53 }
 0x193   : > { %4007 = vmatmul.bf16.vlgmr.msra.gmra.mxu2 %v8537_v22  ;;  %3994 = vmatmul.bf16.vlgmr.msra.gmra.mxu1 %v8543_v26  ;;  %v7454_v59 = vld [vmem:[%s8395_s12 + $0x484] sm:$0xf]  ;;  %v5699_v60 = vld [vmem:[%s8395_s12 + $0x490] sm:$0xf0]  ;;  %v6102_v62 = vor.u32 %v7554_v54, %v6099_v55 }
 0x194   : > { %4038 = vmatpush.bf16.msrb.mxu1 %v5878_v17  ;;  %4051 = vmatpush.bf16.msrb.mxu2 %v6006_v18  ;;  %v7486_v61 = vld [vmem:[%s8395_s12 + $0x584] sm:$0xf]  ;;  %v5827_v63 = vld [vmem:[%s8395_s12 + $0x590] sm:$0xf0]  ;;  %v5702_v4 = vor.u32 %v7454_v59, %v5699_v60 }
 0x195   : > { %4064 = vmatpush.bf16.msrb.mxu3 %v6134_v25  ;;  %v7518_v0 = vld [vmem:[%s8395_s12 + $0x684] sm:$0xf]  ;;  %v5955_v1 = vld [vmem:[%s8395_s12 + $0x690] sm:$0xf0]  ;;  %v5830_v6 = vor.u32 %v7486_v61, %v5827_v63 }
 0x196   : > { %4020 = vmatmul.bf16.vlgmr.msra.gmra.mxu3 %v8541_v24  ;;  %4026 = vmatpush.bf16.msrb.mxu0 %v5734_v40  ;;  %v7550_v2 = vld [vmem:[%s8395_s12 + $0x784] sm:$0xf]  ;;  %v6083_v3 = vld [vmem:[%s8395_s12 + $0x790] sm:$0xf0]  ;;  %v5958_v7 = vor.u32 %v7518_v0, %v5955_v1 }
 0x197   : > { %v7450_v5 = vld [vmem:[%s8395_s12 + $0x464] sm:$0xf]  ;;  %v5683_v8 = vld [vmem:[%s8395_s12 + $0x470] sm:$0xf0]  ;;  %v6086_v11 = vor.u32 %v7550_v2, %v6083_v3 }
 0x198   : > { %4039 = vmatpush.bf16.msrb.mxu1 %v5862_v41  ;;  %4052 = vmatpush.bf16.msrb.mxu2 %v5990_v43  ;;  %v7482_v9 = vld [vmem:[%s8395_s12 + $0x564] sm:$0xf]  ;;  %v5811_v10 = vld [vmem:[%s8395_s12 + $0x570] sm:$0xf0]  ;;  %v5686_v17 = vor.u32 %v7450_v5, %v5683_v8 }
 0x199   : > { %4065 = vmatpush.bf16.msrb.mxu3 %v6118_v50  ;;  %v7514_v12 = vld [vmem:[%s8395_s12 + $0x664] sm:$0xf]  ;;  %v5939_v13 = vld [vmem:[%s8395_s12 + $0x670] sm:$0xf0]  ;;  %v5814_v19 = vor.u32 %v7482_v9, %v5811_v10 }
 0x19a   : > { %4027 = vmatpush.bf16.msrb.mxu0 %v5718_v56  ;;  %v1139_v14 = vld [vmem:[%s8401_s27] sm:$0xf]  ;;  %v6067_v16 = vld [vmem:[%s8395_s12 + $0x770] sm:$0xf0]  ;;  %v5942_v20 = vor.u32 %v7514_v12, %v5939_v13 }
 0x19b   : > { %v7546_v15 = vld [vmem:[%s8395_s12 + $0x764] sm:$0xf]  ;;  %v5667_v21 = vld [vmem:[%s8395_s12 + $0x450] sm:$0xf0]  ;;  %v1141_v28 = vperm.slane %v1139_v14, 0  ;;  %v3774_v44 = vpop.f32.mrf.mxu0 }
 0x19c   : > { %4040 = vmatpush.bf16.msrb.mxu1 %v5846_v57  ;;  %4053 = vmatpush.bf16.msrb.mxu2 %v5974_v58  ;;  %v7446_v18 = vld [vmem:[%s8395_s12 + $0x444] sm:$0xf]  ;;  %v6070_v30 = vor.u32 %v7546_v15, %v6067_v16  ;;  %v5795_v31 = vld [vmem:[%s8395_s12 + $0x550] sm:$0xf0]  ;;  %v3787_v54 = vpop.f32.mrf.mxu1 }
 0x19d   : > { %4066 = vmatpush.bf16.msrb.mxu3 %v6102_v62  ;;  %v7478_v25 = vld [vmem:[%s8395_s12 + $0x544] sm:$0xf]  ;;  %v5923_v38 = vld [vmem:[%s8395_s12 + $0x650] sm:$0xf0]  ;;  %v5670_v43 = vor.u32 %v7446_v18, %v5667_v21  ;;  %v3775_v53 = vadd.f32 %v3774_v44, %v1141_v28 }
 0x19e   : > { %4028 = vmatpush.bf16.msrb.mxu0 %v5702_v4  ;;  %v7510_v36 = vld [vmem:[%s8395_s12 + $0x644] sm:$0xf]  ;;  %v6051_v41 = vld [vmem:[%s8395_s12 + $0x750] sm:$0xf0]  ;;  %v5798_v47 = vor.u32 %v7478_v25, %v5795_v31 }
 0x19f   : > { %v7542_v40 = vld [vmem:[%s8395_s12 + $0x744] sm:$0xf]  ;;  %v5926_v49 = vor.u32 %v7510_v36, %v5923_v38  ;;  %v5651_v51 = vld [vmem:[%s8395_s12 + $0x430] sm:$0xf0]  ;;  %v3788_v61 = vadd.f32 %v3787_v54, %v3775_v53 }
 0x1a0   : > { %4041 = vmatpush.bf16.msrb.mxu1 %v5830_v6  ;;  %4054 = vmatpush.bf16.msrb.mxu2 %v5958_v7  ;;  %v7442_v50 = vld [vmem:[%s8395_s12 + $0x424] sm:$0xf]  ;;  %v6054_v55 = vor.u32 %v7542_v40, %v6051_v41  ;;  %v5779_v56 = vld [vmem:[%s8395_s12 + $0x530] sm:$0xf0] }
 0x1a1   : > { %4067 = vmatpush.bf16.msrb.mxu3 %v6086_v11  ;;  %v7474_v52 = vld [vmem:[%s8395_s12 + $0x524] sm:$0xf]  ;;  %v5907_v58 = vld [vmem:[%s8395_s12 + $0x630] sm:$0xf0]  ;;  %v5654_v62 = vor.u32 %v7442_v50, %v5651_v51  ;;  %v3800_v6 = vpop.f32.mrf.mxu2 }
 0x1a2   : > { %4029 = vmatpush.bf16.msrb.mxu0 %v5686_v17  ;;  %v7506_v57 = vld [vmem:[%s8395_s12 + $0x624] sm:$0xf]  ;;  %v6035_v60 = vld [vmem:[%s8395_s12 + $0x730] sm:$0xf0]  ;;  %v5782_v1 = vor.u32 %v7474_v52, %v5779_v56  ;;  %v3801_v11 = vadd.f32 %v3800_v6, %v3788_v61  ;;  %v3813_v12 = vpop.f32.mrf.mxu3 }
 0x1a3   : > { %v7538_v59 = vld [vmem:[%s8395_s12 + $0x724] sm:$0xf]  ;;  %v5635_v0 = vld [vmem:[%s8395_s12 + $0x410] sm:$0xf0]  ;;  %v5910_v2 = vor.u32 %v7506_v57, %v5907_v58  ;;  %v3776_v21 = vpop.f32.mrf.mxu0 }
 0x1a4   : > { %4042 = vmatpush.bf16.msrb.mxu1 %v5814_v19  ;;  %4055 = vmatpush.bf16.msrb.mxu2 %v5942_v20  ;;  %v7438_v63 = vld [vmem:[%s8395_s12 + $0x404] sm:$0xf]  ;;  %v5763_v4 = vld [vmem:[%s8395_s12 + $0x510] sm:$0xf0]  ;;  %v6038_v7 = vor.u32 %v7538_v59, %v6035_v60  ;;  %v8884_v20 = vadd.f32 %v3813_v12, %v3801_v11  ;;  %v3789_v36 = vpop.f32.mrf.mxu1 }
 0x1a5   : > { %4068 = vmatpush.bf16.msrb.mxu3 %v6070_v30  ;;  %v7470_v3 = vld [vmem:[%s8395_s12 + $0x504] sm:$0xf]  ;;  %v5891_v8 = vld [vmem:[%s8395_s12 + $0x610] sm:$0xf0]  ;;  %v5638_v16 = vor.u32 %v7438_v63, %v5635_v0 }
 0x1a6   : > { %4030 = vmatpush.bf16.msrb.mxu0 %v5670_v43  ;;  %v7502_v5 = vld [vmem:[%s8395_s12 + $0x604] sm:$0xf]  ;;  %v6019_v10 = vld [vmem:[%s8395_s12 + $0x710] sm:$0xf0]  ;;  %v5766_v25 = vor.u32 %v7470_v3, %v5763_v4 }
 0x1a7   : > { %v7534_v9 = vld [vmem:[%s8395_s12 + $0x704] sm:$0xf]  ;;  %v6259_v14 = vld [vmem:[%s8395_s12 + $0x8f0] sm:$0xf0]  ;;  %v5894_v28 = vor.u32 %v7502_v5, %v5891_v8 }
 0x1a8   : > { %4043 = vmatpush.bf16.msrb.mxu1 %v5798_v47  ;;  %4056 = vmatpush.bf16.msrb.mxu2 %v5926_v49  ;;  %v7594_v13 = vld [vmem:[%s8395_s12 + $0x8e4] sm:$0xf]  ;;  %v6387_v17 = vld [vmem:[%s8395_s12 + $0x9f0] sm:$0xf0]  ;;  %v6022_v38 = vor.u32 %v7534_v9, %v6019_v10 }
 0x1a9   : > { %4069 = vmatpush.bf16.msrb.mxu3 %v6054_v55  ;;  %v7626_v15 = vld [vmem:[%s8395_s12 + $0x9e4] sm:$0xf]  ;;  %v6515_v19 = vld [vmem:[%s8395_s12 + $0xaf0] sm:$0xf0]  ;;  %v6262_v40 = vor.u32 %v7594_v13, %v6259_v14  ;;  %v3802_v56 = vpop.f32.mrf.mxu2 }
 0x1aa   : > { %4031 = vmatpush.bf16.msrb.mxu0 %v5654_v62  ;;  %v7658_v18 = vld [vmem:[%s8395_s12 + $0xae4] sm:$0xf]  ;;  %v6643_v31 = vld [vmem:[%s8395_s12 + $0xbf0] sm:$0xf0]  ;;  %v6390_v41 = vor.u32 %v7626_v15, %v6387_v17  ;;  %v3815_v58 = vpop.f32.mrf.mxu3 }
 0x1ab   : > { %v7690_v30 = vld [vmem:[%s8395_s12 + $0xbe4] sm:$0xf]  ;;  %v6518_v43 = vor.u32 %v7658_v18, %v6515_v19  ;;  %v6243_v47 = vld [vmem:[%s8395_s12 + $0x8d0] sm:$0xf0] }
 0x1ac   : > { %4044 = vmatpush.bf16.msrb.mxu1 %v5782_v1  ;;  %4057 = vmatpush.bf16.msrb.mxu2 %v5910_v2  ;;  %v7590_v44 = vld [vmem:[%s8395_s12 + $0x8c4] sm:$0xf]  ;;  %v6646_v50 = vor.u32 %v7690_v30, %v6643_v31  ;;  %v6371_v51 = vld [vmem:[%s8395_s12 + $0x9d0] sm:$0xf0] }
 0x1ad   : > { %4070 = vmatpush.bf16.msrb.mxu3 %v6038_v7  ;;  %v7622_v49 = vld [vmem:[%s8395_s12 + $0x9c4] sm:$0xf]  ;;  %v6499_v53 = vld [vmem:[%s8395_s12 + $0xad0] sm:$0xf0]  ;;  %v6246_v57 = vor.u32 %v7590_v44, %v6243_v47 }
 0x1ae   : > { %4032 = vmatpush.bf16.msrb.mxu0 %v5638_v16  ;;  %v7654_v52 = vld [vmem:[%s8395_s12 + $0xac4] sm:$0xf]  ;;  %v6627_v55 = vld [vmem:[%s8395_s12 + $0xbd0] sm:$0xf0]  ;;  %v6374_v59 = vor.u32 %v7622_v49, %v6371_v51  ;;  %v3826_v19 = vpop.f32.mrf.mxu0 }
 0x1af   : > { %v7686_v54 = vld [vmem:[%s8395_s12 + $0xbc4] sm:$0xf]  ;;  %v6502_v60 = vor.u32 %v7654_v52, %v6499_v53  ;;  %v6227_v62 = vld [vmem:[%s8395_s12 + $0x8b0] sm:$0xf0]  ;;  %v3827_v36 = vadd.f32 %v3826_v19, %v8884_v20 }
 0x1b0   : > { %4045 = vmatpush.bf16.msrb.mxu1 %v5766_v25  ;;  %4058 = vmatpush.bf16.msrb.mxu2 %v5894_v28  ;;  %v7586_v61 = vld [vmem:[%s8395_s12 + $0x8a4] sm:$0xf]  ;;  %v6630_v0 = vor.u32 %v7686_v54, %v6627_v55  ;;  %v6355_v1 = vld [vmem:[%s8395_s12 + $0x9b0] sm:$0xf0] }
 0x1b1   : > { %4071 = vmatpush.bf16.msrb.mxu3 %v6022_v38  ;;  %v7618_v63 = vld [vmem:[%s8395_s12 + $0x9a4] sm:$0xf]  ;;  %v6483_v3 = vld [vmem:[%s8395_s12 + $0xab0] sm:$0xf0]  ;;  %4033 = vmatmul.bf16.vlgmr.msrb.gmra.mxu0 %v8599_v45  ;;  %v6230_v6 = vor.u32 %v7586_v61, %v6227_v62  ;;  %v3839_v38 = vpop.f32.mrf.mxu1 }
 0x1b2   : > { %4077 = vmatpush.bf16.msra.mxu0 %v6262_v40  ;;  %v7650_v2 = vld [vmem:[%s8395_s12 + $0xaa4] sm:$0xf]  ;;  %v6611_v5 = vld [vmem:[%s8395_s12 + $0xbb0] sm:$0xf0]  ;;  %v6358_v7 = vor.u32 %v7618_v63, %v6355_v1 }
 0x1b3   : > { %4059 = vmatmul.bf16.vlgmr.msrb.gmra.mxu2 %v8595_v42  ;;  %v7682_v4 = vld [vmem:[%s8395_s12 + $0xba4] sm:$0xf]  ;;  %4046 = vmatmul.bf16.vlgmr.msrb.gmra.mxu1 %v8603_v48  ;;  %v6486_v8 = vor.u32 %v7650_v2, %v6483_v3  ;;  %v6211_v10 = vld [vmem:[%s8395_s12 + $0x890] sm:$0xf0] }
 0x1b4   : > { %4090 = vmatpush.bf16.msra.mxu1 %v6390_v41  ;;  %4103 = vmatpush.bf16.msra.mxu2 %v6518_v43  ;;  %v7582_v9 = vld [vmem:[%s8395_s12 + $0x884] sm:$0xf]  ;;  %v6614_v12 = vor.u32 %v7682_v4, %v6611_v5  ;;  %v6339_v13 = vld [vmem:[%s8395_s12 + $0x990] sm:$0xf0] }
 0x1b5   : > { %4116 = vmatpush.bf16.msra.mxu3 %v6646_v50  ;;  %v7614_v11 = vld [vmem:[%s8395_s12 + $0x984] sm:$0xf]  ;;  %v6467_v15 = vld [vmem:[%s8395_s12 + $0xa90] sm:$0xf0]  ;;  %v6214_v18 = vor.u32 %v7582_v9, %v6211_v10  ;;  %v3840_v50 = vadd.f32 %v3839_v38, %v3827_v36 }
 0x1b6   : > { %4072 = vmatmul.bf16.vlgmr.msrb.gmra.mxu3 %v8601_v46  ;;  %4078 = vmatpush.bf16.msra.mxu0 %v6246_v57  ;;  %v7646_v14 = vld [vmem:[%s8395_s12 + $0xa84] sm:$0xf]  ;;  %v6595_v17 = vld [vmem:[%s8395_s12 + $0xb90] sm:$0xf0]  ;;  %v6342_v21 = vor.u32 %v7614_v11, %v6339_v13  ;;  %v3852_v56 = vpop.f32.mrf.mxu2  ;;  %v3828_v3 = vpop.f32.mrf.mxu0 }
 0x1b7   : > { %v7678_v16 = vld [vmem:[%s8395_s12 + $0xb84] sm:$0xf]  ;;  %v6470_v25 = vor.u32 %v7646_v14, %v6467_v15  ;;  %v6195_v30 = vld [vmem:[%s8395_s12 + $0x870] sm:$0xf0]  ;;  %v3853_v61 = vadd.f32 %v3852_v56, %v3840_v50 }
 0x1b8   : > { %4091 = vmatpush.bf16.msra.mxu1 %v6374_v59  ;;  %4104 = vmatpush.bf16.msra.mxu2 %v6502_v60  ;;  %v7578_v28 = vld [vmem:[%s8395_s12 + $0x864] sm:$0xf]  ;;  %v6598_v40 = vor.u32 %v7678_v16, %v6595_v17  ;;  %v6323_v41 = vld [vmem:[%s8395_s12 + $0x970] sm:$0xf0] }
 0x1b9   : > { %4117 = vmatpush.bf16.msra.mxu3 %v6630_v0  ;;  %v7610_v31 = vld [vmem:[%s8395_s12 + $0x964] sm:$0xf]  ;;  %v6451_v44 = vld [vmem:[%s8395_s12 + $0xa70] sm:$0xf0]  ;;  %v6198_v51 = vor.u32 %v7578_v28, %v6195_v30  ;;  %v3865_v62 = vpop.f32.mrf.mxu3  ;;  %v3841_v9 = vpop.f32.mrf.mxu1 }
 0x1ba   : > { %4079 = vmatpush.bf16.msra.mxu0 %v6230_v6  ;;  %v7642_v43 = vld [vmem:[%s8395_s12 + $0xa64] sm:$0xf]  ;;  %v6579_v49 = vld [vmem:[%s8395_s12 + $0xb70] sm:$0xf0]  ;;  %v6326_v20 = vor.u32 %v7610_v31, %v6323_v41  ;;  %v8933_v2 = vadd.f32 %v3865_v62, %v3853_v61 }
 0x1bb   : > { %v7674_v47 = vld [vmem:[%s8395_s12 + $0xb64] sm:$0xf]  ;;  %v6454_v52 = vor.u32 %v7642_v43, %v6451_v44  ;;  %v6179_v54 = vld [vmem:[%s8395_s12 + $0x850] sm:$0xf0] }
 0x1bc   : > { %4092 = vmatpush.bf16.msra.mxu1 %v6358_v7  ;;  %4105 = vmatpush.bf16.msra.mxu2 %v6486_v8  ;;  %v7574_v53 = vld [vmem:[%s8395_s12 + $0x844] sm:$0xf]  ;;  %v6582_v57 = vor.u32 %v7674_v47, %v6579_v49  ;;  %v6307_v58 = vld [vmem:[%s8395_s12 + $0x950] sm:$0xf0] }
 0x1bd   : > { %4118 = vmatpush.bf16.msra.mxu3 %v6614_v12  ;;  %v7606_v55 = vld [vmem:[%s8395_s12 + $0x944] sm:$0xf]  ;;  %v6435_v60 = vld [vmem:[%s8395_s12 + $0xa50] sm:$0xf0]  ;;  %v6182_v1 = vor.u32 %v7574_v53, %v6179_v54 }
 0x1be   : > { %4080 = vmatpush.bf16.msra.mxu0 %v6214_v18  ;;  %v7638_v59 = vld [vmem:[%s8395_s12 + $0xa44] sm:$0xf]  ;;  %v6563_v0 = vld [vmem:[%s8395_s12 + $0xb50] sm:$0xf0]  ;;  %v6310_v4 = vor.u32 %v7606_v55, %v6307_v58  ;;  %v3854_v31 = vpop.f32.mrf.mxu2 }
 0x1bf   : > { %v7670_v63 = vld [vmem:[%s8395_s12 + $0xb44] sm:$0xf]  ;;  %v6438_v5 = vor.u32 %v7638_v59, %v6435_v60  ;;  %v6163_v7 = vld [vmem:[%s8395_s12 + $0x830] sm:$0xf0] }
 0x1c0   : > { %4093 = vmatpush.bf16.msra.mxu1 %v6342_v21  ;;  %4106 = vmatpush.bf16.msra.mxu2 %v6470_v25  ;;  %v7570_v6 = vld [vmem:[%s8395_s12 + $0x824] sm:$0xf]  ;;  %v6566_v10 = vor.u32 %v7670_v63, %v6563_v0  ;;  %v6291_v11 = vld [vmem:[%s8395_s12 + $0x930] sm:$0xf0] }
 0x1c1   : > { %4119 = vmatpush.bf16.msra.mxu3 %v6598_v40  ;;  %v7602_v8 = vld [vmem:[%s8395_s12 + $0x924] sm:$0xf]  ;;  %v6419_v13 = vld [vmem:[%s8395_s12 + $0xa30] sm:$0xf0]  ;;  %v6166_v16 = vor.u32 %v7570_v6, %v6163_v7  ;;  %v3867_v43 = vpop.f32.mrf.mxu3 }
 0x1c2   : > { %4081 = vmatpush.bf16.msra.mxu0 %v6198_v51  ;;  %v7634_v12 = vld [vmem:[%s8395_s12 + $0xa24] sm:$0xf]  ;;  %v6547_v15 = vld [vmem:[%s8395_s12 + $0xb30] sm:$0xf0]  ;;  %v6294_v19 = vor.u32 %v7602_v8, %v6291_v11 }
 0x1c3   : > { %v7666_v14 = vld [vmem:[%s8395_s12 + $0xb24] sm:$0xf]  ;;  %v6147_v18 = vld [vmem:[%s8395_s12 + $0x810] sm:$0xf0]  ;;  %v6422_v21 = vor.u32 %v7634_v12, %v6419_v13 }
 0x1c4   : > { %4094 = vmatpush.bf16.msra.mxu1 %v6326_v20  ;;  %4107 = vmatpush.bf16.msra.mxu2 %v6454_v52  ;;  %v7566_v17 = vld [vmem:[%s8395_s12 + $0x804] sm:$0xf]  ;;  %v6275_v28 = vld [vmem:[%s8395_s12 + $0x910] sm:$0xf0]  ;;  %v6550_v36 = vor.u32 %v7666_v14, %v6547_v15 }
 0x1c5   : > { %4120 = vmatpush.bf16.msra.mxu3 %v6582_v57  ;;  %v7598_v25 = vld [vmem:[%s8395_s12 + $0x904] sm:$0xf]  ;;  %v6403_v38 = vld [vmem:[%s8395_s12 + $0xa10] sm:$0xf0]  ;;  %v6150_v50 = vor.u32 %v7566_v17, %v6147_v18 }
 0x1c6   : > { %4082 = vmatpush.bf16.msra.mxu0 %v6182_v1  ;;  %v7630_v30 = vld [vmem:[%s8395_s12 + $0xa04] sm:$0xf]  ;;  %v6531_v41 = vld [vmem:[%s8395_s12 + $0xb10] sm:$0xf0]  ;;  %v6278_v53 = vor.u32 %v7598_v25, %v6275_v28 }
 0x1c7   : > { %v7662_v40 = vld [vmem:[%s8395_s12 + $0xb04] sm:$0xf]  ;;  %v6771_v47 = vld [vmem:[%s8395_s12 + $0xcf0] sm:$0xf0]  ;;  %v6406_v54 = vor.u32 %v7630_v30, %v6403_v38 }
 0x1c8   : > { %4095 = vmatpush.bf16.msra.mxu1 %v6310_v4  ;;  %4108 = vmatpush.bf16.msra.mxu2 %v6438_v5  ;;  %v7722_v44 = vld [vmem:[%s8395_s12 + $0xce4] sm:$0xf]  ;;  %v6899_v51 = vld [vmem:[%s8395_s12 + $0xdf0] sm:$0xf0]  ;;  %v6534_v57 = vor.u32 %v7662_v40, %v6531_v41 }
 0x1c9   : > { %4121 = vmatpush.bf16.msra.mxu3 %v6566_v10  ;;  %v7754_v49 = vld [vmem:[%s8395_s12 + $0xde4] sm:$0xf]  ;;  %v7027_v52 = vld [vmem:[%s8395_s12 + $0xef0] sm:$0xf0]  ;;  %v6774_v58 = vor.u32 %v7722_v44, %v6771_v47 }
 0x1ca   : > { %4083 = vmatpush.bf16.msra.mxu0 %v6166_v16  ;;  %v7786_v20 = vld [vmem:[%s8395_s12 + $0xee4] sm:$0xf]  ;;  %v7155_v56 = vld [vmem:[%s8395_s12 + $0xff0] sm:$0xf0]  ;;  %v6902_v59 = vor.u32 %v7754_v49, %v6899_v51 }
 0x1cb   : > { %v7818_v55 = vld [vmem:[%s8395_s12 + $0xfe4] sm:$0xf]  ;;  %v7030_v60 = vor.u32 %v7786_v20, %v7027_v52  ;;  %v6755_v62 = vld [vmem:[%s8395_s12 + $0xcd0] sm:$0xf0] }
 0x1cc   : > { %4096 = vmatpush.bf16.msra.mxu1 %v6294_v19  ;;  %4109 = vmatpush.bf16.msra.mxu2 %v6422_v21  ;;  %v7718_v61 = vld [vmem:[%s8395_s12 + $0xcc4] sm:$0xf]  ;;  %v7158_v0 = vor.u32 %v7818_v55, %v7155_v56  ;;  %v6883_v1 = vld [vmem:[%s8395_s12 + $0xdd0] sm:$0xf0] }
 0x1cd   : > { %4122 = vmatpush.bf16.msra.mxu3 %v6550_v36  ;;  %v7750_v63 = vld [vmem:[%s8395_s12 + $0xdc4] sm:$0xf]  ;;  %v7011_v4 = vld [vmem:[%s8395_s12 + $0xed0] sm:$0xf0]  ;;  %v6758_v7 = vor.u32 %v7718_v61, %v6755_v62 }
 0x1ce   : > { %4084 = vmatpush.bf16.msra.mxu0 %v6150_v50  ;;  %v7782_v3 = vld [vmem:[%s8395_s12 + $0xec4] sm:$0xf]  ;;  %v7139_v6 = vld [vmem:[%s8395_s12 + $0xfd0] sm:$0xf0]  ;;  %v6886_v8 = vor.u32 %v7750_v63, %v6883_v1  ;;  %v3878_v43 = vpop.f32.mrf.mxu0 }
 0x1cf   : > { %v7814_v5 = vld [vmem:[%s8395_s12 + $0xfc4] sm:$0xf]  ;;  %v7014_v9 = vor.u32 %v7782_v3, %v7011_v4  ;;  %v6739_v11 = vld [vmem:[%s8395_s12 + $0xcb0] sm:$0xf0]  ;;  %v3879_v49 = vadd.f32 %v3878_v43, %v8933_v2 }
 0x1d0   : > { %4097 = vmatpush.bf16.msra.mxu1 %v6278_v53  ;;  %4110 = vmatpush.bf16.msra.mxu2 %v6406_v54  ;;  %v7714_v10 = vld [vmem:[%s8395_s12 + $0xca4] sm:$0xf]  ;;  %v7142_v13 = vor.u32 %v7814_v5, %v7139_v6  ;;  %v6867_v14 = vld [vmem:[%s8395_s12 + $0xdb0] sm:$0xf0]  ;;  %v3891_v51 = vpop.f32.mrf.mxu1 }
 0x1d1   : > { %4123 = vmatpush.bf16.msra.mxu3 %v6534_v57  ;;  %v7746_v12 = vld [vmem:[%s8395_s12 + $0xda4] sm:$0xf]  ;;  %4085 = vmatmul.bf16.vlgmr.msra.gmra.mxu0 %v8668_v29  ;;  %v6995_v16 = vld [vmem:[%s8395_s12 + $0xeb0] sm:$0xf0]  ;;  %v6742_v19 = vor.u32 %v7714_v10, %v6739_v11  ;;  %v3892_v57 = vadd.f32 %v3891_v51, %v3879_v49 }
 0x1d2   : > { %4129 = vmatpush.bf16.msrb.mxu0 %v6774_v58  ;;  %v7778_v15 = vld [vmem:[%s8395_s12 + $0xea4] sm:$0xf]  ;;  %v7123_v18 = vld [vmem:[%s8395_s12 + $0xfb0] sm:$0xf0]  ;;  %v6870_v21 = vor.u32 %v7746_v12, %v6867_v14 }
 0x1d3   : > { %4111 = vmatmul.bf16.vlgmr.msra.gmra.mxu2 %v8673_v33  ;;  %4098 = vmatmul.bf16.vlgmr.msra.gmra.mxu1 %v8675_v34  ;;  %v7810_v17 = vld [vmem:[%s8395_s12 + $0xfa4] sm:$0xf]  ;;  %v6998_v25 = vor.u32 %v7778_v15, %v6995_v16  ;;  %v6723_v30 = vld [vmem:[%s8395_s12 + $0xc90] sm:$0xf0] }
 0x1d4   : > { %4142 = vmatpush.bf16.msrb.mxu1 %v6902_v59  ;;  %4155 = vmatpush.bf16.msrb.mxu2 %v7030_v60  ;;  %v7710_v28 = vld [vmem:[%s8395_s12 + $0xc84] sm:$0xf]  ;;  %v7126_v36 = vor.u32 %v7810_v17, %v7123_v18  ;;  %v6851_v38 = vld [vmem:[%s8395_s12 + $0xd90] sm:$0xf0] }
 0x1d5   : > { %4168 = vmatpush.bf16.msrb.mxu3 %v7158_v0  ;;  %v7742_v31 = vld [vmem:[%s8395_s12 + $0xd84] sm:$0xf]  ;;  %v6979_v41 = vld [vmem:[%s8395_s12 + $0xe90] sm:$0xf0]  ;;  %v6726_v50 = vor.u32 %v7710_v28, %v6723_v30 }
 0x1d6   : > { %4124 = vmatmul.bf16.vlgmr.msra.gmra.mxu3 %v8679_v37  ;;  %4130 = vmatpush.bf16.msrb.mxu0 %v6758_v7  ;;  %v7774_v40 = vld [vmem:[%s8395_s12 + $0xe84] sm:$0xf]  ;;  %v7107_v47 = vld [vmem:[%s8395_s12 + $0xf90] sm:$0xf0]  ;;  %v6854_v20 = vor.u32 %v7742_v31, %v6851_v38  ;;  %v3904_v6 = vpop.f32.mrf.mxu2  ;;  %v3880_v14 = vpop.f32.mrf.mxu0 }
 0x1d7   : > { %v7806_v44 = vld [vmem:[%s8395_s12 + $0xf84] sm:$0xf]  ;;  %v6982_v52 = vor.u32 %v7774_v40, %v6979_v41  ;;  %v6707_v54 = vld [vmem:[%s8395_s12 + $0xc70] sm:$0xf0]  ;;  %v3905_v10 = vadd.f32 %v3904_v6, %v3892_v57  ;;  %v7369_v14 = vld [vmem:[%s8395_s12 + $0x1d4] sm:$0xf0] }
 0x1d8   : > { %4143 = vmatpush.bf16.msrb.mxu1 %v6886_v8  ;;  %4156 = vmatpush.bf16.msrb.mxu2 %v7014_v9  ;;  %v7706_v53 = vld [vmem:[%s8395_s12 + $0xc64] sm:$0xf]  ;;  %v7110_v56 = vor.u32 %v7806_v44, %v7107_v47  ;;  %v6835_v58 = vld [vmem:[%s8395_s12 + $0xd70] sm:$0xf0]  ;;  %v3893_v16 = vpop.f32.mrf.mxu1 }
 0x1d9   : > { %4169 = vmatpush.bf16.msrb.mxu3 %v7142_v13  ;;  %v7738_v55 = vld [vmem:[%s8395_s12 + $0xd64] sm:$0xf]  ;;  %v6963_v2 = vld [vmem:[%s8395_s12 + $0xe70] sm:$0xf0]  ;;  %v6710_v62 = vor.u32 %v7706_v53, %v6707_v54  ;;  %v3917_v11 = vpop.f32.mrf.mxu3  ;;  %v7401_v16 = vld [vmem:[%s8395_s12 + $0x2d4] sm:$0xf0] }
 0x1da   : > { %4131 = vmatpush.bf16.msrb.mxu0 %v6742_v19  ;;  %v7770_v59 = vld [vmem:[%s8395_s12 + $0xe64] sm:$0xf]  ;;  %v7091_v61 = vld [vmem:[%s8395_s12 + $0xf70] sm:$0xf0]  ;;  %v6838_v63 = vor.u32 %v7738_v55, %v6835_v58  ;;  %v9004_v17 = vadd.f32 %v3917_v11, %v3905_v10  ;;  %v5241_v58 = vld [vmem:[%s8395_s12 + $0xe8] sm:$0xf] }
 0x1db   : > { %v7802_v60 = vld [vmem:[%s8395_s12 + $0xf64] sm:$0xf]  ;;  %v6966_v0 = vor.u32 %v7770_v59, %v6963_v2  ;;  %v6691_v3 = vld [vmem:[%s8395_s12 + $0xc50] sm:$0xf0]  ;;  %v7341_v59 = vld [vmem:[%s8395_s12 + $0xf4] sm:$0xf0] }
 0x1dc   : > { %4144 = vmatpush.bf16.msrb.mxu1 %v6870_v21  ;;  %4157 = vmatpush.bf16.msrb.mxu2 %v6998_v25  ;;  %v7702_v1 = vld [vmem:[%s8395_s12 + $0xc44] sm:$0xf]  ;;  %v7094_v5 = vor.u32 %v7802_v60, %v7091_v61  ;;  %v6819_v7 = vld [vmem:[%s8395_s12 + $0xd50] sm:$0xf0]  ;;  %v5369_v2 = vld [vmem:[%s8395_s12 + $0x1e8] sm:$0xf] }
 0x1dd   : > { %4170 = vmatpush.bf16.msrb.mxu3 %v7126_v36  ;;  %v7734_v4 = vld [vmem:[%s8395_s12 + $0xd44] sm:$0xf]  ;;  %v6947_v9 = vld [vmem:[%s8395_s12 + $0xe50] sm:$0xf0]  ;;  %v6694_v15 = vor.u32 %v7702_v1, %v6691_v3  ;;  %v5225_v10 = vld [vmem:[%s8395_s12 + $0xc8] sm:$0xf] }
 0x1de   : > { %4132 = vmatpush.bf16.msrb.mxu0 %v6726_v50  ;;  %v7766_v8 = vld [vmem:[%s8395_s12 + $0xe44] sm:$0xf]  ;;  %v7075_v13 = vld [vmem:[%s8395_s12 + $0xf50] sm:$0xf0]  ;;  %v6822_v18 = vor.u32 %v7734_v4, %v6819_v7  ;;  %v3906_v57 = vpop.f32.mrf.mxu2  ;;  %v5625_v4 = vld [vmem:[%s8395_s12 + $0x3e8] sm:$0xf]  ;;  %v5242_v7 = vor.u32 %v7341_v59, %v5241_v58 }
 0x1df   : > { %v7798_v12 = vld [vmem:[%s8395_s12 + $0xf44] sm:$0xf]  ;;  %v6950_v19 = vor.u32 %v7766_v8, %v6947_v9  ;;  %v6675_v25 = vld [vmem:[%s8395_s12 + $0xc30] sm:$0xf0]  ;;  %v7337_v11 = vld [vmem:[%s8395_s12 + $0xd4] sm:$0xf0] }
 0x1e0   : > { %4145 = vmatpush.bf16.msrb.mxu1 %v6854_v20  ;;  %4158 = vmatpush.bf16.msrb.mxu2 %v6982_v52  ;;  %v7698_v21 = vld [vmem:[%s8395_s12 + $0xc24] sm:$0xf]  ;;  %v7078_v30 = vor.u32 %v7798_v12, %v7075_v13  ;;  %v6803_v31 = vld [vmem:[%s8395_s12 + $0xd30] sm:$0xf0]  ;;  %v5353_v12 = vld [vmem:[%s8395_s12 + $0x1c8] sm:$0xf] }
 0x1e1   : > { %4171 = vmatpush.bf16.msrb.mxu3 %v7110_v56  ;;  %v7730_v28 = vld [vmem:[%s8395_s12 + $0xd24] sm:$0xf]  ;;  %v6931_v38 = vld [vmem:[%s8395_s12 + $0xe30] sm:$0xf0]  ;;  %v6678_v43 = vor.u32 %v7698_v21, %v6675_v25  ;;  %v3919_v60 = vpop.f32.mrf.mxu3  ;;  %v5226_v21 = vor.u32 %v7337_v11, %v5225_v10  ;;  %v5354_v25 = vor.u32 %v7369_v14, %v5353_v12  ;;  %v7393_v57 = vld [vmem:[%s8395_s12 + $0x294] sm:$0xf0] }
 0x1e2   : > { %4133 = vmatpush.bf16.msrb.mxu0 %v6710_v62  ;;  %v7762_v36 = vld [vmem:[%s8395_s12 + $0xe24] sm:$0xf]  ;;  %v7059_v41 = vld [vmem:[%s8395_s12 + $0xf30] sm:$0xf0]  ;;  %v6806_v49 = vor.u32 %v7730_v28, %v6803_v31  ;;  %v7373_v62 = vld [vmem:[%s8395_s12 + $0x1f4] sm:$0xf0] }
 0x1e3   : > { %v7794_v40 = vld [vmem:[%s8395_s12 + $0xf24] sm:$0xf]  ;;  %v6659_v47 = vld [vmem:[%s8395_s12 + $0xc10] sm:$0xf0]  ;;  %v6934_v50 = vor.u32 %v7762_v36, %v6931_v38  ;;  %v5370_v8 = vor.u32 %v7373_v62, %v5369_v2  ;;  %v7333_v31 = vld [vmem:[%s8395_s12 + $0xb4] sm:$0xf0] }
 0x1e4   : > { %4146 = vmatpush.bf16.msrb.mxu1 %v6838_v63  ;;  %4159 = vmatpush.bf16.msrb.mxu2 %v6966_v0  ;;  %v7694_v44 = vld [vmem:[%s8395_s12 + $0xc04] sm:$0xf]  ;;  %v6787_v20 = vld [vmem:[%s8395_s12 + $0xd10] sm:$0xf0]  ;;  %v7062_v53 = vor.u32 %v7794_v40, %v7059_v41  ;;  %v5497_v63 = vld [vmem:[%s8395_s12 + $0x2e8] sm:$0xf] }
 0x1e5   : > { %4172 = vmatpush.bf16.msrb.mxu3 %v7094_v5  ;;  %v7726_v51 = vld [vmem:[%s8395_s12 + $0xd04] sm:$0xf]  ;;  %v6915_v54 = vld [vmem:[%s8395_s12 + $0xe10] sm:$0xf0]  ;;  %v6662_v61 = vor.u32 %v7694_v44, %v6659_v47  ;;  %v7405_v0 = vld [vmem:[%s8395_s12 + $0x2f4] sm:$0xf0] }
 0x1e6   : > { %4134 = vmatpush.bf16.msrb.mxu0 %v6694_v15  ;;  %v7758_v52 = vld [vmem:[%s8395_s12 + $0xe04] sm:$0xf]  ;;  %v7043_v56 = vld [vmem:[%s8395_s12 + $0xf10] sm:$0xf0]  ;;  %v6790_v1 = vor.u32 %v7726_v51, %v6787_v20  ;;  %v7437_v5 = vld [vmem:[%s8395_s12 + $0x3f4] sm:$0xf0]  ;;  %v5498_v9 = vor.u32 %v7405_v0, %v5497_v63 }
 0x1e7   : > { %v7790_v55 = vld [vmem:[%s8395_s12 + $0xf04] sm:$0xf]  ;;  %v6918_v3 = vor.u32 %v7758_v52, %v6915_v54  ;;  %v5626_v13 = vor.u32 %v7437_v5, %v5625_v4  ;;  %v5481_v15 = vld [vmem:[%s8395_s12 + $0x2c8] sm:$0xf]  ;;  %v7365_v40 = vld [vmem:[%s8395_s12 + $0x1b4] sm:$0xf0] }
 0x1e8   : > { %4147 = vmatpush.bf16.msrb.mxu1 %v6822_v18  ;;  %4160 = vmatpush.bf16.msrb.mxu2 %v6950_v19  ;;  %v7046_v6 = vor.u32 %v7790_v55, %v7043_v56  ;;  %v5609_v18 = vld [vmem:[%s8395_s12 + $0x3c8] sm:$0xf]  ;;  %v7433_v19 = vld [vmem:[%s8395_s12 + $0x3d4] sm:$0xf0]  ;;  %v5482_v28 = vor.u32 %v7401_v16, %v5481_v15 }
 0x1e9   : > { %4173 = vmatpush.bf16.msrb.mxu3 %v7078_v30  ;;  %v5209_v30 = vld [vmem:[%s8395_s12 + $0xa8] sm:$0xf]  ;;  %v5610_v38 = vor.u32 %v7433_v19, %v5609_v18  ;;  %v7429_v47 = vld [vmem:[%s8395_s12 + $0x3b4] sm:$0xf0] }
 0x1ea   : > { %4135 = vmatpush.bf16.msrb.mxu0 %v6678_v43  ;;  %v5337_v36 = vld [vmem:[%s8395_s12 + $0x1a8] sm:$0xf]  ;;  %v7397_v43 = vld [vmem:[%s8395_s12 + $0x2b4] sm:$0xf0] }
 0x1eb   : > { %v5465_v41 = vld [vmem:[%s8395_s12 + $0x2a8] sm:$0xf]  ;;  %v7329_v52 = vld [vmem:[%s8395_s12 + $0x94] sm:$0xf0] }
 0x1ec   : > { %4148 = vmatpush.bf16.msrb.mxu1 %v6806_v49  ;;  %4161 = vmatpush.bf16.msrb.mxu2 %v6934_v50  ;;  %v5593_v44 = vld [vmem:[%s8395_s12 + $0x3a8] sm:$0xf]  ;;  %v5210_v49 = vor.u32 %v7333_v31, %v5209_v30  ;;  %v5338_v50 = vor.u32 %v7365_v40, %v5337_v36  ;;  %v5466_v51 = vor.u32 %v7397_v43, %v5465_v41  ;;  %v7361_v55 = vld [vmem:[%s8395_s12 + $0x194] sm:$0xf0] }
 0x1ed   : > { %4174 = vmatpush.bf16.msrb.mxu3 %v7062_v53  ;;  %v5193_v20 = vld [vmem:[%s8395_s12 + $0x88] sm:$0xf]  ;;  %v5594_v54 = vor.u32 %v7429_v47, %v5593_v44  ;;  %v7425_v2 = vld [vmem:[%s8395_s12 + $0x394] sm:$0xf0] }
 0x1ee   : > { %4136 = vmatpush.bf16.msrb.mxu0 %v6662_v61  ;;  %v5321_v53 = vld [vmem:[%s8395_s12 + $0x188] sm:$0xf]  ;;  %v3930_v58 = vpop.f32.mrf.mxu0  ;;  %v5194_v61 = vor.u32 %v7329_v52, %v5193_v20  ;;  %v7421_v10 = vld [vmem:[%s8395_s12 + $0x374] sm:$0xf0] }
 0x1ef   : > { %v5449_v56 = vld [vmem:[%s8395_s12 + $0x288] sm:$0xf]  ;;  %v3931_v60 = vadd.f32 %v3930_v58, %v9004_v17  ;;  %v5322_v63 = vor.u32 %v7361_v55, %v5321_v53  ;;  %v7389_v17 = vld [vmem:[%s8395_s12 + $0x274] sm:$0xf0] }
 0x1f0   : > { %4149 = vmatpush.bf16.msrb.mxu1 %v6790_v1  ;;  %4162 = vmatpush.bf16.msrb.mxu2 %v6918_v3  ;;  %v5577_v59 = vld [vmem:[%s8395_s12 + $0x388] sm:$0xf]  ;;  %v3943_v62 = vpop.f32.mrf.mxu1  ;;  %v5450_v0 = vor.u32 %v7393_v57, %v5449_v56  ;;  %v7325_v3 = vld [vmem:[%s8395_s12 + $0x74] sm:$0xf0] }
 0x1f1   : > { %4175 = vmatpush.bf16.msrb.mxu3 %v7046_v6  ;;  %4137 = vmatmul.bf16.vlgmr.msrb.gmra.mxu0 %v8744_v27  ;;  %v5177_v1 = vld [vmem:[%s8395_s12 + $0x68] sm:$0xf]  ;;  %v5578_v5 = vor.u32 %v7425_v2, %v5577_v59  ;;  %v3944_v6 = vadd.f32 %v3943_v62, %v3931_v60  ;;  %v7321_v15 = vld [vmem:[%s8395_s12 + $0x54] sm:$0xf0] }
 0x1f2   : > { %4181 = vmatpush.bf16.msra.mxu0 %v5242_v7  ;;  %v5305_v4 = vld [vmem:[%s8395_s12 + $0x168] sm:$0xf]  ;;  %v7357_v7 = vld [vmem:[%s8395_s12 + $0x174] sm:$0xf0]  ;;  %v5178_v11 = vor.u32 %v7325_v3, %v5177_v1 }
 0x1f3   : > { %4163 = vmatmul.bf16.vlgmr.msrb.gmra.mxu2 %v8749_v32  ;;  %4150 = vmatmul.bf16.vlgmr.msrb.gmra.mxu1 %v8751_v35  ;;  %v5306_v12 = vor.u32 %v7357_v7, %v5305_v4  ;;  %v5161_v14 = vld [vmem:[%s8395_s12 + $0x48] sm:$0xf]  ;;  %v7349_v53 = vld [vmem:[%s8395_s12 + $0x134] sm:$0xf0] }
 0x1f4   : > { %4194 = vmatpush.bf16.msra.mxu1 %v5370_v8  ;;  %4207 = vmatpush.bf16.msra.mxu2 %v5498_v9  ;;  %v5433_v8 = vld [vmem:[%s8395_s12 + $0x268] sm:$0xf]  ;;  %v5162_v41 = vor.u32 %v7321_v15, %v5161_v14  ;;  %v7381_v55 = vld [vmem:[%s8395_s12 + $0x234] sm:$0xf0] }
 0x1f5   : > { %4220 = vmatpush.bf16.msra.mxu3 %v5626_v13  ;;  %v5561_v9 = vld [vmem:[%s8395_s12 + $0x368] sm:$0xf]  ;;  %v5434_v13 = vor.u32 %v7389_v17, %v5433_v8  ;;  %v7413_v57 = vld [vmem:[%s8395_s12 + $0x334] sm:$0xf0] }
 0x1f6   : > { %4176 = vmatmul.bf16.vlgmr.msrb.gmra.mxu3 %v8755_v39  ;;  %4182 = vmatpush.bf16.msra.mxu0 %v5226_v21  ;;  %v5289_v16 = vld [vmem:[%s8395_s12 + $0x148] sm:$0xf]  ;;  %v5562_v18 = vor.u32 %v7421_v10, %v5561_v9  ;;  %v3956_v19 = vpop.f32.mrf.mxu2  ;;  %v7353_v21 = vld [vmem:[%s8395_s12 + $0x154] sm:$0xf0]  ;;  %v3932_v40 = vpop.f32.mrf.mxu0 }
 0x1f7   : > { %v3957_v30 = vadd.f32 %v3956_v19, %v3944_v6  ;;  %v5545_v36 = vld [vmem:[%s8395_s12 + $0x348] sm:$0xf]  ;;  %v5290_v47 = vor.u32 %v7353_v21, %v5289_v16  ;;  %v7313_v2 = vld [vmem:[%s8395_s12 + $0x14] sm:$0xf0] }
 0x1f8   : > { %4195 = vmatpush.bf16.msra.mxu1 %v5354_v25  ;;  %4208 = vmatpush.bf16.msra.mxu2 %v5482_v28  ;;  %v5417_v25 = vld [vmem:[%s8395_s12 + $0x248] sm:$0xf]  ;;  %v7385_v28 = vld [vmem:[%s8395_s12 + $0x254] sm:$0xf0]  ;;  %v3945_v43 = vpop.f32.mrf.mxu1 }
 0x1f9   : > { %4221 = vmatpush.bf16.msra.mxu3 %v5610_v38  ;;  %v3969_v31 = vpop.f32.mrf.mxu3  ;;  %v7417_v38 = vld [vmem:[%s8395_s12 + $0x354] sm:$0xf0]  ;;  %v5273_v20 = vld [vmem:[%s8395_s12 + $0x128] sm:$0xf] }
 0x1fa   : > { %4183 = vmatpush.bf16.msra.mxu0 %v5210_v49  ;;  %v9075_v44 = vadd.f32 %v3969_v31, %v3957_v30  ;;  %v5418_v49 = vor.u32 %v7385_v28, %v5417_v25  ;;  %v5546_v52 = vor.u32 %v7417_v38, %v5545_v36  ;;  %v5529_v56 = vld [vmem:[%s8395_s12 + $0x328] sm:$0xf]  ;;  %v5274_v60 = vor.u32 %v7349_v53, %v5273_v20  ;;  %v7377_v3 = vld [vmem:[%s8395_s12 + $0x214] sm:$0xf0] }
 0x1fb   : > { %v5129_v59 = vld [vmem:[%s8395_s12 + $0x8] sm:$0xf]  ;;  %v5530_v1 = vor.u32 %v7413_v57, %v5529_v56  ;;  %v7469_v8 = vld [vmem:[%s8395_s12 + $0x4f4] sm:$0xf0] }
 0x1fc   : > { %4196 = vmatpush.bf16.msra.mxu1 %v5338_v50  ;;  %4209 = vmatpush.bf16.msra.mxu2 %v5466_v51  ;;  %v5145_v50 = vld [vmem:[%s8395_s12 + $0x28] sm:$0xf]  ;;  %v7317_v51 = vld [vmem:[%s8395_s12 + $0x34] sm:$0xf0]  ;;  %v5130_v10 = vor.u32 %v7313_v2, %v5129_v59 }
 0x1fd   : > { %4222 = vmatpush.bf16.msra.mxu3 %v5594_v54  ;;  %v5401_v54 = vld [vmem:[%s8395_s12 + $0x228] sm:$0xf]  ;;  %v5146_v58 = vor.u32 %v7317_v51, %v5145_v50  ;;  %v7465_v31 = vld [vmem:[%s8395_s12 + $0x4d4] sm:$0xf0] }
 0x1fe   : > { %4184 = vmatpush.bf16.msra.mxu0 %v5194_v61  ;;  %v5402_v61 = vor.u32 %v7381_v55, %v5401_v54  ;;  %v5257_v62 = vld [vmem:[%s8395_s12 + $0x108] sm:$0xf]  ;;  %v3958_v6 = vpop.f32.mrf.mxu2  ;;  %v7497_v40 = vld [vmem:[%s8395_s12 + $0x5d4] sm:$0xf0] }
 0x1ff   : > { %v5513_v4 = vld [vmem:[%s8395_s12 + $0x308] sm:$0xf]  ;;  %v7529_v43 = vld [vmem:[%s8395_s12 + $0x6d4] sm:$0xf0] }
 0x200   : > { %4197 = vmatpush.bf16.msra.mxu1 %v5322_v63  ;;  %4210 = vmatpush.bf16.msra.mxu2 %v5450_v0  ;;  %v7345_v63 = vld [vmem:[%s8395_s12 + $0x114] sm:$0xf0]  ;;  %v5385_v0 = vld [vmem:[%s8395_s12 + $0x208] sm:$0xf] }
 0x201   : > { %4223 = vmatpush.bf16.msra.mxu3 %v5578_v5  ;;  %v7409_v5 = vld [vmem:[%s8395_s12 + $0x314] sm:$0xf0]  ;;  %v5753_v7 = vld [vmem:[%s8395_s12 + $0x4e8] sm:$0xf]  ;;  %v3971_v9 = vpop.f32.mrf.mxu3  ;;  %v5258_v14 = vor.u32 %v7345_v63, %v5257_v62  ;;  %v5386_v15 = vor.u32 %v7377_v3, %v5385_v0  ;;  %v8000_v3 = vld [vmem:[%s8401_s27] sm:$0xf] }
 0x202   : > { %4185 = vmatpush.bf16.msra.mxu0 %v5178_v11  ;;  %v5881_v17 = vld [vmem:[%s8395_s12 + $0x5e8] sm:$0xf]  ;;  %v7501_v11 = vld [vmem:[%s8395_s12 + $0x5f4] sm:$0xf0]  ;;  %v5514_v19 = vor.u32 %v7409_v5, %v5513_v4  ;;  %v5754_v21 = vor.u32 %v7469_v8, %v5753_v7  ;;  %v1142_v4 = vperm.slane %v8000_v3, 1 }
 0x203   : > { %v6137_v16 = vld [vmem:[%s8395_s12 + $0x7e8] sm:$0xf]  ;;  %v5882_v25 = vor.u32 %v7501_v11, %v5881_v17  ;;  %v7461_v53 = vld [vmem:[%s8395_s12 + $0x4b4] sm:$0xf0] }
 0x204   : > { %4198 = vmatpush.bf16.msra.mxu1 %v5306_v12  ;;  %4211 = vmatpush.bf16.msra.mxu2 %v5434_v13  ;;  %v6009_v12 = vld [vmem:[%s8395_s12 + $0x6e8] sm:$0xf]  ;;  %v7533_v13 = vld [vmem:[%s8395_s12 + $0x6f4] sm:$0xf0] }
 0x205   : > { %4224 = vmatpush.bf16.msra.mxu3 %v5562_v18  ;;  %v7565_v18 = vld [vmem:[%s8395_s12 + $0x7f4] sm:$0xf0]  ;;  %v6010_v28 = vor.u32 %v7533_v13, %v6009_v12  ;;  %v5737_v30 = vld [vmem:[%s8395_s12 + $0x4c8] sm:$0xf] }
 0x206   : > { %4186 = vmatpush.bf16.msra.mxu0 %v5162_v41  ;;  %v5865_v36 = vld [vmem:[%s8395_s12 + $0x5c8] sm:$0xf]  ;;  %v6138_v38 = vor.u32 %v7565_v18, %v6137_v16  ;;  %v5738_v50 = vor.u32 %v7465_v31, %v5737_v30  ;;  %v7493_v56 = vld [vmem:[%s8395_s12 + $0x5b4] sm:$0xf0] }
 0x207   : > { %v5993_v41 = vld [vmem:[%s8395_s12 + $0x6c8] sm:$0xf]  ;;  %v5866_v51 = vor.u32 %v7497_v40, %v5865_v36  ;;  %v7557_v2 = vld [vmem:[%s8395_s12 + $0x7b4] sm:$0xf0] }
 0x208   : > { %4199 = vmatpush.bf16.msra.mxu1 %v5290_v47  ;;  %4212 = vmatpush.bf16.msra.mxu2 %v5418_v49  ;;  %v6121_v47 = vld [vmem:[%s8395_s12 + $0x7c8] sm:$0xf]  ;;  %v7561_v49 = vld [vmem:[%s8395_s12 + $0x7d4] sm:$0xf0]  ;;  %v5994_v20 = vor.u32 %v7529_v43, %v5993_v41 }
 0x209   : > { %4225 = vmatpush.bf16.msra.mxu3 %v5546_v52  ;;  %v5721_v52 = vld [vmem:[%s8395_s12 + $0x4a8] sm:$0xf]  ;;  %v6122_v55 = vor.u32 %v7561_v49, %v6121_v47  ;;  %v7457_v0 = vld [vmem:[%s8395_s12 + $0x494] sm:$0xf0] }
 0x20a   : > { %4187 = vmatpush.bf16.msra.mxu0 %v5146_v58  ;;  %v5849_v54 = vld [vmem:[%s8395_s12 + $0x5a8] sm:$0xf]  ;;  %v7525_v58 = vld [vmem:[%s8395_s12 + $0x6b4] sm:$0xf0] }
 0x20b   : > { %v5977_v57 = vld [vmem:[%s8395_s12 + $0x6a8] sm:$0xf]  ;;  %v5850_v62 = vor.u32 %v7493_v56, %v5849_v54  ;;  %v7489_v6 = vld [vmem:[%s8395_s12 + $0x594] sm:$0xf0] }
 0x20c   : > { %4200 = vmatpush.bf16.msra.mxu1 %v5274_v60  ;;  %4213 = vmatpush.bf16.msra.mxu2 %v5402_v61  ;;  %v6105_v59 = vld [vmem:[%s8395_s12 + $0x7a8] sm:$0xf]  ;;  %v5722_v60 = vor.u32 %v7461_v53, %v5721_v52  ;;  %v5978_v63 = vor.u32 %v7525_v58, %v5977_v57  ;;  %v7521_v8 = vld [vmem:[%s8395_s12 + $0x694] sm:$0xf0] }
 0x20d   : > { %4226 = vmatpush.bf16.msra.mxu3 %v5530_v1  ;;  %v5705_v61 = vld [vmem:[%s8395_s12 + $0x488] sm:$0xf]  ;;  %v6106_v5 = vor.u32 %v7557_v2, %v6105_v59  ;;  %v7553_v9 = vld [vmem:[%s8395_s12 + $0x794] sm:$0xf0] }
 0x20e   : > { %4188 = vmatpush.bf16.msra.mxu0 %v5130_v10  ;;  %v5833_v1 = vld [vmem:[%s8395_s12 + $0x588] sm:$0xf]  ;;  %v5706_v10 = vor.u32 %v7457_v0, %v5705_v61  ;;  %v3982_v11 = vpop.f32.mrf.mxu0  ;;  %v7517_v30 = vld [vmem:[%s8395_s12 + $0x674] sm:$0xf0] }
 0x20f   : > { %v5961_v7 = vld [vmem:[%s8395_s12 + $0x688] sm:$0xf]  ;;  %v5834_v12 = vor.u32 %v7489_v6, %v5833_v1  ;;  %v3983_v18 = vadd.f32 %v3982_v11, %v1142_v4  ;;  %v7549_v36 = vld [vmem:[%s8395_s12 + $0x774] sm:$0xf0] }
 0x210   : > { %4201 = vmatpush.bf16.msra.mxu1 %v5258_v14  ;;  %4214 = vmatpush.bf16.msra.mxu2 %v5386_v15  ;;  %v6089_v17 = vld [vmem:[%s8395_s12 + $0x788] sm:$0xf]  ;;  %v5962_v13 = vor.u32 %v7521_v8, %v5961_v7  ;;  %v7453_v15 = vld [vmem:[%s8395_s12 + $0x474] sm:$0xf0] }
 0x211   : > { %4227 = vmatpush.bf16.msra.mxu3 %v5514_v19  ;;  %4189 = vmatmul.bf16.vlgmr.msra.gmra.mxu0 %v8539_v23  ;;  %v5689_v14 = vld [vmem:[%s8395_s12 + $0x468] sm:$0xf]  ;;  %v3995_v19 = vpop.f32.mrf.mxu1  ;;  %v7449_v49 = vld [vmem:[%s8395_s12 + $0x454] sm:$0xf0] }
 0x212   : > { %4233 = vmatpush.bf16.msrb.mxu0 %v5754_v21  ;;  %v5817_v16 = vld [vmem:[%s8395_s12 + $0x568] sm:$0xf]  ;;  %v6090_v21 = vor.u32 %v7553_v9, %v6089_v17  ;;  %v5690_v40 = vor.u32 %v7453_v15, %v5689_v14  ;;  %v7481_v52 = vld [vmem:[%s8395_s12 + $0x554] sm:$0xf0] }
 0x213   : > { %4215 = vmatmul.bf16.vlgmr.msra.gmra.mxu2 %v8537_v22  ;;  %4202 = vmatmul.bf16.vlgmr.msra.gmra.mxu1 %v8543_v26  ;;  %v6073_v31 = vld [vmem:[%s8395_s12 + $0x768] sm:$0xf]  ;;  %v7513_v54 = vld [vmem:[%s8395_s12 + $0x654] sm:$0xf0] }
 0x214   : > { %4246 = vmatpush.bf16.msrb.mxu1 %v5882_v25  ;;  %4259 = vmatpush.bf16.msrb.mxu2 %v6010_v28  ;;  %v7485_v25 = vld [vmem:[%s8395_s12 + $0x574] sm:$0xf0]  ;;  %v5945_v28 = vld [vmem:[%s8395_s12 + $0x668] sm:$0xf] }
 0x215   : > { %4272 = vmatpush.bf16.msrb.mxu3 %v6138_v38  ;;  %v3996_v38 = vadd.f32 %v3995_v19, %v3983_v18  ;;  %v5818_v41 = vor.u32 %v7485_v25, %v5817_v16  ;;  %v5946_v43 = vor.u32 %v7517_v30, %v5945_v28  ;;  %v5673_v47 = vld [vmem:[%s8395_s12 + $0x448] sm:$0xf]  ;;  %v7545_v58 = vld [vmem:[%s8395_s12 + $0x754] sm:$0xf0] }
 0x216   : > { %4228 = vmatmul.bf16.vlgmr.msra.gmra.mxu3 %v8541_v24  ;;  %4234 = vmatpush.bf16.msrb.mxu0 %v5738_v50  ;;  %v5801_v50 = vld [vmem:[%s8395_s12 + $0x548] sm:$0xf]  ;;  %v5674_v59 = vor.u32 %v7449_v49, %v5673_v47  ;;  %v7445_v0 = vld [vmem:[%s8395_s12 + $0x434] sm:$0xf0] }
 0x217   : > { %v5929_v53 = vld [vmem:[%s8395_s12 + $0x648] sm:$0xf]  ;;  %v5802_v61 = vor.u32 %v7481_v52, %v5801_v50  ;;  %v7509_v7 = vld [vmem:[%s8395_s12 + $0x634] sm:$0xf0] }
 0x218   : > { %4247 = vmatpush.bf16.msrb.mxu1 %v5866_v51  ;;  %4260 = vmatpush.bf16.msrb.mxu2 %v5994_v20  ;;  %v4008_v51 = vpop.f32.mrf.mxu2  ;;  %v6074_v20 = vor.u32 %v7549_v36, %v6073_v31  ;;  %v6057_v57 = vld [vmem:[%s8395_s12 + $0x748] sm:$0xf]  ;;  %v7541_v17 = vld [vmem:[%s8395_s12 + $0x734] sm:$0xf0] }
 0x219   : > { %4273 = vmatpush.bf16.msrb.mxu3 %v6122_v55  ;;  %v4009_v55 = vadd.f32 %v4008_v51, %v3996_v38  ;;  %v4021_v56 = vpop.f32.mrf.mxu3  ;;  %v5785_v1 = vld [vmem:[%s8395_s12 + $0x528] sm:$0xf]  ;;  %v3997_v3 = vpop.f32.mrf.mxu1  ;;  %v6058_v4 = vor.u32 %v7545_v58, %v6057_v57  ;;  %v7441_v11 = vld [vmem:[%s8395_s12 + $0x414] sm:$0xf0] }
 0x21a   : > { %4235 = vmatpush.bf16.msrb.mxu0 %v5722_v60  ;;  %v3984_v60 = vpop.f32.mrf.mxu0  ;;  %v5913_v6 = vld [vmem:[%s8395_s12 + $0x628] sm:$0xf]  ;;  %v7473_v15 = vld [vmem:[%s8395_s12 + $0x514] sm:$0xf0] }
 0x21b   : > { %v9146_v2 = vadd.f32 %v4021_v56, %v4009_v55  ;;  %v6041_v8 = vld [vmem:[%s8395_s12 + $0x728] sm:$0xf]  ;;  %v7537_v28 = vld [vmem:[%s8395_s12 + $0x714] sm:$0xf0] }
 0x21c   : > { %4248 = vmatpush.bf16.msrb.mxu1 %v5850_v62  ;;  %4261 = vmatpush.bf16.msrb.mxu2 %v5978_v63  ;;  %v5930_v62 = vor.u32 %v7513_v54, %v5929_v53  ;;  %v5657_v63 = vld [vmem:[%s8395_s12 + $0x428] sm:$0xf]  ;;  %v6042_v19 = vor.u32 %v7541_v17, %v6041_v8  ;;  %v7597_v36 = vld [vmem:[%s8395_s12 + $0x8f4] sm:$0xf0] }
 0x21d   : > { %4274 = vmatpush.bf16.msrb.mxu3 %v6106_v5  ;;  %v7477_v5 = vld [vmem:[%s8395_s12 + $0x534] sm:$0xf0]  ;;  %v5658_v9 = vor.u32 %v7445_v0, %v5657_v63  ;;  %v5769_v14 = vld [vmem:[%s8395_s12 + $0x508] sm:$0xf] }
 0x21e   : > { %4236 = vmatpush.bf16.msrb.mxu0 %v5706_v10  ;;  %v5641_v10 = vld [vmem:[%s8395_s12 + $0x408] sm:$0xf]  ;;  %v7661_v47 = vld [vmem:[%s8395_s12 + $0xaf4] sm:$0xf0]  ;;  %v5770_v49 = vor.u32 %v7473_v15, %v5769_v14 }
 0x21f   : > { %v5897_v16 = vld [vmem:[%s8395_s12 + $0x608] sm:$0xf]  ;;  %v7593_v57 = vld [vmem:[%s8395_s12 + $0x8d4] sm:$0xf0] }
 0x220   : > { %4249 = vmatpush.bf16.msrb.mxu1 %v5834_v12  ;;  %4262 = vmatpush.bf16.msrb.mxu2 %v5962_v13  ;;  %v5786_v12 = vor.u32 %v7477_v5, %v5785_v1  ;;  %v5914_v13 = vor.u32 %v7509_v7, %v5913_v6  ;;  %v4010_v18 = vpop.f32.mrf.mxu2  ;;  %v6025_v25 = vld [vmem:[%s8395_s12 + $0x708] sm:$0xf]  ;;  %v7625_v60 = vld [vmem:[%s8395_s12 + $0x9d4] sm:$0xf0] }
 0x221   : > { %4275 = vmatpush.bf16.msrb.mxu3 %v6090_v21  ;;  %v7505_v21 = vld [vmem:[%s8395_s12 + $0x614] sm:$0xf0]  ;;  %v4023_v30 = vpop.f32.mrf.mxu3  ;;  %v6265_v31 = vld [vmem:[%s8395_s12 + $0x8e8] sm:$0xf]  ;;  %v6026_v52 = vor.u32 %v7537_v28, %v6025_v25 }
 0x222   : > { %4237 = vmatpush.bf16.msrb.mxu0 %v5690_v40  ;;  %v6393_v38 = vld [vmem:[%s8395_s12 + $0x9e8] sm:$0xf]  ;;  %v5642_v40 = vor.u32 %v7441_v11, %v5641_v10  ;;  %v5898_v50 = vor.u32 %v7505_v21, %v5897_v16  ;;  %v6266_v53 = vor.u32 %v7597_v36, %v6265_v31  ;;  %v7689_v0 = vld [vmem:[%s8395_s12 + $0xbd4] sm:$0xf0] }
 0x223   : > { %v6649_v51 = vld [vmem:[%s8395_s12 + $0xbe8] sm:$0xf]  ;;  %v7589_v6 = vld [vmem:[%s8395_s12 + $0x8b4] sm:$0xf0] }
 0x224   : > { %4250 = vmatpush.bf16.msrb.mxu1 %v5818_v41  ;;  %4263 = vmatpush.bf16.msrb.mxu2 %v5946_v43  ;;  %v7629_v41 = vld [vmem:[%s8395_s12 + $0x9f4] sm:$0xf0]  ;;  %v6521_v43 = vld [vmem:[%s8395_s12 + $0xae8] sm:$0xf] }
 0x225   : > { %4276 = vmatpush.bf16.msrb.mxu3 %v6074_v20  ;;  %v7693_v20 = vld [vmem:[%s8395_s12 + $0xbf4] sm:$0xf0]  ;;  %v6394_v54 = vor.u32 %v7629_v41, %v6393_v38  ;;  %v6522_v55 = vor.u32 %v7661_v47, %v6521_v43  ;;  %v6249_v56 = vld [vmem:[%s8395_s12 + $0x8c8] sm:$0xf] }
 0x226   : > { %4238 = vmatpush.bf16.msrb.mxu0 %v5674_v59  ;;  %v6377_v58 = vld [vmem:[%s8395_s12 + $0x9c8] sm:$0xf]  ;;  %v6650_v59 = vor.u32 %v7693_v20, %v6649_v51  ;;  %v6250_v1 = vor.u32 %v7593_v57, %v6249_v56  ;;  %v7621_v17 = vld [vmem:[%s8395_s12 + $0x9b4] sm:$0xf0] }
 0x227   : > { %v6633_v63 = vld [vmem:[%s8395_s12 + $0xbc8] sm:$0xf]  ;;  %v6378_v3 = vor.u32 %v7625_v60, %v6377_v58  ;;  %v7653_v10 = vld [vmem:[%s8395_s12 + $0xab4] sm:$0xf0] }
 0x228   : > { %4251 = vmatpush.bf16.msrb.mxu1 %v5802_v61  ;;  %4264 = vmatpush.bf16.msrb.mxu2 %v5930_v62  ;;  %v6505_v61 = vld [vmem:[%s8395_s12 + $0xac8] sm:$0xf]  ;;  %v7657_v62 = vld [vmem:[%s8395_s12 + $0xad4] sm:$0xf0]  ;;  %v6634_v8 = vor.u32 %v7689_v0, %v6633_v63 }
 0x229   : > { %4277 = vmatpush.bf16.msrb.mxu3 %v6058_v4  ;;  %v6506_v4 = vor.u32 %v7657_v62, %v6505_v61  ;;  %v6233_v5 = vld [vmem:[%s8395_s12 + $0x8a8] sm:$0xf]  ;;  %v7585_v18 = vld [vmem:[%s8395_s12 + $0x894] sm:$0xf0] }
 0x22a   : > { %4239 = vmatpush.bf16.msrb.mxu0 %v5658_v9  ;;  %v6361_v7 = vld [vmem:[%s8395_s12 + $0x9a8] sm:$0xf]  ;;  %v7617_v25 = vld [vmem:[%s8395_s12 + $0x994] sm:$0xf0] }
 0x22b   : > { %v6489_v9 = vld [vmem:[%s8395_s12 + $0xaa8] sm:$0xf]  ;;  %v6362_v14 = vor.u32 %v7621_v17, %v6361_v7  ;;  %v7649_v30 = vld [vmem:[%s8395_s12 + $0xa94] sm:$0xf0] }
 0x22c   : > { %4252 = vmatpush.bf16.msrb.mxu1 %v5786_v12  ;;  %4265 = vmatpush.bf16.msrb.mxu2 %v5914_v13  ;;  %v6617_v11 = vld [vmem:[%s8395_s12 + $0xba8] sm:$0xf]  ;;  %v7685_v12 = vld [vmem:[%s8395_s12 + $0xbb4] sm:$0xf0]  ;;  %v6234_v13 = vor.u32 %v7589_v6, %v6233_v5  ;;  %v6490_v15 = vor.u32 %v7653_v10, %v6489_v9 }
 0x22d   : > { %4278 = vmatpush.bf16.msrb.mxu3 %v6042_v19  ;;  %v6217_v16 = vld [vmem:[%s8395_s12 + $0x888] sm:$0xf]  ;;  %v6618_v21 = vor.u32 %v7685_v12, %v6617_v11  ;;  %v7681_v36 = vld [vmem:[%s8395_s12 + $0xb94] sm:$0xf0] }
 0x22e   : > { %4240 = vmatpush.bf16.msrb.mxu0 %v5642_v40  ;;  %v6345_v19 = vld [vmem:[%s8395_s12 + $0x988] sm:$0xf]  ;;  %v6218_v38 = vor.u32 %v7585_v18, %v6217_v16  ;;  %v4034_v40 = vpop.f32.mrf.mxu0  ;;  %v7677_v57 = vld [vmem:[%s8395_s12 + $0xb74] sm:$0xf0] }
 0x22f   : > { %v6473_v28 = vld [vmem:[%s8395_s12 + $0xa88] sm:$0xf]  ;;  %v6346_v41 = vor.u32 %v7617_v25, %v6345_v19  ;;  %v4035_v51 = vadd.f32 %v4034_v40, %v9146_v2  ;;  %v7577_v62 = vld [vmem:[%s8395_s12 + $0x854] sm:$0xf0] }
 0x230   : > { %4253 = vmatpush.bf16.msrb.mxu1 %v5770_v49  ;;  %4266 = vmatpush.bf16.msrb.mxu2 %v5898_v50  ;;  %v6601_v31 = vld [vmem:[%s8395_s12 + $0xb88] sm:$0xf]  ;;  %v6474_v43 = vor.u32 %v7649_v30, %v6473_v28  ;;  %v7581_v49 = vld [vmem:[%s8395_s12 + $0x874] sm:$0xf0]  ;;  %v4047_v20 = vpop.f32.mrf.mxu1 }
 0x231   : > { %4279 = vmatpush.bf16.msrb.mxu3 %v6026_v52  ;;  %4241 = vmatmul.bf16.vlgmr.msrb.gmra.mxu0 %v8599_v45  ;;  %v6201_v47 = vld [vmem:[%s8395_s12 + $0x868] sm:$0xf]  ;;  %v6602_v52 = vor.u32 %v7681_v36, %v6601_v31  ;;  %v4048_v58 = vadd.f32 %v4047_v20, %v4035_v51  ;;  %v7641_v5 = vld [vmem:[%s8395_s12 + $0xa54] sm:$0xf0] }
 0x232   : > { %4285 = vmatpush.bf16.msra.mxu0 %v6266_v53  ;;  %v6329_v50 = vld [vmem:[%s8395_s12 + $0x968] sm:$0xf]  ;;  %v7613_v53 = vld [vmem:[%s8395_s12 + $0x974] sm:$0xf0] }
 0x233   : > { %4267 = vmatmul.bf16.vlgmr.msrb.gmra.mxu2 %v8595_v42  ;;  %4254 = vmatmul.bf16.vlgmr.msrb.gmra.mxu1 %v8603_v48  ;;  %v6585_v56 = vld [vmem:[%s8395_s12 + $0xb68] sm:$0xf]  ;;  %v6330_v2 = vor.u32 %v7613_v53, %v6329_v50  ;;  %v7673_v17 = vld [vmem:[%s8395_s12 + $0xb54] sm:$0xf0] }
 0x234   : > { %4298 = vmatpush.bf16.msra.mxu1 %v6394_v54  ;;  %4311 = vmatpush.bf16.msra.mxu2 %v6522_v55  ;;  %v6457_v54 = vld [vmem:[%s8395_s12 + $0xa68] sm:$0xf]  ;;  %v7645_v55 = vld [vmem:[%s8395_s12 + $0xa74] sm:$0xf0] }
 0x235   : > { %4324 = vmatpush.bf16.msra.mxu3 %v6650_v59  ;;  %v6202_v59 = vor.u32 %v7581_v49, %v6201_v47  ;;  %v6458_v60 = vor.u32 %v7645_v55, %v6457_v54  ;;  %v6185_v61 = vld [vmem:[%s8395_s12 + $0x848] sm:$0xf]  ;;  %v7637_v28 = vld [vmem:[%s8395_s12 + $0xa34] sm:$0xf0] }
 0x236   : > { %4280 = vmatmul.bf16.vlgmr.msrb.gmra.mxu3 %v8601_v46  ;;  %4286 = vmatpush.bf16.msra.mxu0 %v6250_v1  ;;  %v6313_v63 = vld [vmem:[%s8395_s12 + $0x948] sm:$0xf]  ;;  %v4060_v0 = vpop.f32.mrf.mxu2  ;;  %v6586_v1 = vor.u32 %v7677_v57, %v6585_v56  ;;  %v6186_v9 = vor.u32 %v7577_v62, %v6185_v61  ;;  %v4036_v11 = vpop.f32.mrf.mxu0  ;;  %v7669_v31 = vld [vmem:[%s8395_s12 + $0xb34] sm:$0xf0] }
 0x237   : > { %v4061_v6 = vadd.f32 %v4060_v0, %v4048_v58  ;;  %v6297_v16 = vld [vmem:[%s8395_s12 + $0x928] sm:$0xf]  ;;  %v7569_v40 = vld [vmem:[%s8395_s12 + $0x814] sm:$0xf0] }
 0x238   : > { %4299 = vmatpush.bf16.msra.mxu1 %v6378_v3  ;;  %4312 = vmatpush.bf16.msra.mxu2 %v6506_v4  ;;  %v7609_v3 = vld [vmem:[%s8395_s12 + $0x954] sm:$0xf0]  ;;  %v6441_v4 = vld [vmem:[%s8395_s12 + $0xa48] sm:$0xf]  ;;  %v4049_v18 = vpop.f32.mrf.mxu1 }
 0x239   : > { %4325 = vmatpush.bf16.msra.mxu3 %v6634_v8  ;;  %v4073_v7 = vpop.f32.mrf.mxu3  ;;  %v6569_v8 = vld [vmem:[%s8395_s12 + $0xb48] sm:$0xf]  ;;  %v6314_v12 = vor.u32 %v7609_v3, %v6313_v63  ;;  %v7601_v49 = vld [vmem:[%s8395_s12 + $0x914] sm:$0xf0] }
 0x23a   : > { %4287 = vmatpush.bf16.msra.mxu0 %v6234_v13  ;;  %v9217_v10 = vadd.f32 %v4073_v7, %v4061_v6  ;;  %v6442_v13 = vor.u32 %v7641_v5, %v6441_v4  ;;  %v6570_v19 = vor.u32 %v7673_v17, %v6569_v8  ;;  %v6425_v25 = vld [vmem:[%s8395_s12 + $0xa28] sm:$0xf]  ;;  %v7665_v54 = vld [vmem:[%s8395_s12 + $0xb14] sm:$0xf0] }
 0x23b   : > { %v6553_v30 = vld [vmem:[%s8395_s12 + $0xb28] sm:$0xf]  ;;  %v7725_v57 = vld [vmem:[%s8395_s12 + $0xcf4] sm:$0xf0] }
 0x23c   : > { %4300 = vmatpush.bf16.msra.mxu1 %v6362_v14  ;;  %4313 = vmatpush.bf16.msra.mxu2 %v6490_v15  ;;  %v6169_v14 = vld [vmem:[%s8395_s12 + $0x828] sm:$0xf]  ;;  %v7573_v15 = vld [vmem:[%s8395_s12 + $0x834] sm:$0xf0]  ;;  %v6554_v20 = vor.u32 %v7669_v31, %v6553_v30 }
 0x23d   : > { %4326 = vmatpush.bf16.msra.mxu3 %v6618_v21  ;;  %v7605_v21 = vld [vmem:[%s8395_s12 + $0x934] sm:$0xf0]  ;;  %v6170_v36 = vor.u32 %v7573_v15, %v6169_v14  ;;  %v6281_v47 = vld [vmem:[%s8395_s12 + $0x908] sm:$0xf] }
 0x23e   : > { %4288 = vmatpush.bf16.msra.mxu0 %v6218_v38  ;;  %v6153_v38 = vld [vmem:[%s8395_s12 + $0x808] sm:$0xf]  ;;  %v4062_v51 = vpop.f32.mrf.mxu2  ;;  %v7789_v61 = vld [vmem:[%s8395_s12 + $0xef4] sm:$0xf0]  ;;  %v6282_v62 = vor.u32 %v7601_v49, %v6281_v47 }
 0x23f   : > { %v6409_v50 = vld [vmem:[%s8395_s12 + $0xa08] sm:$0xf]  ;;  %v7721_v8 = vld [vmem:[%s8395_s12 + $0xcd4] sm:$0xf0] }
 0x240   : > { %4301 = vmatpush.bf16.msra.mxu1 %v6346_v41  ;;  %4314 = vmatpush.bf16.msra.mxu2 %v6474_v43  ;;  %v6298_v41 = vor.u32 %v7605_v21, %v6297_v16  ;;  %v6426_v43 = vor.u32 %v7637_v28, %v6425_v25  ;;  %v6537_v53 = vld [vmem:[%s8395_s12 + $0xb08] sm:$0xf]  ;;  %v7753_v11 = vld [vmem:[%s8395_s12 + $0xdd4] sm:$0xf0] }
 0x241   : > { %4327 = vmatpush.bf16.msra.mxu3 %v6602_v52  ;;  %v7633_v52 = vld [vmem:[%s8395_s12 + $0xa14] sm:$0xf0]  ;;  %v4075_v55 = vpop.f32.mrf.mxu3  ;;  %v6777_v56 = vld [vmem:[%s8395_s12 + $0xce8] sm:$0xf]  ;;  %v6538_v3 = vor.u32 %v7665_v54, %v6537_v53 }
 0x242   : > { %4289 = vmatpush.bf16.msra.mxu0 %v6202_v59  ;;  %v6905_v58 = vld [vmem:[%s8395_s12 + $0xde8] sm:$0xf]  ;;  %v6154_v59 = vor.u32 %v7569_v40, %v6153_v38  ;;  %v6410_v63 = vor.u32 %v7633_v52, %v6409_v50  ;;  %v6778_v4 = vor.u32 %v7725_v57, %v6777_v56  ;;  %v7817_v15 = vld [vmem:[%s8395_s12 + $0xfd4] sm:$0xf0] }
 0x243   : > { %v7161_v0 = vld [vmem:[%s8395_s12 + $0xfe8] sm:$0xf]  ;;  %v7717_v25 = vld [vmem:[%s8395_s12 + $0xcb4] sm:$0xf0] }
 0x244   : > { %4302 = vmatpush.bf16.msra.mxu1 %v6330_v2  ;;  %4315 = vmatpush.bf16.msra.mxu2 %v6458_v60  ;;  %v7757_v2 = vld [vmem:[%s8395_s12 + $0xdf4] sm:$0xf0]  ;;  %v7033_v60 = vld [vmem:[%s8395_s12 + $0xee8] sm:$0xf] }
 0x245   : > { %4328 = vmatpush.bf16.msra.mxu3 %v6586_v1  ;;  %v7821_v1 = vld [vmem:[%s8395_s12 + $0xff4] sm:$0xf0]  ;;  %v6906_v5 = vor.u32 %v7757_v2, %v6905_v58  ;;  %v7034_v6 = vor.u32 %v7789_v61, %v7033_v60  ;;  %v6761_v7 = vld [vmem:[%s8395_s12 + $0xcc8] sm:$0xf] }
 0x246   : > { %4290 = vmatpush.bf16.msra.mxu0 %v6186_v9  ;;  %v6889_v17 = vld [vmem:[%s8395_s12 + $0xdc8] sm:$0xf]  ;;  %v7162_v9 = vor.u32 %v7821_v1, %v7161_v0  ;;  %v6762_v16 = vor.u32 %v7721_v8, %v6761_v7  ;;  %v7749_v31 = vld [vmem:[%s8395_s12 + $0xdb4] sm:$0xf0] }
 0x247   : > { %v7145_v14 = vld [vmem:[%s8395_s12 + $0xfc8] sm:$0xf]  ;;  %v6890_v18 = vor.u32 %v7753_v11, %v6889_v17  ;;  %v7781_v38 = vld [vmem:[%s8395_s12 + $0xeb4] sm:$0xf0] }
 0x248   : > { %4303 = vmatpush.bf16.msra.mxu1 %v6314_v12  ;;  %4316 = vmatpush.bf16.msra.mxu2 %v6442_v13  ;;  %v7017_v12 = vld [vmem:[%s8395_s12 + $0xec8] sm:$0xf]  ;;  %v7785_v13 = vld [vmem:[%s8395_s12 + $0xed4] sm:$0xf0]  ;;  %v7146_v30 = vor.u32 %v7817_v15, %v7145_v14 }
 0x249   : > { %4329 = vmatpush.bf16.msra.mxu3 %v6570_v19  ;;  %v7018_v19 = vor.u32 %v7785_v13, %v7017_v12  ;;  %v6745_v21 = vld [vmem:[%s8395_s12 + $0xca8] sm:$0xf]  ;;  %v7713_v51 = vld [vmem:[%s8395_s12 + $0xc94] sm:$0xf0] }
 0x24a   : > { %4291 = vmatpush.bf16.msra.mxu0 %v6170_v36  ;;  %v6873_v28 = vld [vmem:[%s8395_s12 + $0xda8] sm:$0xf]  ;;  %v7745_v53 = vld [vmem:[%s8395_s12 + $0xd94] sm:$0xf0] }
 0x24b   : > { %v7001_v36 = vld [vmem:[%s8395_s12 + $0xea8] sm:$0xf]  ;;  %v6874_v47 = vor.u32 %v7749_v31, %v6873_v28  ;;  %v7777_v55 = vld [vmem:[%s8395_s12 + $0xe94] sm:$0xf0] }
 0x24c   : > { %4304 = vmatpush.bf16.msra.mxu1 %v6298_v41  ;;  %4317 = vmatpush.bf16.msra.mxu2 %v6426_v43  ;;  %v7129_v40 = vld [vmem:[%s8395_s12 + $0xfa8] sm:$0xf]  ;;  %v7813_v41 = vld [vmem:[%s8395_s12 + $0xfb4] sm:$0xf0]  ;;  %v6746_v43 = vor.u32 %v7717_v25, %v6745_v21  ;;  %v7002_v49 = vor.u32 %v7781_v38, %v7001_v36 }
 0x24d   : > { %4330 = vmatpush.bf16.msra.mxu3 %v6554_v20  ;;  %v6729_v50 = vld [vmem:[%s8395_s12 + $0xc88] sm:$0xf]  ;;  %v7130_v52 = vor.u32 %v7813_v41, %v7129_v40  ;;  %v7809_v58 = vld [vmem:[%s8395_s12 + $0xf94] sm:$0xf0] }
 0x24e   : > { %4292 = vmatpush.bf16.msra.mxu0 %v6154_v59  ;;  %v6857_v20 = vld [vmem:[%s8395_s12 + $0xd88] sm:$0xf]  ;;  %v4086_v56 = vpop.f32.mrf.mxu0  ;;  %v6730_v2 = vor.u32 %v7713_v51, %v6729_v50  ;;  %v7709_v0 = vld [vmem:[%s8395_s12 + $0xc74] sm:$0xf0] }
 0x24f   : > { %v6985_v54 = vld [vmem:[%s8395_s12 + $0xe88] sm:$0xf]  ;;  %v4087_v59 = vadd.f32 %v4086_v56, %v9217_v10  ;;  %v6858_v61 = vor.u32 %v7745_v53, %v6857_v20  ;;  %v7773_v10 = vld [vmem:[%s8395_s12 + $0xe74] sm:$0xf0] }
 0x250   : > { %4305 = vmatpush.bf16.msra.mxu1 %v6282_v62  ;;  %4318 = vmatpush.bf16.msra.mxu2 %v6410_v63  ;;  %v7113_v57 = vld [vmem:[%s8395_s12 + $0xf88] sm:$0xf]  ;;  %v4099_v60 = vpop.f32.mrf.mxu1  ;;  %v6986_v62 = vor.u32 %v7777_v55, %v6985_v54  ;;  %v7805_v8 = vld [vmem:[%s8395_s12 + $0xf74] sm:$0xf0] }
 0x251   : > { %4331 = vmatpush.bf16.msra.mxu3 %v6538_v3  ;;  %4293 = vmatmul.bf16.vlgmr.msra.gmra.mxu0 %v8668_v29  ;;  %v6713_v63 = vld [vmem:[%s8395_s12 + $0xc68] sm:$0xf]  ;;  %v7114_v3 = vor.u32 %v7809_v58, %v7113_v57  ;;  %v7705_v13 = vld [vmem:[%s8395_s12 + $0xc54] sm:$0xf0] }
 0x252   : > { %4337 = vmatpush.bf16.msrb.mxu0 %v6778_v4  ;;  %v6841_v1 = vld [vmem:[%s8395_s12 + $0xd68] sm:$0xf]  ;;  %v4100_v4 = vadd.f32 %v4099_v60, %v4087_v59  ;;  %v6714_v17 = vor.u32 %v7709_v0, %v6713_v63  ;;  %v7769_v21 = vld [vmem:[%s8395_s12 + $0xe54] sm:$0xf0] }
 0x253   : > { %4319 = vmatmul.bf16.vlgmr.msra.gmra.mxu2 %v8673_v33  ;;  %4306 = vmatmul.bf16.vlgmr.msra.gmra.mxu1 %v8675_v34  ;;  %v7097_v7 = vld [vmem:[%s8395_s12 + $0xf68] sm:$0xf]  ;;  %v7801_v31 = vld [vmem:[%s8395_s12 + $0xf54] sm:$0xf0] }
 0x254   : > { %4350 = vmatpush.bf16.msrb.mxu1 %v6906_v5  ;;  %4363 = vmatpush.bf16.msrb.mxu2 %v7034_v6  ;;  %v7741_v5 = vld [vmem:[%s8395_s12 + $0xd74] sm:$0xf0]  ;;  %v6969_v6 = vld [vmem:[%s8395_s12 + $0xe68] sm:$0xf]  ;;  %v7098_v15 = vor.u32 %v7805_v8, %v7097_v7  ;;  %v7371_v7 = vld [vmem:[%s8395_s12 + $0x1ec] sm:$0xf] }
 0x255   : > { %4376 = vmatpush.bf16.msrb.mxu3 %v7162_v9  ;;  %v6842_v9 = vor.u32 %v7741_v5, %v6841_v1  ;;  %v6970_v11 = vor.u32 %v7773_v10, %v6969_v6  ;;  %v6697_v12 = vld [vmem:[%s8395_s12 + $0xc48] sm:$0xf]  ;;  %v7701_v50 = vld [vmem:[%s8395_s12 + $0xc34] sm:$0xf0]  ;;  %v7339_v6 = vld [vmem:[%s8395_s12 + $0xec] sm:$0xf] }
 0x256   : > { %4332 = vmatmul.bf16.vlgmr.msra.gmra.mxu3 %v8679_v37  ;;  %4338 = vmatpush.bf16.msrb.mxu0 %v6762_v16  ;;  %v6825_v14 = vld [vmem:[%s8395_s12 + $0xd48] sm:$0xf]  ;;  %v4112_v16 = vpop.f32.mrf.mxu2  ;;  %v4088_v36 = vpop.f32.mrf.mxu0  ;;  %v6698_v38 = vor.u32 %v7705_v13, %v6697_v12  ;;  %v7765_v54 = vld [vmem:[%s8395_s12 + $0xe34] sm:$0xf0]  ;;  %v5243_v10 = vld [vmem:[%s8395_s12 + $0xf8] sm:$0xf0] }
 0x257   : > { %v4113_v25 = vadd.f32 %v4112_v16, %v4100_v4  ;;  %v6809_v51 = vld [vmem:[%s8395_s12 + $0xd28] sm:$0xf]  ;;  %v7797_v56 = vld [vmem:[%s8395_s12 + $0xf34] sm:$0xf0]  ;;  %v5499_v12 = vld [vmem:[%s8395_s12 + $0x2f8] sm:$0xf0] }
 0x258   : > { %4351 = vmatpush.bf16.msrb.mxu1 %v6890_v18  ;;  %4364 = vmatpush.bf16.msrb.mxu2 %v7018_v19  ;;  %v7737_v18 = vld [vmem:[%s8395_s12 + $0xd54] sm:$0xf0]  ;;  %v6953_v19 = vld [vmem:[%s8395_s12 + $0xe48] sm:$0xf]  ;;  %v4101_v40 = vpop.f32.mrf.mxu1  ;;  %v5627_v16 = vld [vmem:[%s8395_s12 + $0x3f8] sm:$0xf0] }
 0x259   : > { %4377 = vmatpush.bf16.msrb.mxu3 %v7146_v30  ;;  %v4125_v28 = vpop.f32.mrf.mxu3  ;;  %v7081_v30 = vld [vmem:[%s8395_s12 + $0xf48] sm:$0xf]  ;;  %v7697_v59 = vld [vmem:[%s8395_s12 + $0xc14] sm:$0xf0]  ;;  %v7399_v40 = vld [vmem:[%s8395_s12 + $0x2cc] sm:$0xf] }
 0x25a   : > { %4339 = vmatpush.bf16.msrb.mxu0 %v6746_v43  ;;  %v9288_v41 = vadd.f32 %v4125_v28, %v4113_v25  ;;  %v6826_v43 = vor.u32 %v7737_v18, %v6825_v14  ;;  %v7082_v20 = vor.u32 %v7801_v31, %v7081_v30  ;;  %v6937_v53 = vld [vmem:[%s8395_s12 + $0xe28] sm:$0xf]  ;;  %v7761_v1 = vld [vmem:[%s8395_s12 + $0xe14] sm:$0xf0]  ;;  %v7335_v28 = vld [vmem:[%s8395_s12 + $0xcc] sm:$0xf] }
 0x25b   : > { %v7065_v55 = vld [vmem:[%s8395_s12 + $0xf28] sm:$0xf]  ;;  %v6938_v60 = vor.u32 %v7765_v54, %v6937_v53  ;;  %v7793_v4 = vld [vmem:[%s8395_s12 + $0xf14] sm:$0xf0]  ;;  %v5227_v30 = vld [vmem:[%s8395_s12 + $0xd8] sm:$0xf0] }
 0x25c   : > { %4352 = vmatpush.bf16.msrb.mxu1 %v6874_v47  ;;  %4365 = vmatpush.bf16.msrb.mxu2 %v7002_v49  ;;  %v6954_v47 = vor.u32 %v7769_v21, %v6953_v19  ;;  %v6681_v49 = vld [vmem:[%s8395_s12 + $0xc28] sm:$0xf]  ;;  %v7066_v0 = vor.u32 %v7797_v56, %v7065_v55  ;;  %v5246_v19 = vor.u32 %v7339_v6, %v5243_v10  ;;  %v7367_v31 = vld [vmem:[%s8395_s12 + $0x1cc] sm:$0xf]  ;;  %v5211_v53 = vld [vmem:[%s8395_s12 + $0xb8] sm:$0xf0] }
 0x25d   : > { %4378 = vmatpush.bf16.msrb.mxu3 %v7130_v52  ;;  %v7733_v52 = vld [vmem:[%s8395_s12 + $0xd34] sm:$0xf0]  ;;  %v6682_v57 = vor.u32 %v7701_v50, %v6681_v49  ;;  %v6665_v58 = vld [vmem:[%s8395_s12 + $0xc08] sm:$0xf]  ;;  %v5611_v49 = vld [vmem:[%s8395_s12 + $0x3d8] sm:$0xf0]  ;;  %v5230_v50 = vor.u32 %v7335_v28, %v5227_v30 }
 0x25e   : > { %4340 = vmatpush.bf16.msrb.mxu0 %v6730_v2  ;;  %v6810_v2 = vor.u32 %v7733_v52, %v6809_v51  ;;  %v6921_v63 = vld [vmem:[%s8395_s12 + $0xe08] sm:$0xf]  ;;  %v4114_v5 = vpop.f32.mrf.mxu2  ;;  %v7331_v52 = vld [vmem:[%s8395_s12 + $0xac] sm:$0xf]  ;;  %v5339_v56 = vld [vmem:[%s8395_s12 + $0x1b8] sm:$0xf0] }
 0x25f   : > { %v6922_v14 = vor.u32 %v7761_v1, %v6921_v63  ;;  %v7363_v54 = vld [vmem:[%s8395_s12 + $0x1ac] sm:$0xf]  ;;  %v5451_v6 = vld [vmem:[%s8395_s12 + $0x298] sm:$0xf0] }
 0x260   : > { %4353 = vmatpush.bf16.msrb.mxu1 %v6858_v61  ;;  %4366 = vmatpush.bf16.msrb.mxu2 %v6986_v62  ;;  %v6793_v61 = vld [vmem:[%s8395_s12 + $0xd08] sm:$0xf]  ;;  %v7729_v62 = vld [vmem:[%s8395_s12 + $0xd14] sm:$0xf0]  ;;  %v7327_v63 = vld [vmem:[%s8395_s12 + $0x8c] sm:$0xf] }
 0x261   : > { %4379 = vmatpush.bf16.msrb.mxu3 %v7114_v3  ;;  %v7049_v3 = vld [vmem:[%s8395_s12 + $0xf08] sm:$0xf]  ;;  %v4127_v8 = vpop.f32.mrf.mxu3  ;;  %v6794_v13 = vor.u32 %v7729_v62, %v6793_v61  ;;  %v5342_v61 = vor.u32 %v7363_v54, %v5339_v56  ;;  %v7359_v1 = vld [vmem:[%s8395_s12 + $0x18c] sm:$0xf]  ;;  %v5563_v30 = vld [vmem:[%s8395_s12 + $0x378] sm:$0xf0] }
 0x262   : > { %4341 = vmatpush.bf16.msrb.mxu0 %v6714_v17  ;;  %v6666_v17 = vor.u32 %v7697_v59, %v6665_v58  ;;  %v7050_v18 = vor.u32 %v7793_v4, %v7049_v3  ;;  %v5467_v58 = vld [vmem:[%s8395_s12 + $0x2b8] sm:$0xf0]  ;;  %v7427_v59 = vld [vmem:[%s8395_s12 + $0x3ac] sm:$0xf] }
 0x263   : > { %v5323_v4 = vld [vmem:[%s8395_s12 + $0x198] sm:$0xf0]  ;;  %v7391_v5 = vld [vmem:[%s8395_s12 + $0x28c] sm:$0xf] }
 0x264   : > { %4354 = vmatpush.bf16.msrb.mxu1 %v6842_v9  ;;  %4367 = vmatpush.bf16.msrb.mxu2 %v6970_v11  ;;  %v5371_v9 = vld [vmem:[%s8395_s12 + $0x1f8] sm:$0xf0]  ;;  %v7403_v11 = vld [vmem:[%s8395_s12 + $0x2ec] sm:$0xf] }
 0x265   : > { %4380 = vmatpush.bf16.msrb.mxu3 %v7098_v15  ;;  %v7435_v15 = vld [vmem:[%s8395_s12 + $0x3ec] sm:$0xf]  ;;  %v5374_v21 = vor.u32 %v7371_v7, %v5371_v9  ;;  %v5502_v25 = vor.u32 %v7403_v11, %v5499_v12  ;;  %v5579_v8 = vld [vmem:[%s8395_s12 + $0x398] sm:$0xf0]  ;;  %v5326_v12 = vor.u32 %v7359_v1, %v5323_v4 }
 0x266   : > { %4342 = vmatpush.bf16.msrb.mxu0 %v6698_v38  ;;  %v5630_v36 = vor.u32 %v7435_v15, %v5627_v16  ;;  %v5355_v38 = vld [vmem:[%s8395_s12 + $0x1d8] sm:$0xf0]  ;;  %v7423_v7 = vld [vmem:[%s8395_s12 + $0x38c] sm:$0xf] }
 0x267   : > { %v5358_v51 = vor.u32 %v7367_v31, %v5355_v38  ;;  %v5179_v15 = vld [vmem:[%s8395_s12 + $0x78] sm:$0xf0]  ;;  %v7355_v16 = vld [vmem:[%s8395_s12 + $0x16c] sm:$0xf] }
 0x268   : > { %4355 = vmatpush.bf16.msrb.mxu1 %v6826_v43  ;;  %4368 = vmatpush.bf16.msrb.mxu2 %v6954_v47  ;;  %v5483_v43 = vld [vmem:[%s8395_s12 + $0x2d8] sm:$0xf0]  ;;  %v7431_v47 = vld [vmem:[%s8395_s12 + $0x3cc] sm:$0xf] }
 0x269   : > { %4381 = vmatpush.bf16.msrb.mxu3 %v7082_v20  ;;  %v5486_v20 = vor.u32 %v7399_v40, %v5483_v43  ;;  %v5614_v55 = vor.u32 %v7431_v47, %v5611_v49  ;;  %v7419_v28 = vld [vmem:[%s8395_s12 + $0x36c] sm:$0xf]  ;;  %v5163_v43 = vld [vmem:[%s8395_s12 + $0x58] sm:$0xf0] }
 0x26a   : > { %4343 = vmatpush.bf16.msrb.mxu0 %v6682_v57  ;;  %v7395_v57 = vld [vmem:[%s8395_s12 + $0x2ac] sm:$0xf]  ;;  %v5566_v49 = vor.u32 %v7419_v28, %v5563_v30  ;;  %v5547_v56 = vld [vmem:[%s8395_s12 + $0x358] sm:$0xf0] }
 0x26b   : > { %v5470_v62 = vor.u32 %v7395_v57, %v5467_v58  ;;  %v7319_v40 = vld [vmem:[%s8395_s12 + $0x4c] sm:$0xf] }
 0x26c   : > { %4356 = vmatpush.bf16.msrb.mxu1 %v6810_v2  ;;  %4369 = vmatpush.bf16.msrb.mxu2 %v6938_v60  ;;  %v5595_v2 = vld [vmem:[%s8395_s12 + $0x3b8] sm:$0xf0]  ;;  %v5214_v60 = vor.u32 %v7331_v52, %v5211_v53  ;;  %v7351_v47 = vld [vmem:[%s8395_s12 + $0x14c] sm:$0xf]  ;;  %v5166_v58 = vor.u32 %v7319_v40, %v5163_v43 }
 0x26d   : > { %4382 = vmatpush.bf16.msrb.mxu3 %v7066_v0  ;;  %v5195_v0 = vld [vmem:[%s8395_s12 + $0x98] sm:$0xf0]  ;;  %v5598_v3 = vor.u32 %v7427_v59, %v5595_v2  ;;  %v7379_v4 = vld [vmem:[%s8395_s12 + $0x22c] sm:$0xf] }
 0x26e   : > { %4344 = vmatpush.bf16.msrb.mxu0 %v6666_v17  ;;  %v4138_v10 = vpop.f32.mrf.mxu0  ;;  %v5198_v9 = vor.u32 %v7327_v63, %v5195_v0  ;;  %v5419_v52 = vld [vmem:[%s8395_s12 + $0x258] sm:$0xf0]  ;;  %v7347_v0 = vld [vmem:[%s8395_s12 + $0x12c] sm:$0xf] }
 0x26f   : > { %v4139_v17 = vadd.f32 %v4138_v10, %v9288_v41  ;;  %v5435_v41 = vld [vmem:[%s8395_s12 + $0x278] sm:$0xf0]  ;;  %v7499_v28 = vld [vmem:[%s8395_s12 + $0x5ec] sm:$0xf] }
 0x270   : > { %4357 = vmatpush.bf16.msrb.mxu1 %v6794_v13  ;;  %4370 = vmatpush.bf16.msrb.mxu2 %v6922_v14  ;;  %v4151_v11 = vpop.f32.mrf.mxu1  ;;  %v5454_v13 = vor.u32 %v7391_v5, %v5451_v6  ;;  %v7323_v14 = vld [vmem:[%s8395_s12 + $0x6c] sm:$0xf]  ;;  %v5147_v63 = vld [vmem:[%s8395_s12 + $0x38] sm:$0xf0] }
 0x271   : > { %4383 = vmatpush.bf16.msrb.mxu3 %v7050_v18  ;;  %4345 = vmatmul.bf16.vlgmr.msrb.gmra.mxu0 %v8744_v27  ;;  %v5582_v18 = vor.u32 %v7423_v7, %v5579_v8  ;;  %v5182_v31 = vor.u32 %v7323_v14, %v5179_v15  ;;  %v5403_v5 = vld [vmem:[%s8395_s12 + $0x238] sm:$0xf0]  ;;  %v7411_v6 = vld [vmem:[%s8395_s12 + $0x32c] sm:$0xf] }
 0x272   : > { %4389 = vmatpush.bf16.msra.mxu0 %v5246_v19  ;;  %v4152_v19 = vadd.f32 %v4151_v11, %v4139_v17  ;;  %v5531_v10 = vld [vmem:[%s8395_s12 + $0x338] sm:$0xf0]  ;;  %v7311_v8 = vld [vmem:[%s8395_s12 + $0xc] sm:$0xf]  ;;  %v5406_v11 = vor.u32 %v7379_v4, %v5403_v5 }
 0x273   : > { %4371 = vmatmul.bf16.vlgmr.msrb.gmra.mxu2 %v8749_v32  ;;  %4358 = vmatmul.bf16.vlgmr.msrb.gmra.mxu1 %v8751_v35  ;;  %v5131_v17 = vld [vmem:[%s8395_s12 + $0x18] sm:$0xf0]  ;;  %v7375_v14 = vld [vmem:[%s8395_s12 + $0x20c] sm:$0xf]  ;;  %v5534_v15 = vor.u32 %v7411_v6, %v5531_v10 }
 0x274   : > { %4402 = vmatpush.bf16.msra.mxu1 %v5374_v21  ;;  %4415 = vmatpush.bf16.msra.mxu2 %v5502_v25  ;;  %v5307_v21 = vld [vmem:[%s8395_s12 + $0x178] sm:$0xf0]  ;;  %v7387_v25 = vld [vmem:[%s8395_s12 + $0x26c] sm:$0xf] }
 0x275   : > { %4428 = vmatpush.bf16.msra.mxu3 %v5630_v36  ;;  %v5310_v36 = vor.u32 %v7355_v16, %v5307_v21  ;;  %v5438_v38 = vor.u32 %v7387_v25, %v5435_v41  ;;  %v5387_v16 = vld [vmem:[%s8395_s12 + $0x218] sm:$0xf0]  ;;  %v7467_v25 = vld [vmem:[%s8395_s12 + $0x4ec] sm:$0xf] }
 0x276   : > { %4384 = vmatmul.bf16.vlgmr.msrb.gmra.mxu3 %v8755_v39  ;;  %4390 = vmatpush.bf16.msra.mxu0 %v5230_v50  ;;  %v4164_v50 = vpop.f32.mrf.mxu2  ;;  %v4140_v57 = vpop.f32.mrf.mxu0  ;;  %v5755_v41 = vld [vmem:[%s8395_s12 + $0x4f8] sm:$0xf0]  ;;  %v7491_v5 = vld [vmem:[%s8395_s12 + $0x5ac] sm:$0xf] }
 0x277   : > { %v4165_v53 = vadd.f32 %v4164_v50, %v4152_v19  ;;  %v5515_v19 = vld [vmem:[%s8395_s12 + $0x318] sm:$0xf0] }
 0x278   : > { %4403 = vmatpush.bf16.msra.mxu1 %v5358_v51  ;;  %4416 = vmatpush.bf16.msra.mxu2 %v5486_v20  ;;  %v5291_v51 = vld [vmem:[%s8395_s12 + $0x158] sm:$0xf0]  ;;  %v7383_v20 = vld [vmem:[%s8395_s12 + $0x24c] sm:$0xf]  ;;  %v4153_v59 = vpop.f32.mrf.mxu1 }
 0x279   : > { %4429 = vmatpush.bf16.msra.mxu3 %v5614_v55  ;;  %v4177_v54 = vpop.f32.mrf.mxu3  ;;  %v7415_v55 = vld [vmem:[%s8395_s12 + $0x34c] sm:$0xf]  ;;  %v6011_v40 = vld [vmem:[%s8395_s12 + $0x6f8] sm:$0xf0] }
 0x27a   : > { %4391 = vmatpush.bf16.msra.mxu0 %v5214_v60  ;;  %v9359_v2 = vadd.f32 %v4177_v54, %v4165_v53  ;;  %v5294_v60 = vor.u32 %v7351_v47, %v5291_v51  ;;  %v5550_v1 = vor.u32 %v7415_v55, %v5547_v56  ;;  %v5390_v47 = vor.u32 %v7375_v14, %v5387_v16  ;;  %v6139_v50 = vld [vmem:[%s8395_s12 + $0x7f8] sm:$0xf0]  ;;  %v7463_v54 = vld [vmem:[%s8395_s12 + $0x4cc] sm:$0xf]  ;;  %v9409_v16 = vld [vmem:[%s8401_s27] sm:$0xf] }
 0x27b   : > { %v5739_v55 = vld [vmem:[%s8395_s12 + $0x4d8] sm:$0xf0]  ;;  %v7495_v56 = vld [vmem:[%s8395_s12 + $0x5cc] sm:$0xf]  ;;  %s9704_s27 = sld [smem:[#allocation17_spill]] }
 0x27c   : > { %4404 = vmatpush.bf16.msra.mxu1 %v5342_v61  ;;  %4417 = vmatpush.bf16.msra.mxu2 %v5470_v62  ;;  %v5422_v61 = vor.u32 %v7383_v20, %v5419_v52  ;;  %v7315_v62 = vld [vmem:[%s8395_s12 + $0x2c] sm:$0xf]  ;;  %v5758_v20 = vor.u32 %v7467_v25, %v5755_v41  ;;  %v5723_v4 = vld [vmem:[%s8395_s12 + $0x4b8] sm:$0xf0] }
 0x27d   : > { %4430 = vmatpush.bf16.msra.mxu3 %v5598_v3  ;;  %v5275_v3 = vld [vmem:[%s8395_s12 + $0x138] sm:$0xf0]  ;;  %v5150_v7 = vor.u32 %v7315_v62, %v5147_v63  ;;  %v7527_v59 = vld [vmem:[%s8395_s12 + $0x6cc] sm:$0xf]  ;;  %v5742_v63 = vor.u32 %v7463_v54, %v5739_v55 }
 0x27e   : > { %4392 = vmatpush.bf16.msra.mxu0 %v5198_v9  ;;  %v5278_v9 = vor.u32 %v7347_v0, %v5275_v3  ;;  %v4166_v21 = vpop.f32.mrf.mxu2  ;;  %v6123_v62 = vld [vmem:[%s8395_s12 + $0x7d8] sm:$0xf0]  ;;  %v7459_v3 = vld [vmem:[%s8395_s12 + $0x4ac] sm:$0xf] }
 0x27f   : > { %v5851_v10 = vld [vmem:[%s8395_s12 + $0x5b8] sm:$0xf0]  ;;  %v7551_v25 = vld [vmem:[%s8395_s12 + $0x78c] sm:$0xf] }
 0x280   : > { %4405 = vmatpush.bf16.msra.mxu1 %v5326_v12  ;;  %4418 = vmatpush.bf16.msra.mxu2 %v5454_v13  ;;  %v7343_v12 = vld [vmem:[%s8395_s12 + $0x10c] sm:$0xf]  ;;  %v5259_v13 = vld [vmem:[%s8395_s12 + $0x118] sm:$0xf0] }
 0x281   : > { %4431 = vmatpush.bf16.msra.mxu3 %v5582_v18  ;;  %v7407_v18 = vld [vmem:[%s8395_s12 + $0x30c] sm:$0xf]  ;;  %v4179_v30 = vpop.f32.mrf.mxu3  ;;  %v5262_v43 = vor.u32 %v7343_v12, %v5259_v13  ;;  %v5854_v13 = vor.u32 %v7491_v5, %v5851_v10  ;;  %v5707_v14 = vld [vmem:[%s8395_s12 + $0x498] sm:$0xf0] }
 0x282   : > { %4393 = vmatpush.bf16.msra.mxu0 %v5182_v31  ;;  %v5134_v31 = vor.u32 %v7311_v8, %v5131_v17  ;;  %v5518_v51 = vor.u32 %v7407_v18, %v5515_v19  ;;  %v5979_v8 = vld [vmem:[%s8395_s12 + $0x6b8] sm:$0xf0]  ;;  %v7555_v17 = vld [vmem:[%s8395_s12 + $0x7ac] sm:$0xf] }
 0x283   : > { %v7455_v12 = vld [vmem:[%s8395_s12 + $0x48c] sm:$0xf]  ;;  %v5835_v18 = vld [vmem:[%s8395_s12 + $0x598] sm:$0xf0] }
 0x284   : > { %4406 = vmatpush.bf16.msra.mxu1 %v5310_v36  ;;  %4419 = vmatpush.bf16.msra.mxu2 %v5438_v38  ;;  %v5883_v36 = vld [vmem:[%s8395_s12 + $0x5f8] sm:$0xf0]  ;;  %v7531_v38 = vld [vmem:[%s8395_s12 + $0x6ec] sm:$0xf]  ;;  %v5710_v41 = vor.u32 %v7455_v12, %v5707_v14 }
 0x285   : > { %4432 = vmatpush.bf16.msra.mxu3 %v5566_v49  ;;  %v7563_v49 = vld [vmem:[%s8395_s12 + $0x7ec] sm:$0xf]  ;;  %v5886_v52 = vor.u32 %v7499_v28, %v5883_v36  ;;  %v6014_v53 = vor.u32 %v7531_v38, %v6011_v40  ;;  %v5963_v21 = vld [vmem:[%s8395_s12 + $0x698] sm:$0xf0] }
 0x286   : > { %4394 = vmatpush.bf16.msra.mxu0 %v5166_v58  ;;  %v6142_v57 = vor.u32 %v7563_v49, %v6139_v50  ;;  %v5867_v58 = vld [vmem:[%s8395_s12 + $0x5d8] sm:$0xf0]  ;;  %v7519_v19 = vld [vmem:[%s8395_s12 + $0x68c] sm:$0xf] }
 0x287   : > { %v5870_v0 = vor.u32 %v7495_v56, %v5867_v58  ;;  %v7451_v36 = vld [vmem:[%s8395_s12 + $0x46c] sm:$0xf]  ;;  %v5691_v38 = vld [vmem:[%s8395_s12 + $0x478] sm:$0xf0] }
 0x288   : > { %4407 = vmatpush.bf16.msra.mxu1 %v5294_v60  ;;  %4420 = vmatpush.bf16.msra.mxu2 %v5422_v61  ;;  %v5995_v60 = vld [vmem:[%s8395_s12 + $0x6d8] sm:$0xf0]  ;;  %v7559_v61 = vld [vmem:[%s8395_s12 + $0x7cc] sm:$0xf]  ;;  %v5694_v55 = vor.u32 %v7451_v36, %v5691_v38 }
 0x289   : > { %4433 = vmatpush.bf16.msra.mxu3 %v5550_v1  ;;  %v5998_v1 = vor.u32 %v7527_v59, %v5995_v60  ;;  %v6126_v6 = vor.u32 %v7559_v61, %v6123_v62  ;;  %v7483_v40 = vld [vmem:[%s8395_s12 + $0x56c] sm:$0xf]  ;;  %v5819_v50 = vld [vmem:[%s8395_s12 + $0x578] sm:$0xf0] }
 0x28a   : > { %4395 = vmatpush.bf16.msra.mxu0 %v5150_v7  ;;  %v7523_v7 = vld [vmem:[%s8395_s12 + $0x6ac] sm:$0xf]  ;;  %v5822_v56 = vor.u32 %v7483_v40, %v5819_v50  ;;  %v5675_v59 = vld [vmem:[%s8395_s12 + $0x458] sm:$0xf0] }
 0x28b   : > { %v7447_v58 = vld [vmem:[%s8395_s12 + $0x44c] sm:$0xf]  ;;  %v5659_v12 = vld [vmem:[%s8395_s12 + $0x438] sm:$0xf0] }
 0x28c   : > { %4408 = vmatpush.bf16.msra.mxu1 %v5278_v9  ;;  %4421 = vmatpush.bf16.msra.mxu2 %v5406_v11  ;;  %v6107_v9 = vld [vmem:[%s8395_s12 + $0x7b8] sm:$0xf0]  ;;  %v5726_v11 = vor.u32 %v7459_v3, %v5723_v4  ;;  %v7479_v60 = vld [vmem:[%s8395_s12 + $0x54c] sm:$0xf]  ;;  %v5678_v10 = vor.u32 %v7447_v58, %v5675_v59 }
 0x28d   : > { %4434 = vmatpush.bf16.msra.mxu3 %v5534_v15  ;;  %v7487_v15 = vld [vmem:[%s8395_s12 + $0x58c] sm:$0xf] }
 0x28e   : > { %4396 = vmatpush.bf16.msra.mxu0 %v5134_v31  ;;  %v4190_v28 = vpop.f32.mrf.mxu0  ;;  %v5838_v30 = vor.u32 %v7487_v15, %v5835_v18  ;;  %v5966_v31 = vor.u32 %v7519_v19, %v5963_v21  ;;  %v7543_v5 = vld [vmem:[%s8395_s12 + $0x74c] sm:$0xf]  ;;  %v5787_v15 = vld [vmem:[%s8395_s12 + $0x538] sm:$0xf0] }
 0x28f   : > { %v7539_v18 = vld [vmem:[%s8395_s12 + $0x72c] sm:$0xf]  ;;  %v6043_v19 = vld [vmem:[%s8395_s12 + $0x738] sm:$0xf0] }
 0x290   : > { %4409 = vmatpush.bf16.msra.mxu1 %v5262_v43  ;;  %4422 = vmatpush.bf16.msra.mxu2 %v5390_v47  ;;  %v4203_v47 = vpop.f32.mrf.mxu1  ;;  %v7503_v36 = vld [vmem:[%s8395_s12 + $0x60c] sm:$0xf]  ;;  %v6046_v40 = vor.u32 %v7539_v18, %v6043_v19  ;;  %v6491_v19 = vld [vmem:[%s8395_s12 + $0xab8] sm:$0xf0] }
 0x291   : > { %4435 = vmatpush.bf16.msra.mxu3 %v5518_v51  ;;  %4397 = vmatmul.bf16.vlgmr.msra.gmra.mxu0 %v8539_v23  ;;  %v1143_v23 = vperm.slane %v9409_v16, 2  ;;  %v7515_v51 = vld [vmem:[%s8395_s12 + $0x66c] sm:$0xf] }
 0x292   : > { %4441 = vmatpush.bf16.msrb.mxu0 %v5758_v20  ;;  %v5947_v20 = vld [vmem:[%s8395_s12 + $0x678] sm:$0xf0]  ;;  %v7691_v59 = vld [vmem:[%s8395_s12 + $0xbec] sm:$0xf] }
 0x293   : > { %4423 = vmatmul.bf16.vlgmr.msra.gmra.mxu2 %v8537_v22  ;;  %4410 = vmatmul.bf16.vlgmr.msra.gmra.mxu1 %v8543_v26  ;;  %v5982_v22 = vor.u32 %v7523_v7, %v5979_v8  ;;  %v6091_v26 = vld [vmem:[%s8395_s12 + $0x798] sm:$0xf0]  ;;  %v4191_v43 = vadd.f32 %v4190_v28, %v1143_v23  ;;  %v7507_v23 = vld [vmem:[%s8395_s12 + $0x62c] sm:$0xf] }
 0x294   : > { %4454 = vmatpush.bf16.msrb.mxu1 %v5886_v52  ;;  %4467 = vmatpush.bf16.msrb.mxu2 %v6014_v53  ;;  %v6094_v49 = vor.u32 %v7551_v25, %v6091_v26  ;;  %v7547_v52 = vld [vmem:[%s8395_s12 + $0x76c] sm:$0xf]  ;;  %v6075_v53 = vld [vmem:[%s8395_s12 + $0x778] sm:$0xf0] }
 0x295   : > { %4480 = vmatpush.bf16.msrb.mxu3 %v6142_v57  ;;  %v4204_v54 = vadd.f32 %v4203_v47, %v4191_v43  ;;  %v5950_v57 = vor.u32 %v7515_v51, %v5947_v20  ;;  %v6078_v62 = vor.u32 %v7547_v52, %v6075_v53  ;;  %v7439_v25 = vld [vmem:[%s8395_s12 + $0x40c] sm:$0xf]  ;;  %v5643_v26 = vld [vmem:[%s8395_s12 + $0x418] sm:$0xf0] }
 0x296   : > { %4436 = vmatmul.bf16.vlgmr.msra.gmra.mxu3 %v8541_v24  ;;  %4442 = vmatpush.bf16.msrb.mxu0 %v5742_v63  ;;  %v6110_v24 = vor.u32 %v7555_v17, %v6107_v9  ;;  %v4216_v61 = vpop.f32.mrf.mxu2  ;;  %v5803_v63 = vld [vmem:[%s8395_s12 + $0x558] sm:$0xf0]  ;;  %v4192_v8 = vpop.f32.mrf.mxu0  ;;  %v7535_v47 = vld [vmem:[%s8395_s12 + $0x70c] sm:$0xf]  ;;  %v5646_v53 = vor.u32 %v7439_v25, %v5643_v26 }
 0x297   : > { %v4217_v3 = vadd.f32 %v4216_v61, %v4204_v54  ;;  %v5806_v17 = vor.u32 %v7479_v60, %v5803_v63  ;;  %v5899_v43 = vld [vmem:[%s8395_s12 + $0x618] sm:$0xf0]  ;;  %v7595_v51 = vld [vmem:[%s8395_s12 + $0x8ec] sm:$0xf] }
 0x298   : > { %4455 = vmatpush.bf16.msrb.mxu1 %v5870_v0  ;;  %4468 = vmatpush.bf16.msrb.mxu2 %v5998_v1  ;;  %v7511_v0 = vld [vmem:[%s8395_s12 + $0x64c] sm:$0xf]  ;;  %v5931_v1 = vld [vmem:[%s8395_s12 + $0x658] sm:$0xf0]  ;;  %v5902_v58 = vor.u32 %v7503_v36, %v5899_v43 }
 0x299   : > { %4481 = vmatpush.bf16.msrb.mxu3 %v6126_v6  ;;  %v4229_v4 = vpop.f32.mrf.mxu3  ;;  %v6059_v6 = vld [vmem:[%s8395_s12 + $0x758] sm:$0xf0]  ;;  %v5934_v9 = vor.u32 %v7511_v0, %v5931_v1  ;;  %v7627_v52 = vld [vmem:[%s8395_s12 + $0x9ec] sm:$0xf] }
 0x29a   : > { %4443 = vmatpush.bf16.msrb.mxu0 %v5726_v11  ;;  %v9433_v7 = vadd.f32 %v4229_v4, %v4217_v3  ;;  %v7443_v11 = vld [vmem:[%s8395_s12 + $0x42c] sm:$0xf]  ;;  %v6062_v14 = vor.u32 %v7543_v5, %v6059_v6  ;;  %v6267_v20 = vld [vmem:[%s8395_s12 + $0x8f8] sm:$0xf0] }
 0x29b   : > { %v5662_v21 = vor.u32 %v7443_v11, %v5659_v12  ;;  %v6395_v54 = vld [vmem:[%s8395_s12 + $0x9f8] sm:$0xf0]  ;;  %v7591_v1 = vld [vmem:[%s8395_s12 + $0x8cc] sm:$0xf] }
 0x29c   : > { %4456 = vmatpush.bf16.msrb.mxu1 %v5854_v13  ;;  %4469 = vmatpush.bf16.msrb.mxu2 %v5982_v22  ;;  %v7475_v13 = vld [vmem:[%s8395_s12 + $0x52c] sm:$0xf]  ;;  %v4205_v22 = vpop.f32.mrf.mxu1  ;;  %v6651_v60 = vld [vmem:[%s8395_s12 + $0xbf8] sm:$0xf0]  ;;  %v6398_v63 = vor.u32 %v7627_v52, %v6395_v54 }
 0x29d   : > { %4482 = vmatpush.bf16.msrb.mxu3 %v6110_v24  ;;  %v5915_v24 = vld [vmem:[%s8395_s12 + $0x638] sm:$0xf0]  ;;  %v7623_v4 = vld [vmem:[%s8395_s12 + $0x9cc] sm:$0xf]  ;;  %v6654_v5 = vor.u32 %v7691_v59, %v6651_v60 }
 0x29e   : > { %4444 = vmatpush.bf16.msrb.mxu0 %v5710_v41  ;;  %v5790_v41 = vor.u32 %v7475_v13, %v5787_v15  ;;  %v5918_v28 = vor.u32 %v7507_v23, %v5915_v24  ;;  %v4218_v38 = vpop.f32.mrf.mxu2  ;;  %v6251_v3 = vld [vmem:[%s8395_s12 + $0x8d8] sm:$0xf0]  ;;  %v7587_v22 = vld [vmem:[%s8395_s12 + $0x8ac] sm:$0xf] }
 0x29f   : > { %v6379_v6 = vld [vmem:[%s8395_s12 + $0x9d8] sm:$0xf0]  ;;  %v6254_v11 = vor.u32 %v7591_v1, %v6251_v3  ;;  %v7619_v15 = vld [vmem:[%s8395_s12 + $0x9ac] sm:$0xf] }
 0x2a0   : > { %4457 = vmatpush.bf16.msrb.mxu1 %v5838_v30  ;;  %4470 = vmatpush.bf16.msrb.mxu2 %v5966_v31  ;;  %v7471_v30 = vld [vmem:[%s8395_s12 + $0x50c] sm:$0xf]  ;;  %v5771_v31 = vld [vmem:[%s8395_s12 + $0x518] sm:$0xf0]  ;;  %v6382_v12 = vor.u32 %v7623_v4, %v6379_v6 }
 0x2a1   : > { %4483 = vmatpush.bf16.msrb.mxu3 %v6094_v49  ;;  %v6027_v49 = vld [vmem:[%s8395_s12 + $0x718] sm:$0xf0]  ;;  %v4231_v50 = vpop.f32.mrf.mxu3  ;;  %v7651_v18 = vld [vmem:[%s8395_s12 + $0xaac] sm:$0xf] }
 0x2a2   : > { %4445 = vmatpush.bf16.msrb.mxu0 %v5694_v55  ;;  %v7659_v55 = vld [vmem:[%s8395_s12 + $0xaec] sm:$0xf]  ;;  %v6030_v61 = vor.u32 %v7535_v47, %v6027_v49  ;;  %v6507_v8 = vld [vmem:[%s8395_s12 + $0xad8] sm:$0xf0] }
 0x2a3   : > { %v6363_v24 = vld [vmem:[%s8395_s12 + $0x9b8] sm:$0xf0]  ;;  %v7611_v52 = vld [vmem:[%s8395_s12 + $0x96c] sm:$0xf] }
 0x2a4   : > { %4458 = vmatpush.bf16.msrb.mxu1 %v5822_v56  ;;  %4471 = vmatpush.bf16.msrb.mxu2 %v5950_v57  ;;  %v6523_v56 = vld [vmem:[%s8395_s12 + $0xaf8] sm:$0xf0]  ;;  %v5774_v57 = vor.u32 %v7471_v30, %v5771_v31  ;;  %v7615_v31 = vld [vmem:[%s8395_s12 + $0x98c] sm:$0xf] }
 0x2a5   : > { %4484 = vmatpush.bf16.msrb.mxu3 %v6078_v62  ;;  %v6270_v62 = vor.u32 %v7595_v51, %v6267_v20  ;;  %v6526_v0 = vor.u32 %v7659_v55, %v6523_v56  ;;  %v6619_v25 = vld [vmem:[%s8395_s12 + $0xbb8] sm:$0xf0]  ;;  %v7579_v51 = vld [vmem:[%s8395_s12 + $0x86c] sm:$0xf] }
 0x2a6   : > { %4446 = vmatpush.bf16.msrb.mxu0 %v5678_v10  ;;  %v7655_v10 = vld [vmem:[%s8395_s12 + $0xacc] sm:$0xf]  ;;  %v6219_v30 = vld [vmem:[%s8395_s12 + $0x898] sm:$0xf0] }
 0x2a7   : > { %v6510_v13 = vor.u32 %v7655_v10, %v6507_v8  ;;  %v6347_v36 = vld [vmem:[%s8395_s12 + $0x998] sm:$0xf0]  ;;  %v7643_v56 = vld [vmem:[%s8395_s12 + $0xa6c] sm:$0xf] }
 0x2a8   : > { %4459 = vmatpush.bf16.msrb.mxu1 %v5806_v17  ;;  %4472 = vmatpush.bf16.msrb.mxu2 %v5934_v9  ;;  %v7687_v17 = vld [vmem:[%s8395_s12 + $0xbcc] sm:$0xf]  ;;  %v6635_v9 = vld [vmem:[%s8395_s12 + $0xbd8] sm:$0xf0]  ;;  %v6350_v49 = vor.u32 %v7615_v31, %v6347_v36 }
 0x2a9   : > { %4485 = vmatpush.bf16.msrb.mxu3 %v6062_v14  ;;  %v6235_v14 = vld [vmem:[%s8395_s12 + $0x8b8] sm:$0xf0]  ;;  %v6638_v23 = vor.u32 %v7687_v17, %v6635_v9  ;;  %v7607_v1 = vld [vmem:[%s8395_s12 + $0x94c] sm:$0xf] }
 0x2aa   : > { %4447 = vmatpush.bf16.msrb.mxu0 %v5662_v21  ;;  %v7683_v21 = vld [vmem:[%s8395_s12 + $0xbac] sm:$0xf]  ;;  %v6238_v26 = vor.u32 %v7587_v22, %v6235_v14  ;;  %v6475_v38 = vld [vmem:[%s8395_s12 + $0xa98] sm:$0xf0] }
 0x2ab   : > { %v6603_v43 = vld [vmem:[%s8395_s12 + $0xb98] sm:$0xf0]  ;;  %v7639_v6 = vld [vmem:[%s8395_s12 + $0xa4c] sm:$0xf] }
 0x2ac   : > { %4460 = vmatpush.bf16.msrb.mxu1 %v5790_v41  ;;  %4473 = vmatpush.bf16.msrb.mxu2 %v5918_v28  ;;  %v6494_v41 = vor.u32 %v7651_v18, %v6491_v19  ;;  %v7583_v28 = vld [vmem:[%s8395_s12 + $0x88c] sm:$0xf]  ;;  %v6203_v20 = vld [vmem:[%s8395_s12 + $0x878] sm:$0xf0] }
 0x2ad   : > { %4486 = vmatpush.bf16.msrb.mxu3 %v6046_v40  ;;  %v7679_v40 = vld [vmem:[%s8395_s12 + $0xb8c] sm:$0xf]  ;;  %v6331_v55 = vld [vmem:[%s8395_s12 + $0x978] sm:$0xf0]  ;;  %v6206_v60 = vor.u32 %v7579_v51, %v6203_v20 }
 0x2ae   : > { %4448 = vmatpush.bf16.msrb.mxu0 %v5646_v53  ;;  %v9487_v47 = vpop.f32.mrf.mxu0  ;;  %v6606_v54 = vor.u32 %v7679_v40, %v6603_v43  ;;  %v6587_v59 = vld [vmem:[%s8395_s12 + $0xb78] sm:$0xf0]  ;;  %v7671_v17 = vld [vmem:[%s8395_s12 + $0xb4c] sm:$0xf] }
 0x2af   : > { %v6443_v10 = vld [vmem:[%s8395_s12 + $0xa58] sm:$0xf0]  ;;  %v7571_v14 = vld [vmem:[%s8395_s12 + $0x82c] sm:$0xf] }
 0x2b0   : > { %4461 = vmatpush.bf16.msrb.mxu1 %v5774_v57  ;;  %4474 = vmatpush.bf16.msrb.mxu2 %v5902_v58  ;;  %v9492_v53 = vpop.f32.mrf.mxu1  ;;  %v6459_v57 = vld [vmem:[%s8395_s12 + $0xa78] sm:$0xf0]  ;;  %v7675_v58 = vld [vmem:[%s8395_s12 + $0xb6c] sm:$0xf]  ;;  %v6446_v22 = vor.u32 %v7639_v6, %v6443_v10 }
 0x2b1   : > { %4487 = vmatpush.bf16.msrb.mxu3 %v6030_v61  ;;  %4449 = vmatmul.bf16.vlgmr.msrb.gmra.mxu0 %v8599_v45  ;;  %v6622_v45 = vor.u32 %v7683_v21, %v6619_v25  ;;  %v6334_v61 = vor.u32 %v7611_v52, %v6331_v55  ;;  %v6590_v4 = vor.u32 %v7675_v58, %v6587_v59  ;;  %v6571_v9 = vld [vmem:[%s8395_s12 + $0xb58] sm:$0xf0]  ;;  %v7635_v21 = vld [vmem:[%s8395_s12 + $0xa2c] sm:$0xf] }
 0x2b2   : > { %4493 = vmatpush.bf16.msra.mxu0 %v6270_v62  ;;  %v6462_v62 = vor.u32 %v7643_v56, %v6459_v57  ;;  %v6574_v18 = vor.u32 %v7671_v17, %v6571_v9  ;;  %v6299_v19 = vld [vmem:[%s8395_s12 + $0x938] sm:$0xf0]  ;;  %v7599_v36 = vld [vmem:[%s8395_s12 + $0x90c] sm:$0xf] }
 0x2b3   : > { %4475 = vmatmul.bf16.vlgmr.msrb.gmra.mxu2 %v8595_v42  ;;  %4462 = vmatmul.bf16.vlgmr.msrb.gmra.mxu1 %v8603_v48  ;;  %v6366_v42 = vor.u32 %v7619_v15, %v6363_v24  ;;  %v6222_v48 = vor.u32 %v7583_v28, %v6219_v30  ;;  %v6171_v15 = vld [vmem:[%s8395_s12 + $0x838] sm:$0xf0]  ;;  %v7567_v28 = vld [vmem:[%s8395_s12 + $0x80c] sm:$0xf] }
 0x2b4   : > { %4506 = vmatpush.bf16.msra.mxu1 %v6398_v63  ;;  %4519 = vmatpush.bf16.msra.mxu2 %v6526_v0  ;;  %v7575_v63 = vld [vmem:[%s8395_s12 + $0x84c] sm:$0xf]  ;;  %v6187_v0 = vld [vmem:[%s8395_s12 + $0x858] sm:$0xf0] }
 0x2b5   : > { %4532 = vmatpush.bf16.msra.mxu3 %v6654_v5  ;;  %v6315_v5 = vld [vmem:[%s8395_s12 + $0x958] sm:$0xf0]  ;;  %v7723_v20 = vld [vmem:[%s8395_s12 + $0xcec] sm:$0xf] }
 0x2b6   : > { %4488 = vmatmul.bf16.vlgmr.msrb.gmra.mxu3 %v8601_v46  ;;  %4494 = vmatpush.bf16.msra.mxu0 %v6254_v11  ;;  %v7647_v46 = vld [vmem:[%s8395_s12 + $0xa8c] sm:$0xf]  ;;  %v9502_v3 = vpop.f32.mrf.mxu2  ;;  %v6190_v11 = vor.u32 %v7575_v63, %v6187_v0  ;;  %v6427_v25 = vld [vmem:[%s8395_s12 + $0xa38] sm:$0xf0] }
 0x2b7   : > { %v6478_v50 = vor.u32 %v7647_v46, %v6475_v38  ;;  %v6155_v30 = vld [vmem:[%s8395_s12 + $0x818] sm:$0xf0]  ;;  %v7631_v38 = vld [vmem:[%s8395_s12 + $0xa0c] sm:$0xf] }
 0x2b8   : > { %4507 = vmatpush.bf16.msra.mxu1 %v6382_v12  ;;  %4520 = vmatpush.bf16.msra.mxu2 %v6510_v13  ;;  %v4244_v12 = vpop.f32.mrf.mxu0  ;;  %v6318_v13 = vor.u32 %v7607_v1, %v6315_v5  ;;  %v4257_v24 = vpop.f32.mrf.mxu1  ;;  %v6283_v46 = vld [vmem:[%s8395_s12 + $0x918] sm:$0xf0]  ;;  %v6158_v55 = vor.u32 %v7567_v28, %v6155_v30  ;;  %v7787_v57 = vld [vmem:[%s8395_s12 + $0xeec] sm:$0xf] }
 0x2b9   : > { %4533 = vmatpush.bf16.msra.mxu3 %v6638_v23  ;;  %v9507_v8 = vpop.f32.mrf.mxu3  ;;  %v7603_v23 = vld [vmem:[%s8395_s12 + $0x92c] sm:$0xf]  ;;  %v6779_v52 = vld [vmem:[%s8395_s12 + $0xcf8] sm:$0xf0]  ;;  %v6286_v59 = vor.u32 %v7599_v36, %v6283_v46 }
 0x2ba   : > { %4495 = vmatpush.bf16.msra.mxu0 %v6238_v26  ;;  %v7667_v26 = vld [vmem:[%s8395_s12 + $0xb2c] sm:$0xf]  ;;  %v6302_v31 = vor.u32 %v7603_v23, %v6299_v19  ;;  %v6907_v56 = vld [vmem:[%s8395_s12 + $0xdf8] sm:$0xf0]  ;;  %v6782_v0 = vor.u32 %v7723_v20, %v6779_v52 }
 0x2bb   : > { %v7035_v58 = vld [vmem:[%s8395_s12 + $0xef8] sm:$0xf0]  ;;  %v7719_v5 = vld [vmem:[%s8395_s12 + $0xccc] sm:$0xf] }
 0x2bc   : > { %4508 = vmatpush.bf16.msra.mxu1 %v6366_v42  ;;  %4521 = vmatpush.bf16.msra.mxu2 %v6494_v41  ;;  %v6555_v42 = vld [vmem:[%s8395_s12 + $0xb38] sm:$0xf0]  ;;  %v6174_v41 = vor.u32 %v7571_v14, %v6171_v15  ;;  %v7751_v10 = vld [vmem:[%s8395_s12 + $0xdcc] sm:$0xf] }
 0x2bd   : > { %4534 = vmatpush.bf16.msra.mxu3 %v6622_v45  ;;  %v6430_v45 = vor.u32 %v7635_v21, %v6427_v25  ;;  %v6558_v43 = vor.u32 %v7667_v26, %v6555_v42  ;;  %v6763_v6 = vld [vmem:[%s8395_s12 + $0xcd8] sm:$0xf0]  ;;  %v7715_v24 = vld [vmem:[%s8395_s12 + $0xcac] sm:$0xf] }
 0x2be   : > { %4496 = vmatpush.bf16.msra.mxu0 %v6222_v48  ;;  %v4270_v40 = vpop.f32.mrf.mxu2  ;;  %v6411_v48 = vld [vmem:[%s8395_s12 + $0xa18] sm:$0xf0]  ;;  %v6766_v14 = vor.u32 %v7719_v5, %v6763_v6  ;;  %v7747_v19 = vld [vmem:[%s8395_s12 + $0xdac] sm:$0xf] }
 0x2bf   : > { %v6891_v9 = vld [vmem:[%s8395_s12 + $0xdd8] sm:$0xf0]  ;;  %v7779_v26 = vld [vmem:[%s8395_s12 + $0xeac] sm:$0xf] }
 0x2c0   : > { %4509 = vmatpush.bf16.msra.mxu1 %v6350_v49  ;;  %4522 = vmatpush.bf16.msra.mxu2 %v6478_v50  ;;  %v7663_v49 = vld [vmem:[%s8395_s12 + $0xb0c] sm:$0xf]  ;;  %v6539_v50 = vld [vmem:[%s8395_s12 + $0xb18] sm:$0xf0]  ;;  %v6894_v15 = vor.u32 %v7751_v10, %v6891_v9 }
 0x2c1   : > { %4535 = vmatpush.bf16.msra.mxu3 %v6606_v54  ;;  %v4283_v51 = vpop.f32.mrf.mxu3  ;;  %v7755_v54 = vld [vmem:[%s8395_s12 + $0xdec] sm:$0xf]  ;;  %v6542_v63 = vor.u32 %v7663_v49, %v6539_v50  ;;  %v7019_v12 = vld [vmem:[%s8395_s12 + $0xed8] sm:$0xf0] }
 0x2c2   : > { %4497 = vmatpush.bf16.msra.mxu0 %v6206_v60  ;;  %v6414_v60 = vor.u32 %v7631_v38, %v6411_v48  ;;  %v6910_v1 = vor.u32 %v7755_v54, %v6907_v56  ;;  %v6875_v25 = vld [vmem:[%s8395_s12 + $0xdb8] sm:$0xf0]  ;;  %v7775_v38 = vld [vmem:[%s8395_s12 + $0xe8c] sm:$0xf] }
 0x2c3   : > { %v7003_v42 = vld [vmem:[%s8395_s12 + $0xeb8] sm:$0xf0]  ;;  %v6878_v30 = vor.u32 %v7747_v19, %v6875_v25  ;;  %v7707_v52 = vld [vmem:[%s8395_s12 + $0xc6c] sm:$0xf] }
 0x2c4   : > { %4510 = vmatpush.bf16.msra.mxu1 %v6334_v61  ;;  %4523 = vmatpush.bf16.msra.mxu2 %v6462_v62  ;;  %v7819_v61 = vld [vmem:[%s8395_s12 + $0xfec] sm:$0xf]  ;;  %v7163_v62 = vld [vmem:[%s8395_s12 + $0xff8] sm:$0xf0] }
 0x2c5   : > { %4536 = vmatpush.bf16.msra.mxu3 %v6590_v4  ;;  %v7038_v4 = vor.u32 %v7787_v57, %v7035_v58  ;;  %v7166_v17 = vor.u32 %v7819_v61, %v7163_v62  ;;  %v7131_v28 = vld [vmem:[%s8395_s12 + $0xfb8] sm:$0xf0]  ;;  %v7771_v58 = vld [vmem:[%s8395_s12 + $0xe6c] sm:$0xf] }
 0x2c6   : > { %4498 = vmatpush.bf16.msra.mxu0 %v6190_v11  ;;  %v7783_v11 = vld [vmem:[%s8395_s12 + $0xecc] sm:$0xf]  ;;  %v6731_v36 = vld [vmem:[%s8395_s12 + $0xc98] sm:$0xf0] }
 0x2c7   : > { %v7022_v23 = vor.u32 %v7783_v11, %v7019_v12  ;;  %v6859_v46 = vld [vmem:[%s8395_s12 + $0xd98] sm:$0xf0]  ;;  %v7735_v5 = vld [vmem:[%s8395_s12 + $0xd4c] sm:$0xf] }
 0x2c8   : > { %4511 = vmatpush.bf16.msra.mxu1 %v6318_v13  ;;  %4524 = vmatpush.bf16.msra.mxu2 %v6446_v22  ;;  %v7815_v13 = vld [vmem:[%s8395_s12 + $0xfcc] sm:$0xf]  ;;  %v7147_v22 = vld [vmem:[%s8395_s12 + $0xfd8] sm:$0xf0] }
 0x2c9   : > { %4537 = vmatpush.bf16.msra.mxu3 %v6574_v18  ;;  %v6747_v18 = vld [vmem:[%s8395_s12 + $0xcb8] sm:$0xf0]  ;;  %v7150_v21 = vor.u32 %v7815_v13, %v7147_v22  ;;  %v7767_v9 = vld [vmem:[%s8395_s12 + $0xe4c] sm:$0xf] }
 0x2ca   : > { %4499 = vmatpush.bf16.msra.mxu0 %v6174_v41  ;;  %v7811_v41 = vld [vmem:[%s8395_s12 + $0xfac] sm:$0xf]  ;;  %v6987_v40 = vld [vmem:[%s8395_s12 + $0xe98] sm:$0xf0] }
 0x2cb   : > { %v7115_v48 = vld [vmem:[%s8395_s12 + $0xf98] sm:$0xf0]  ;;  %v6990_v20 = vor.u32 %v7775_v38, %v6987_v40  ;;  %v7799_v13 = vld [vmem:[%s8395_s12 + $0xf4c] sm:$0xf] }
 0x2cc   : > { %4512 = vmatpush.bf16.msra.mxu1 %v6302_v31  ;;  %4525 = vmatpush.bf16.msra.mxu2 %v6430_v45  ;;  %v7006_v31 = vor.u32 %v7779_v26, %v7003_v42  ;;  %v7711_v45 = vld [vmem:[%s8395_s12 + $0xc8c] sm:$0xf]  ;;  %v6715_v54 = vld [vmem:[%s8395_s12 + $0xc78] sm:$0xf0] }
 0x2cd   : > { %4538 = vmatpush.bf16.msra.mxu3 %v6558_v43  ;;  %v7807_v43 = vld [vmem:[%s8395_s12 + $0xf8c] sm:$0xf]  ;;  %v6734_v49 = vor.u32 %v7711_v45, %v6731_v36  ;;  %v6843_v57 = vld [vmem:[%s8395_s12 + $0xd78] sm:$0xf0]  ;;  %v6718_v62 = vor.u32 %v7707_v52, %v6715_v54 }
 0x2ce   : > { %4500 = vmatpush.bf16.msra.mxu0 %v6158_v55  ;;  %v7739_v55 = vld [vmem:[%s8395_s12 + $0xd6c] sm:$0xf]  ;;  %v7118_v56 = vor.u32 %v7807_v43, %v7115_v48  ;;  %v7099_v61 = vld [vmem:[%s8395_s12 + $0xf78] sm:$0xf0] }
 0x2cf   : > { %v6955_v11 = vld [vmem:[%s8395_s12 + $0xe58] sm:$0xf0]  ;;  %v7731_v26 = vld [vmem:[%s8395_s12 + $0xd2c] sm:$0xf] }
 0x2d0   : > { %4513 = vmatpush.bf16.msra.mxu1 %v6286_v59  ;;  %4526 = vmatpush.bf16.msra.mxu2 %v6414_v60  ;;  %v9565_v50 = vpop.f32.mrf.mxu1  ;;  %v6971_v59 = vld [vmem:[%s8395_s12 + $0xe78] sm:$0xf0]  ;;  %v7803_v60 = vld [vmem:[%s8395_s12 + $0xf6c] sm:$0xf]  ;;  %v6958_v19 = vor.u32 %v7767_v9, %v6955_v11  ;;  %v7825_v9 = vld [vmem:[%s8403_s29 + $0x18] sm:$0xff] }
 0x2d1   : > { %4539 = vmatpush.bf16.msra.mxu3 %v6542_v63  ;;  %4501 = vmatmul.bf16.vlgmr.msra.gmra.mxu0 %v8668_v29  ;;  %v6750_v29 = vor.u32 %v7715_v24, %v6747_v18  ;;  %v6846_v63 = vor.u32 %v7739_v55, %v6843_v57  ;;  %v7102_v6 = vor.u32 %v7803_v60, %v7099_v61  ;;  %v7083_v22 = vld [vmem:[%s8395_s12 + $0xf58] sm:$0xf0]  ;;  %v7759_v43 = vld [vmem:[%s8395_s12 + $0xe0c] sm:$0xf]  ;;  %v7845_v60 = vld [vmem:[%s8403_s29 + $0xb8] sm:$0xff] }
 0x2d2   : > { %4545 = vmatpush.bf16.msrb.mxu0 %v6782_v0  ;;  %v6974_v0 = vor.u32 %v7771_v58, %v6971_v59  ;;  %v6683_v25 = vld [vmem:[%s8395_s12 + $0xc38] sm:$0xf0]  ;;  %v7086_v42 = vor.u32 %v7799_v13, %v7083_v22  ;;  %v7829_v58 = vld [vmem:[%s8403_s29 + $0x38] sm:$0xff] }
 0x2d3   : > { %4527 = vmatmul.bf16.vlgmr.msra.gmra.mxu2 %v8673_v33  ;;  %4514 = vmatmul.bf16.vlgmr.msra.gmra.mxu1 %v8675_v34  ;;  %v7743_v33 = vld [vmem:[%s8395_s12 + $0xd8c] sm:$0xf]  ;;  %v7134_v34 = vor.u32 %v7811_v41, %v7131_v28  ;;  %v6811_v41 = vld [vmem:[%s8395_s12 + $0xd38] sm:$0xf0]  ;;  %v7837_v59 = vld [vmem:[%s8403_s29 + $0x78] sm:$0xff] }
 0x2d4   : > { %4558 = vmatpush.bf16.msrb.mxu1 %v6910_v1  ;;  %4571 = vmatpush.bf16.msrb.mxu2 %v7038_v4  ;;  %v6862_v51 = vor.u32 %v7743_v33, %v6859_v46  ;;  %v7703_v1 = vld [vmem:[%s8395_s12 + $0xc4c] sm:$0xf]  ;;  %v6699_v4 = vld [vmem:[%s8395_s12 + $0xc58] sm:$0xf0]  ;;  %v6814_v45 = vor.u32 %v7731_v26, %v6811_v41  ;;  %v7841_v11 = vld [vmem:[%s8403_s29 + $0x98] sm:$0xff] }
 0x2d5   : > { %4584 = vmatpush.bf16.msrb.mxu3 %v7166_v17  ;;  %v6827_v17 = vld [vmem:[%s8395_s12 + $0xd58] sm:$0xf0]  ;;  %v7763_v28 = vld [vmem:[%s8395_s12 + $0xe2c] sm:$0xf]  ;;  %v7839_v26 = vld [vmem:[%s8403_s29 + $0x88] sm:$0xff] }
 0x2d6   : > { %4540 = vmatmul.bf16.vlgmr.msra.gmra.mxu3 %v8679_v37  ;;  %4546 = vmatpush.bf16.msrb.mxu0 %v6766_v14  ;;  %v9561_v37 = vpop.f32.mrf.mxu0  ;;  %v9578_v10 = vpop.f32.mrf.mxu2  ;;  %v6830_v18 = vor.u32 %v7735_v5, %v6827_v17  ;;  %v7695_v33 = vld [vmem:[%s8395_s12 + $0xc0c] sm:$0xf]  ;;  %v6795_v40 = vld [vmem:[%s8395_s12 + $0xd18] sm:$0xf0] }
 0x2d7   : > { %v7727_v46 = vld [vmem:[%s8395_s12 + $0xd0c] sm:$0xf]  ;;  %v6923_v48 = vld [vmem:[%s8395_s12 + $0xe18] sm:$0xf0] }
 0x2d8   : > { %4559 = vmatpush.bf16.msrb.mxu1 %v6894_v15  ;;  %4572 = vmatpush.bf16.msrb.mxu2 %v7022_v23  ;;  %v4243_v15 = vadd.f32 %v9487_v47, %v9433_v7  ;;  %v6702_v23 = vor.u32 %v7703_v1, %v6699_v4  ;;  %v4309_v24 = vpop.f32.mrf.mxu1  ;;  %v6939_v7 = vld [vmem:[%s8395_s12 + $0xe38] sm:$0xf0]  ;;  %v7795_v47 = vld [vmem:[%s8395_s12 + $0xf2c] sm:$0xf]  ;;  %v6798_v55 = vor.u32 %v7727_v46, %v6795_v40  ;;  %v7835_v1 = vld [vmem:[%s8403_s29 + $0x68] sm:$0xff]  ;;  %v1144_v46 = vperm.slane %v9409_v16, 3 }
 0x2d9   : > { %4585 = vmatpush.bf16.msrb.mxu3 %v7150_v21  ;;  %v9583_v12 = vpop.f32.mrf.mxu3  ;;  %v7699_v21 = vld [vmem:[%s8395_s12 + $0xc2c] sm:$0xf]  ;;  %v6942_v36 = vor.u32 %v7763_v28, %v6939_v7  ;;  %v7843_v4 = vld [vmem:[%s8403_s29 + $0xa8] sm:$0xff] }
 0x2da   : > { %4547 = vmatpush.bf16.msrb.mxu0 %v6750_v29  ;;  %v7067_v29 = vld [vmem:[%s8395_s12 + $0xf38] sm:$0xf0]  ;;  %v7822_v7 = vld [vmem:[%s8403_s29] sm:$0xff] }
 0x2db   : > { %v7070_v38 = vor.u32 %v7795_v47, %v7067_v29  ;;  %v4597_v47 = vmax.f32 %v9075_v44, 0.0  ;;  %v7830_v29 = vld [vmem:[%s8403_s29 + $0x40] sm:$0xff] }
 0x2dc   : > { %4560 = vmatpush.bf16.msrb.mxu1 %v6878_v30  ;;  %4573 = vmatpush.bf16.msrb.mxu2 %v7006_v31  ;;  %v4256_v30 = vadd.f32 %v9492_v53, %v4243_v15  ;;  %v6686_v31 = vor.u32 %v7699_v21, %v6683_v25  ;;  %v7823_v21 = vld [vmem:[%s8403_s29 + $0x8] sm:$0xff] }
 0x2dd   : > { %4586 = vmatpush.bf16.msrb.mxu3 %v7134_v34  ;;  %v6667_v34 = vld [vmem:[%s8395_s12 + $0xc18] sm:$0xf0]  ;;  %v7831_v25 = vld [vmem:[%s8403_s29 + $0x48] sm:$0xff] }
 0x2de   : > { %4548 = vmatpush.bf16.msrb.mxu0 %v6734_v49  ;;  %v4296_v14 = vpop.f32.mrf.mxu0  ;;  %v4322_v53 = vpop.f32.mrf.mxu2  ;;  %v7791_v49 = vld [vmem:[%s8395_s12 + $0xf0c] sm:$0xf]  ;;  %v4269_v52 = vadd.f32 %v9502_v3, %v4256_v30  ;;  %v6670_v54 = vor.u32 %v7695_v33, %v6667_v34 }
 0x2df   : > { %v7838_v30 = vld [vmem:[%s8403_s29 + $0x80] sm:$0xff] }
 0x2e0   : > { %4561 = vmatpush.bf16.msrb.mxu1 %v6862_v51  ;;  %4574 = vmatpush.bf16.msrb.mxu2 %v6990_v20  ;;  %v7051_v51 = vld [vmem:[%s8395_s12 + $0xf18] sm:$0xf0]  ;;  %v4282_v61 = vadd.f32 %v9507_v8, %v4269_v52 }
 0x2e1   : > { %4587 = vmatpush.bf16.msrb.mxu3 %v7118_v56  ;;  %v4335_v20 = vpop.f32.mrf.mxu3  ;;  %v6926_v56 = vor.u32 %v7759_v43, %v6923_v48  ;;  %v7054_v57 = vor.u32 %v7791_v49, %v7051_v51 }
 0x2e2   : > { %4549 = vmatpush.bf16.msrb.mxu0 %v6718_v62  ;;  %v4295_v3 = vadd.f32 %v9561_v37, %v4282_v61  ;;  %v7828_v62 = vld [vmem:[%s8403_s29 + $0x30] sm:$0xff]  ;;  %v7827_v37 = vld [vmem:[%s8403_s29 + $0x28] sm:$0xff] }
 0x2e3   : > { %v7852_v61 = vld [vmem:[%s8403_s29 + $0xf0] sm:$0xff] }
 0x2e4   : > { %4562 = vmatpush.bf16.msrb.mxu1 %v6846_v63  ;;  %4575 = vmatpush.bf16.msrb.mxu2 %v6974_v0  ;;  %v7836_v63 = vld [vmem:[%s8403_s29 + $0x70] sm:$0xff]  ;;  %v4308_v8 = vadd.f32 %v9565_v50, %v4295_v3  ;;  %v7842_v50 = vld [vmem:[%s8403_s29 + $0xa0] sm:$0xff] }
 0x2e5   : > { %4588 = vmatpush.bf16.msrb.mxu3 %v7102_v6  ;;  %v7844_v0 = vld [vmem:[%s8403_s29 + $0xb0] sm:$0xff] }
 0x2e6   : > { %4550 = vmatpush.bf16.msrb.mxu0 %v6702_v23  ;;  %v7824_v23 = vld [vmem:[%s8403_s29 + $0x10] sm:$0xff] }
 0x2e8   : > { %4563 = vmatpush.bf16.msrb.mxu1 %v6830_v18  ;;  %4576 = vmatpush.bf16.msrb.mxu2 %v6958_v19  ;;  %v7840_v18 = vld [vmem:[%s8403_s29 + $0x90] sm:$0xff] }
 0x2e9   : > { %4589 = vmatpush.bf16.msrb.mxu3 %v7086_v42 }
 0x2ea   : > { %4551 = vmatpush.bf16.msrb.mxu0 %v6686_v31  ;;  %v4598_v31 = vmax.f32 %v9359_v2, 0.0 }
 0x2ec   : > { %4564 = vmatpush.bf16.msrb.mxu1 %v6814_v45  ;;  %4577 = vmatpush.bf16.msrb.mxu2 %v6942_v36  ;;  %v4601_v36 = vpack.c.bf16 %v4597_v47, %v4597_v47  ;;  %v4602_v33 = vpack.c.bf16 %v4598_v31, %v4598_v31 }
 0x2ed   : > { %4590 = vmatpush.bf16.msrb.mxu3 %v7070_v38 }
 0x2ee   : > { %4552 = vmatpush.bf16.msrb.mxu0 %v6670_v54 }
 0x2f0   : > { %4565 = vmatpush.bf16.msrb.mxu1 %v6798_v55  ;;  %4578 = vmatpush.bf16.msrb.mxu2 %v6926_v56  ;;  %v4359_v5 = vpop.f32.mrf.mxu1 }
 0x2f1   : > { %4591 = vmatpush.bf16.msrb.mxu3 %v7054_v57  ;;  %4553 = vmatmul.bf16.vlgmr.msrb.gmra.mxu0 %v8744_v27  ;;  %v4321_v27 = vadd.f32 %v9578_v10, %v4308_v8  ;;  %v7833_v10 = vld [vmem:[%s8403_s29 + $0x58] sm:$0xff] }
 0x2f2   : > { %4862 = vmatpush.bf16.msra.mxu0 %v7829_v58  ;;  %v7853_v58 = vld [vmem:[%s8403_s29 + $0xf8] sm:$0xff] }
 0x2f3   : > { %4566 = vmatmul.bf16.vlgmr.msrb.gmra.mxu1 %v8751_v35  ;;  %4579 = vmatmul.bf16.vlgmr.msrb.gmra.mxu2 %v8749_v32  ;;  %v4346_v35 = vpop.f32.mrf.mxu0  ;;  %v7826_v32 = vld [vmem:[%s8403_s29 + $0x20] sm:$0xff]  ;;  %v4334_v6 = vadd.f32 %v9583_v12, %v4321_v27  ;;  %v7832_v12 = vld [vmem:[%s8403_s29 + $0x50] sm:$0xff]  ;;  %v7849_v8 = vld [vmem:[%s8403_s29 + $0xd8] sm:$0xff] }
 0x2f4   : > { %4875 = vmatpush.bf16.msra.mxu1 %v7837_v59  ;;  %4888 = vmatpush.bf16.msra.mxu2 %v7845_v60  ;;  %v7847_v27 = vld [vmem:[%s8403_s29 + $0xc8] sm:$0xff] }
 0x2f5   : > { %4592 = vmatmul.bf16.vlgmr.msrb.gmra.mxu3 %v8755_v39  ;;  %v7834_v39 = vld [vmem:[%s8403_s29 + $0x60] sm:$0xff]  ;;  %v4347_v17 = vadd.f32 %v4346_v35, %v4334_v6 }
 0x2f6   : > { %4863 = vmatpush.bf16.msra.mxu0 %v7828_v62  ;;  %v4372_v13 = vpop.f32.mrf.mxu2  ;;  %4901 = vmatpush.bf16.msra.mxu3 %v7853_v58  ;;  %v7851_v62 = vld [vmem:[%s8403_s29 + $0xe8] sm:$0xff]  ;;  %v7846_v6 = vld [vmem:[%s8403_s29 + $0xc0] sm:$0xff] }
 0x2f7   : > { %v4360_v15 = vadd.f32 %v4359_v5, %v4347_v17 }
 0x2f8   : > { %4876 = vmatpush.bf16.msra.mxu1 %v7836_v63  ;;  %4889 = vmatpush.bf16.msra.mxu2 %v7844_v0  ;;  %v4361_v24 = vpop.f32.mrf.mxu1  ;;  %v7850_v0 = vld [vmem:[%s8403_s29 + $0xe0] sm:$0xff] }
 0x2f9   : > { %v4385_v22 = vpop.f32.mrf.mxu3  ;;  %v4373_v19 = vadd.f32 %v4372_v13, %v4360_v15 }
 0x2fa   : > { %4864 = vmatpush.bf16.msra.mxu0 %v7827_v37  ;;  %4902 = vmatpush.bf16.msra.mxu3 %v7852_v61 }
 0x2fb   : > { %v4348_v14 = vpop.f32.mrf.mxu0  ;;  %v4386_v42 = vadd.f32 %v4385_v22, %v4373_v19 }
 0x2fc   : > { %4877 = vmatpush.bf16.msra.mxu1 %v7835_v1  ;;  %4890 = vmatpush.bf16.msra.mxu2 %v7843_v4  ;;  %v7848_v4 = vld [vmem:[%s8403_s29 + $0xd0] sm:$0xff] }
 0x2fd   : > { %v4599_v45 = vmax.f32 %v4386_v42, 0.0 }
 0x2fe   : > { %4865 = vmatpush.bf16.msra.mxu0 %v7826_v32  ;;  %v4374_v41 = vpop.f32.mrf.mxu2  ;;  %4903 = vmatpush.bf16.msra.mxu3 %v7851_v62 }
 0x2ff   : > { %v4603_v34 = vpack.c.bf16 %v4599_v45, %v4599_v45 }
 0x300   : > { %4878 = vmatpush.bf16.msra.mxu1 %v7834_v39  ;;  %4891 = vmatpush.bf16.msra.mxu2 %v7842_v50 }
 0x301   : > { %v4387_v28 = vpop.f32.mrf.mxu3 }
 0x302   : > { %4866 = vmatpush.bf16.msra.mxu0 %v7825_v9  ;;  %4904 = vmatpush.bf16.msra.mxu3 %v7850_v0 }
 0x304   : > { %4879 = vmatpush.bf16.msra.mxu1 %v7833_v10  ;;  %4892 = vmatpush.bf16.msra.mxu2 %v7841_v11 }
 0x306   : > { %4867 = vmatpush.bf16.msra.mxu0 %v7824_v23  ;;  %4905 = vmatpush.bf16.msra.mxu3 %v7849_v8 }
 0x308   : > { %4880 = vmatpush.bf16.msra.mxu1 %v7832_v12  ;;  %4893 = vmatpush.bf16.msra.mxu2 %v7840_v18 }
 0x30a   : > { %4868 = vmatpush.bf16.msra.mxu0 %v7823_v21  ;;  %4906 = vmatpush.bf16.msra.mxu3 %v7848_v4 }
 0x30c   : > { %4881 = vmatpush.bf16.msra.mxu1 %v7831_v25  ;;  %4894 = vmatpush.bf16.msra.mxu2 %v7839_v26 }
 0x30e   : > { %4869 = vmatpush.bf16.msra.mxu0 %v7822_v7  ;;  %v4398_v38 = vpop.f32.mrf.mxu0  ;;  %4907 = vmatpush.bf16.msra.mxu3 %v7847_v27 }
 0x30f   : > { %v4399_v44 = vadd.f32 %v4398_v38, %v1144_v46 }
 0x310   : > { %4882 = vmatpush.bf16.msra.mxu1 %v7830_v29  ;;  %4895 = vmatpush.bf16.msra.mxu2 %v7838_v30  ;;  %v4411_v40 = vpop.f32.mrf.mxu1 }
 0x311   : > { %4870 = vmatmul.bf16.vlgmr.msra.gmra.mxu0 %v4601_v36  ;;  %v4412_v43 = vadd.f32 %v4411_v40, %v4399_v44  ;;  %v4605_v40 = vld [vmem:[%s9704_s27] sm:$0xff] }
 0x312   : > { %4908 = vmatpush.bf16.msra.mxu3 %v7846_v6 }
 0x313   : > { %4883 = vmatmul.bf16.vlgmr.msra.gmra.mxu1 %v4602_v33  ;;  %4896 = vmatmul.bf16.vlgmr.msra.gmra.mxu2 %v4603_v34 }
 0x316   : > { %v4424_v48 = vpop.f32.mrf.mxu2  ;;  %v4400_v51 = vpop.f32.mrf.mxu0 }
 0x317   : > { %v4425_v2 = vadd.f32 %v4424_v48, %v4412_v43 }
 0x318   : > { %v4413_v20 = vpop.f32.mrf.mxu1 }
 0x319   : > { %v4437_v53 = vpop.f32.mrf.mxu3 }
 0x31a   : > { %v4438_v49 = vadd.f32 %v4437_v53, %v4425_v2 }
 0x31e   : > { %v4426_v52 = vpop.f32.mrf.mxu2 }
 0x321   : > { %v4439_v54 = vpop.f32.mrf.mxu3 }
 0x32e   : > { %v4450_v55 = vpop.f32.mrf.mxu0 }
 0x32f   : > { %v4451_v35 = vadd.f32 %v4450_v55, %v4438_v49 }
 0x330   : > { %v4463_v56 = vpop.f32.mrf.mxu1 }
 0x331   : > { %v4464_v17 = vadd.f32 %v4463_v56, %v4451_v35 }
 0x336   : > { %v4476_v16 = vpop.f32.mrf.mxu2  ;;  %v4452_v59 = vpop.f32.mrf.mxu0 }
 0x337   : > { %v4477_v9 = vadd.f32 %v4476_v16, %v4464_v17 }
 0x338   : > { %v4465_v60 = vpop.f32.mrf.mxu1 }
 0x339   : > { %v4489_v57 = vpop.f32.mrf.mxu3 }
 0x33a   : > { %v4490_v13 = vadd.f32 %v4489_v57, %v4477_v9 }
 0x33e   : > { %v4478_v3 = vpop.f32.mrf.mxu2 }
 0x341   : > { %v4491_v63 = vpop.f32.mrf.mxu3 }
 0x34e   : > { %v4502_v37 = vpop.f32.mrf.mxu0 }
 0x34f   : > { %v4503_v22 = vadd.f32 %v4502_v37, %v4490_v13 }
 0x350   : > { %v4515_v1 = vpop.f32.mrf.mxu1 }
 0x351   : > { %v4516_v14 = vadd.f32 %v4515_v1, %v4503_v22 }
 0x356   : > { %v4528_v32 = vpop.f32.mrf.mxu2  ;;  %v4504_v39 = vpop.f32.mrf.mxu0 }
 0x357   : > { %v4529_v15 = vadd.f32 %v4528_v32, %v4516_v14 }
 0x358   : > { %v4517_v50 = vpop.f32.mrf.mxu1 }
 0x359   : > { %v4541_v5 = vpop.f32.mrf.mxu3 }
 0x35a   : > { %v4542_v23 = vadd.f32 %v4541_v5, %v4529_v15 }
 0x35e   : > { %v4530_v10 = vpop.f32.mrf.mxu2 }
 0x361   : > { %v4543_v11 = vpop.f32.mrf.mxu3 }
 0x36e   : > { %v4554_v24 = vpop.f32.mrf.mxu0 }
 0x36f   : > { %v4555_v18 = vadd.f32 %v4554_v24, %v4542_v23 }
 0x370   : > { %v4567_v12 = vpop.f32.mrf.mxu1 }
 0x371   : > { %v4568_v19 = vadd.f32 %v4567_v12, %v4555_v18 }
 0x376   : > { %v4580_v21 = vpop.f32.mrf.mxu2  ;;  %v4556_v42 = vpop.f32.mrf.mxu0 }
 0x377   : > { %v4581_v26 = vadd.f32 %v4580_v21, %v4568_v19 }
 0x378   : > { %v4593_v25 = vpop.f32.mrf.mxu3  ;;  %v4569_v41 = vpop.f32.mrf.mxu1 }
 0x379   : > { %v4594_v28 = vadd.f32 %v4593_v25, %v4581_v26 }
 0x37b   : > { %v4600_v7 = vmax.f32 %v4594_v28, 0.0 }
 0x37d   : > { %v4604_v47 = vpack.c.bf16 %v4600_v7, %v4600_v7 }
 0x37e   : > { %v4582_v29 = vpop.f32.mrf.mxu2 }
 0x37f   : > { %4909 = vmatmul.bf16.vlgmr.msra.gmra.mxu3 %v4604_v47 }
 0x380   : > { %v4595_v30 = vpop.f32.mrf.mxu3 }
 0x38e   : > { %v4871_v31 = vpop.f32.mrf.mxu0 }
 0x390   : > { %v4884_v45 = vpop.f32.mrf.mxu1 }
 0x391   : > { %v4885_v36 = vadd.f32 %v4884_v45, %v4871_v31 }
 0x396   : > { %v4897_v33 = vpop.f32.mrf.mxu2  ;;  %v4873_v46 = vpop.f32.mrf.mxu0 }
 0x397   : > { %v4898_v34 = vadd.f32 %v4897_v33, %v4885_v36 }
 0x398   : > { %v4886_v38 = vpop.f32.mrf.mxu1 }
 0x39e   : > { %v4899_v44 = vpop.f32.mrf.mxu2 }
 0x402   : > { %v4910_v43 = vpop.f32.mrf.mxu3 }
 0x403   : > { %v4911_v48 = vadd.f32 %v4910_v43, %v4898_v34 }
 0x405   : > { %v4914_v2 = vadd.f32 %v4911_v48, %v4605_v40 }
 0x407   : > { %4915 = vst [vmem:[%s9704_s27] sm:$0xff] %v4914_v2 }
 0x40a   : > { %v4912_v53 = vpop.f32.mrf.mxu3 }
 0x40b PF: > { %s18_s26 = sadd.s32 1, %s8210_s26   ;;  %s9705_s18 = sld [smem:[#allocation14_spill]] }
 0x40c   : > { %p15_p2 = scmp.ge.s32.totalorder %s18_s26, 4   ;;  %s9706_s7 = sld [smem:[#allocation13_spill]] }
 0x40d   : > { %s9707_s21 = smov %s8194_s22  ;;  %s9708_s22 = smov %s8198_s23 }
 0x40e   : > { %s9710_s24 = smov %s8206_s25  ;;  %17 = sbr.rel (!%p15_p2) target bundleno = 8 (0x8), region = 117 }
 0x411   : > { %s9709_s23 = smov %s9705_s18 }
 0x412   : > { %s9711_s25 = smov %s9706_s7 }
 0x413   :  { %4935 = vsyncpa [#allocation4], 1 }
 0x414   :  { %4937 = vsyncpa [#allocation4 + $0x1], 1 }
 0x415   :  { %4938 = vsyncpa [#allocation6], 1 }

</bundles_post_ra>
